<compile_context>
chip_gen: v5e
topology: v5e:2x2
jax: 0.10.0
libtpu: 0.0.40
codegen_flags: <defaults>
</compile_context>

<pallas_src>
import functools
import math

import jax
import jax.numpy as jnp
from jax.experimental import pallas as pl
from jax.experimental.pallas import tpu as pltpu

# ----------------------------- synthetic config ------------------------------
# (out_channels, kernel, stride) — small stand-in for wav2vec2's 7-layer stack.
CONV_LAYERS = [(16, 10, 5), (16, 4, 2), (16, 4, 2)]
EMBED_DIM = 32
NUM_HEADS = 4
FFN_DIM = 64
NUM_LAYERS = 2
POS_CONV_KERNEL = 4   # even kernel -> one trailing step removed (as torchaudio)
POS_CONV_GROUPS = 4
LN_EPS = 1e-5


# ------------------------------ in-kernel helpers -----------------------------
def _gelu(y):
    # exact (erf) GELU, matching torch.nn.GELU() default
    return 0.5 * y * (1.0 + jax.lax.erf(y * (1.0 / math.sqrt(2.0))))


def _layer_norm(x, g, b, eps=LN_EPS):
    mean = jnp.mean(x, axis=-1, keepdims=True)
    var = jnp.mean(jnp.square(x - mean), axis=-1, keepdims=True)
    return (x - mean) * jax.lax.rsqrt(var + eps) * g + b


def _full_spec(a):
    """Whole-array VMEM block with a constant block index: the array is resident
    across all grid steps and is not re-fetched between them."""
    nd = a.ndim
    return pl.BlockSpec(a.shape, lambda b: (0,) * nd)


def _batch_spec(shape):
    """Per-batch-element block of a (B, ...) array."""
    nd = len(shape)
    return pl.BlockSpec((1,) + tuple(shape[1:]), lambda b: (b,) + (0,) * (nd - 1))


# ------------------------------ Pallas kernels -------------------------------
def _conv0_gn_gelu_kernel(p_ref, w_ref, g_ref, b_ref, o_ref, *, eps):
    """im2col patches @ W (no bias) -> per-channel GroupNorm over time -> GELU."""
    p = p_ref[0]                                                   # (T, K*Cin)
    y = jnp.dot(p, w_ref[...], preferred_element_type=jnp.float32)  # (T, C)
    mean = jnp.mean(y, axis=0, keepdims=True)                      # per-channel over time
    var = jnp.mean(jnp.square(y - mean), axis=0, keepdims=True)
    y = (y - mean) * jax.lax.rsqrt(var + eps) * g_ref[...] + b_ref[...]
    o_ref[0] = _gelu(y)


def _conv_gelu_kernel(p_ref, w_ref, o_ref):
    """im2col patches @ W (no bias) -> GELU."""
    y = jnp.dot(p_ref[0], w_ref[...], preferred_element_type=jnp.float32)
    o_ref[0] = _gelu(y)


def _fp_posconv_kernel(x_ref, lng_ref, lnb_ref, wp_ref, bp_ref,
                       wpos_ref, bpos_ref, o_ref, *, kernel, pad):
    """Fused feature_projection (LayerNorm + Linear) + conv positional embedding
    (grouped conv as per-tap dense matmuls + in-kernel time shifts) + GELU + residual."""
    x = x_ref[0]                                                   # (T, Cf)
    T = x.shape[0]
    xn = _layer_norm(x, lng_ref[...], lnb_ref[...])
    xp = jnp.dot(xn, wp_ref[...], preferred_element_type=jnp.float32) + bp_ref[...]  # (T, E)

    # y[t] = bias + sum_k x_padded[t + k] @ W_k  (pad zeros each side, last step dropped)
    # time shift t -> t + (k - pad) realised as a (T, T) shift-matrix matmul; rows whose
    # shifted index falls outside [0, T) are all-zero, which implements the zero padding.
    rows = jax.lax.broadcasted_iota(jnp.int32, (T, T), 0)
    cols = jax.lax.broadcasted_iota(jnp.int32, (T, T), 1)
    conv = jnp.zeros_like(xp) + bpos_ref[...]
    for k in range(kernel):
        d = k - pad
        shift = jnp.where(cols == rows + d, 1.0, 0.0)              # (T, T)
        ck = jnp.dot(xp, wpos_ref[k], preferred_element_type=jnp.float32)
        conv = conv + jnp.dot(shift, ck, preferred_element_type=jnp.float32)
    o_ref[0] = xp + _gelu(conv)


def _encoder_layer_kernel(x_ref, wqkv_ref, bqkv_ref, wo_ref, bo_ref,
                          ln1g_ref, ln1b_ref, w1_ref, b1_ref,
                          w2_ref, b2_ref, ln2g_ref, ln2b_ref, o_ref,
                          *, num_heads):
    """One whole post-LN transformer encoder layer (layer_norm_first=False),
    fully VMEM-resident: fused QKV, per-head attention, output proj, LN, FFN, LN."""
    x = x_ref[0]                                                   # (T, C) one batch element
    C = x.shape[-1]
    dh = C // num_heads

    # fused QKV projection — attention scale already folded into the Q weights/bias
    qkv = jnp.dot(x, wqkv_ref[...], preferred_element_type=jnp.float32) + bqkv_ref[...]
    wo = wo_ref[...]
    attn = jnp.zeros_like(x) + bo_ref[...]
    for h in range(num_heads):                                     # heads unrolled in-kernel
        qh = qkv[:, h * dh:(h + 1) * dh]
        kh = qkv[:, C + h * dh:C + (h + 1) * dh]
        vh = qkv[:, 2 * C + h * dh:2 * C + (h + 1) * dh]
        s = jax.lax.dot_general(qh, kh, (((1,), (1,)), ((), ())),
                                preferred_element_type=jnp.float32)  # (T, T)
        s = s - jnp.max(s, axis=-1, keepdims=True)
        p = jnp.exp(s)
        p = p * pl.reciprocal(jnp.sum(p, axis=-1, keepdims=True), approx=True)
        oh = jnp.dot(p, vh, preferred_element_type=jnp.float32)     # (T, dh)
        # per-head slice of the output projection: avoids concatenating heads / transposes
        attn = attn + jnp.dot(oh, wo[h * dh:(h + 1) * dh, :],
                              preferred_element_type=jnp.float32)

    h1 = _layer_norm(x + attn, ln1g_ref[...], ln1b_ref[...])        # residual + LN (post-LN)
    ff = _gelu(jnp.dot(h1, w1_ref[...], preferred_element_type=jnp.float32) + b1_ref[...])
    ff = jnp.dot(ff, w2_ref[...], preferred_element_type=jnp.float32) + b2_ref[...]
    o_ref[0] = _layer_norm(h1 + ff, ln2g_ref[...], ln2b_ref[...])


# ------------------------------- call wrappers --------------------------------
def _parallel_batch_call(kernel, x, others, out_shape):
    """pallas_call with grid over the batch axis (parallel -> v7x cores split it)."""
    B = x.shape[0]
    return pl.pallas_call(
        kernel,
        out_shape=jax.ShapeDtypeStruct(out_shape, jnp.float32),
        grid=(B,),
        in_specs=[_batch_spec(x.shape)] + [_full_spec(a) for a in others],
        out_specs=_batch_spec(out_shape),
        compiler_params=pltpu.CompilerParams(dimension_semantics=("parallel",)),
    )(x, *others)


def conv0_gn_gelu(patches, w_mat, gn_g, gn_b):
    B, T, _ = patches.shape
    C = w_mat.shape[1]
    return _parallel_batch_call(
        functools.partial(_conv0_gn_gelu_kernel, eps=LN_EPS),
        patches, (w_mat, gn_g, gn_b), (B, T, C))


def conv_gelu(patches, w_mat):
    B, T, _ = patches.shape
    C = w_mat.shape[1]
    return _parallel_batch_call(_conv_gelu_kernel, patches, (w_mat,), (B, T, C))


def fp_posconv(x, fp, pc):
    B, T, _ = x.shape
    E = fp["w"].shape[1]
    return _parallel_batch_call(
        functools.partial(_fp_posconv_kernel,
                          kernel=POS_CONV_KERNEL, pad=POS_CONV_KERNEL // 2),
        x, (fp["ln_g"], fp["ln_b"], fp["w"], fp["b"], pc["w_taps"], pc["b"]),
        (B, T, E))


def encoder_layer(x, p, num_heads):
    B, T, C = x.shape
    others = (p["wqkv"], p["bqkv"], p["wo"], p["bo"],
              p["ln1_g"], p["ln1_b"], p["w1"], p["b1"],
              p["w2"], p["b2"], p["ln2_g"], p["ln2_b"])
    return _parallel_batch_call(
        functools.partial(_encoder_layer_kernel, num_heads=num_heads),
        x, others, (B, T, C))


# --------------------------------- forward ------------------------------------
def _im2col(x, ksz, stride):
    # TODO(synk): patch extraction stays as tiny XLA glue (one gather per conv layer);
    # it could be moved in-kernel via selection-matrix matmuls like the positional conv.
    B, T, Cin = x.shape
    Tout = (T - ksz) // stride + 1
    idx = jnp.arange(Tout)[:, None] * stride + jnp.arange(ksz)[None, :]
    return x[:, idx, :].reshape(B, Tout, ksz * Cin)


def aves_embedding_forward(sig, params):
    """== AvesEmbedding.forward: extract_features(sig)[0][-1]."""
    fe = params["fe"]
    x = sig[:, :, None]                                            # (B, L, 1), time-major
    # feature extractor: conv biases disabled (group_norm mode); GroupNorm+GELU on
    # layer 0, GELU on the rest — all fused into the conv matmul kernels.
    for i, (w_mat, (_, ksz, stride)) in enumerate(zip(fe["conv_w"], CONV_LAYERS)):
        patches = _im2col(x, ksz, stride)
        if i == 0:
            x = conv0_gn_gelu(patches, w_mat, fe["gn_g"], fe["gn_b"])
        else:
            x = conv_gelu(patches, w_mat)
    # feature projection + conv positional embedding + residual add (one fused kernel)
    x = fp_posconv(x, params["fp"], params["pos_conv"])
    # post-LN encoder layers; the final Transformer.layer_norm is NOT applied to
    # intermediate outputs, so [-1] is exactly the last layer's output.
    for lp in params["layers"]:
        x = encoder_layer(x, lp, NUM_HEADS)
    return x


# ------------------------------ parameter init -------------------------------
# TODO(synk): real AvesEmbedding loads a config JSON + state_dict from a URL;
# here parameters are initialized deterministically in-script instead.
def init_params(key):
    def nrm(k, shape, scale=0.05):
        return jax.random.normal(k, shape, jnp.float32) * scale

    params = {"fe": {"conv_w": []}, "fp": {}, "pos_conv": {}, "layers": []}

    # feature extractor convs: store weights directly in matmul layout (K*Cin, Cout)
    # matching the im2col (k, cin) row order.
    in_ch = 1
    for (out_ch, ksz, _stride) in CONV_LAYERS:
        key, sk = jax.random.split(key)
        w_pt = nrm(sk, (out_ch, in_ch, ksz), 0.1)                  # PyTorch (Cout, Cin, K)
        params["fe"]["conv_w"].append(
            jnp.transpose(w_pt, (2, 1, 0)).reshape(ksz * in_ch, out_ch))
        in_ch = out_ch
    c0 = CONV_LAYERS[0][0]
    params["fe"]["gn_g"] = jnp.ones((1, c0), jnp.float32)
    params["fe"]["gn_b"] = jnp.zeros((1, c0), jnp.float32)

    c_last = CONV_LAYERS[-1][0]
    key, k1, k2 = jax.random.split(key, 3)
    params["fp"] = {
        "ln_g": jnp.ones((1, c_last), jnp.float32),
        "ln_b": jnp.zeros((1, c_last), jnp.float32),
        "w": nrm(k1, (c_last, EMBED_DIM)),
        "b": nrm(k2, (EMBED_DIM,), 0.01).reshape(1, EMBED_DIM),
    }

    # grouped positional conv: build block-diagonal dense per-tap weights ONCE here,
    # in (Cin, Cout) orientation, so the forward path never constructs them.
    # TODO(synk): for a real AVES checkpoint, fold the weight_norm magnitude
    # (g * v / ||v||) into these taps at load time.
    key, k1, k2 = jax.random.split(key, 3)
    cg = EMBED_DIM // POS_CONV_GROUPS
    w_pt = nrm(k1, (EMBED_DIM, cg, POS_CONV_KERNEL))               # (Cout, Cin_per_group, K)
    w_taps = jnp.zeros((POS_CONV_KERNEL, EMBED_DIM, EMBED_DIM), jnp.float32)
    for k in range(POS_CONV_KERNEL):
        for g in range(POS_CONV_GROUPS):
            blk = w_pt[g * cg:(g + 1) * cg, :, k]                  # (cout_g, cin_g)
            w_taps = w_taps.at[k, g * cg:(g + 1) * cg, g * cg:(g + 1) * cg].set(blk.T)
    params["pos_conv"] = {"w_taps": w_taps,
                          "b": nrm(k2, (EMBED_DIM,), 0.01).reshape(1, EMBED_DIM)}

    # encoder layers: fused QKV weight/bias with the 1/sqrt(dh) scale folded into Q.
    scale = 1.0 / math.sqrt(EMBED_DIM // NUM_HEADS)
    for _ in range(NUM_LAYERS):
        key, *ks = jax.random.split(key, 13)
        wq = nrm(ks[0], (EMBED_DIM, EMBED_DIM)); bq = nrm(ks[1], (EMBED_DIM,), 0.01)
        wk = nrm(ks[2], (EMBED_DIM, EMBED_DIM)); bk = nrm(ks[3], (EMBED_DIM,), 0.01)
        wv = nrm(ks[4], (EMBED_DIM, EMBED_DIM)); bv = nrm(ks[5], (EMBED_DIM,), 0.01)
        lp = {
            "wqkv": jnp.concatenate([wq * scale, wk, wv], axis=1),             # (C, 3C)
            "bqkv": jnp.concatenate([bq * scale, bk, bv]).reshape(1, 3 * EMBED_DIM),
            "wo": nrm(ks[6], (EMBED_DIM, EMBED_DIM)),
            "bo": nrm(ks[7], (EMBED_DIM,), 0.01).reshape(1, EMBED_DIM),
            "ln1_g": jnp.ones((1, EMBED_DIM), jnp.float32),
            "ln1_b": jnp.zeros((1, EMBED_DIM), jnp.float32),
            "w1": nrm(ks[8], (EMBED_DIM, FFN_DIM)),
            "b1": nrm(ks[9], (FFN_DIM,), 0.01).reshape(1, FFN_DIM),
            "w2": nrm(ks[10], (FFN_DIM, EMBED_DIM)),
            "b2": nrm(ks[11], (EMBED_DIM,), 0.01).reshape(1, EMBED_DIM),
            "ln2_g": jnp.ones((1, EMBED_DIM), jnp.float32),
            "ln2_b": jnp.zeros((1, EMBED_DIM), jnp.float32),
        }
        params["layers"].append(lp)
    return params


# ----------------------------------- main -------------------------------------
if __name__ == "__main__":
    key = jax.random.PRNGKey(0)
    key, pkey, skey = jax.random.split(key, 3)
    params = init_params(pkey)

    # raw waveform: batch=2, 320 samples -> frames: 63 -> 30 -> 14
    sig = jax.random.normal(skey, (2, 320), jnp.float32)

    fwd = jax.jit(aves_embedding_forward)
    out = jax.block_until_ready(fwd(sig, params))

    assert out.shape == (2, 14, EMBED_DIM), out.shape
    assert out.dtype == jnp.float32
    assert bool(jnp.all(jnp.isfinite(out)))
    print("KERNEL_OK")
</pallas_src>

<mosaic_0001>
module attributes {stable_mosaic.version = 11 : i64} {
  func.func @_conv0_gn_gelu_kernel(%arg0: i32, %arg1: memref<1x63x10xf32, #tpu.memory_space<vmem>>, %arg2: memref<10x16xf32, #tpu.memory_space<vmem>>, %arg3: memref<1x16xf32, #tpu.memory_space<vmem>>, %arg4: memref<1x16xf32, #tpu.memory_space<vmem>>, %arg5: memref<1x63x16xf32, #tpu.memory_space<vmem>>) attributes {dimension_semantics = [#tpu.dimension_semantics<parallel>], iteration_bounds = array<i64: 2>, scalar_prefetch = 0 : i64, scratch_operands = 0 : i64, tpu.core_type = #tpu.core_type<tc>, window_params = [{transform_indices = @transform_0, window_bounds = array<i64: 1, 63, 10>}, {pipeline_mode = #tpu.pipeline_mode<synchronous>, transform_indices = @transform_1, window_bounds = array<i64: 10, 16>}, {pipeline_mode = #tpu.pipeline_mode<synchronous>, transform_indices = @transform_2, window_bounds = array<i64: 1, 16>}, {pipeline_mode = #tpu.pipeline_mode<synchronous>, transform_indices = @transform_3, window_bounds = array<i64: 1, 16>}, {transform_indices = @transform_4, window_bounds = array<i64: 1, 63, 16>}]} {
    %c0 = arith.constant 0 : index
    %c0_0 = arith.constant 0 : index
    %c0_1 = arith.constant 0 : index
    %0 = vector.load %arg1[%c0, %c0_0, %c0_1] : memref<1x63x10xf32, #tpu.memory_space<vmem>>, vector<1x63x10xf32>
    %1 = vector.shape_cast %0 : vector<1x63x10xf32> to vector<63x10xf32>
    %c0_2 = arith.constant 0 : index
    %c0_3 = arith.constant 0 : index
    %2 = vector.load %arg2[%c0_2, %c0_3] : memref<10x16xf32, #tpu.memory_space<vmem>>, vector<10x16xf32>
    %cst = arith.constant dense<0.000000e+00> : vector<63x16xf32>
    %3 = tpu.matmul %1, %2, %cst {dimension_numbers = #tpu.dot_dimension_numbers<[1], [0], [0], [1], [0, 0, 1, 1], [], []>} : vector<63x10xf32>, vector<10x16xf32>, vector<63x16xf32> -> vector<63x16xf32>
    %cst_4 = arith.constant dense<0.000000e+00> : vector<16xf32>
    %4 = vector.multi_reduction <add>, %3, %cst_4 [0] : vector<63x16xf32> to vector<16xf32>
    %5 = vector.shape_cast %4 : vector<16xf32> to vector<1x16xf32>
    %cst_5 = arith.constant 6.300000e+01 : f32
    %6 = vector.broadcast %cst_5 : f32 to vector<1x16xf32>
    %7 = arith.divf %5, %6 : vector<1x16xf32>
    %8 = vector.broadcast %7 : vector<1x16xf32> to vector<63x16xf32>
    %9 = arith.subf %3, %8 : vector<63x16xf32>
    %10 = arith.mulf %9, %9 : vector<63x16xf32>
    %cst_6 = arith.constant dense<0.000000e+00> : vector<16xf32>
    %11 = vector.multi_reduction <add>, %10, %cst_6 [0] : vector<63x16xf32> to vector<16xf32>
    %12 = vector.shape_cast %11 : vector<16xf32> to vector<1x16xf32>
    %cst_7 = arith.constant 6.300000e+01 : f32
    %13 = vector.broadcast %cst_7 : f32 to vector<1x16xf32>
    %14 = arith.divf %12, %13 : vector<1x16xf32>
    %15 = vector.broadcast %7 : vector<1x16xf32> to vector<63x16xf32>
    %16 = arith.subf %3, %15 : vector<63x16xf32>
    %cst_8 = arith.constant 9.99999974E-6 : f32
    %17 = vector.broadcast %cst_8 : f32 to vector<1x16xf32>
    %18 = arith.addf %14, %17 : vector<1x16xf32>
    %19 = math.rsqrt %18 : vector<1x16xf32>
    %20 = vector.broadcast %19 : vector<1x16xf32> to vector<63x16xf32>
    %21 = arith.mulf %16, %20 : vector<63x16xf32>
    %c0_9 = arith.constant 0 : index
    %c0_10 = arith.constant 0 : index
    %22 = vector.load %arg3[%c0_9, %c0_10] : memref<1x16xf32, #tpu.memory_space<vmem>>, vector<1x16xf32>
    %23 = vector.broadcast %22 : vector<1x16xf32> to vector<63x16xf32>
    %24 = arith.mulf %21, %23 : vector<63x16xf32>
    %c0_11 = arith.constant 0 : index
    %c0_12 = arith.constant 0 : index
    %25 = vector.load %arg4[%c0_11, %c0_12] : memref<1x16xf32, #tpu.memory_space<vmem>>, vector<1x16xf32>
    %26 = vector.broadcast %25 : vector<1x16xf32> to vector<63x16xf32>
    %27 = arith.addf %24, %26 : vector<63x16xf32>
    %cst_13 = arith.constant 5.000000e-01 : f32
    %28 = vector.broadcast %cst_13 : f32 to vector<63x16xf32>
    %29 = arith.mulf %28, %27 : vector<63x16xf32>
    %cst_14 = arith.constant 0.707106769 : f32
    %30 = vector.broadcast %cst_14 : f32 to vector<63x16xf32>
    %31 = arith.mulf %27, %30 : vector<63x16xf32>
    %32 = math.erf %31 : vector<63x16xf32>
    %cst_15 = arith.constant 1.000000e+00 : f32
    %33 = vector.broadcast %cst_15 : f32 to vector<63x16xf32>
    %34 = arith.addf %33, %32 : vector<63x16xf32>
    %35 = arith.mulf %29, %34 : vector<63x16xf32>
    %c0_16 = arith.constant 0 : index
    %c0_17 = arith.constant 0 : index
    %c0_18 = arith.constant 0 : index
    %36 = vector.load %arg5[%c0_16, %c0_17, %c0_18] : memref<1x63x16xf32, #tpu.memory_space<vmem>>, vector<1x63x16xf32>
    %37 = vector.shape_cast %36 : vector<1x63x16xf32> to vector<63x16xf32>
    %38 = vector.shape_cast %35 : vector<63x16xf32> to vector<1x63x16xf32>
    tpu.vector_store %arg5[%c0_16, %c0_17, %c0_18], %38 {strides = array<i32>} : memref<1x63x16xf32, #tpu.memory_space<vmem>>, vector<1x63x16xf32>,
    return
  }
  func.func @transform_0(%arg0: i32) -> (i32, i32, i32) {
    %c0_i32 = arith.constant 0 : i32
    %c0_i32_0 = arith.constant 0 : i32
    %c0_i32_1 = arith.constant 0 : i32
    return %arg0, %c0_i32, %c0_i32_0 : i32, i32, i32
  }
  func.func @transform_1(%arg0: i32) -> (i32, i32) {
    %c0_i32 = arith.constant 0 : i32
    %c0_i32_0 = arith.constant 0 : i32
    %c0_i32_1 = arith.constant 0 : i32
    return %c0_i32, %c0_i32_0 : i32, i32
  }
  func.func @transform_2(%arg0: i32) -> (i32, i32) {
    %c0_i32 = arith.constant 0 : i32
    %c0_i32_0 = arith.constant 0 : i32
    %c0_i32_1 = arith.constant 0 : i32
    return %c0_i32, %c0_i32_0 : i32, i32
  }
  func.func @transform_3(%arg0: i32) -> (i32, i32) {
    %c0_i32 = arith.constant 0 : i32
    %c0_i32_0 = arith.constant 0 : i32
    %c0_i32_1 = arith.constant 0 : i32
    return %c0_i32, %c0_i32_0 : i32, i32
  }
  func.func @transform_4(%arg0: i32) -> (i32, i32, i32) {
    %c0_i32 = arith.constant 0 : i32
    %c0_i32_0 = arith.constant 0 : i32
    %c0_i32_1 = arith.constant 0 : i32
    return %arg0, %c0_i32, %c0_i32_0 : i32, i32, i32
  }
}

module attributes {stable_mosaic.version = 11 : i64} {
  func.func @_conv_gelu_kernel(%arg0: i32, %arg1: memref<1x30x64xf32, #tpu.memory_space<vmem>>, %arg2: memref<64x16xf32, #tpu.memory_space<vmem>>, %arg3: memref<1x30x16xf32, #tpu.memory_space<vmem>>) attributes {dimension_semantics = [#tpu.dimension_semantics<parallel>], iteration_bounds = array<i64: 2>, scalar_prefetch = 0 : i64, scratch_operands = 0 : i64, tpu.core_type = #tpu.core_type<tc>, window_params = [{transform_indices = @transform_0, window_bounds = array<i64: 1, 30, 64>}, {pipeline_mode = #tpu.pipeline_mode<synchronous>, transform_indices = @transform_1, window_bounds = array<i64: 64, 16>}, {transform_indices = @transform_2, window_bounds = array<i64: 1, 30, 16>}]} {
    %c0 = arith.constant 0 : index
    %c0_0 = arith.constant 0 : index
    %c0_1 = arith.constant 0 : index
    %0 = vector.load %arg1[%c0, %c0_0, %c0_1] : memref<1x30x64xf32, #tpu.memory_space<vmem>>, vector<1x30x64xf32>
    %1 = vector.shape_cast %0 : vector<1x30x64xf32> to vector<30x64xf32>
    %c0_2 = arith.constant 0 : index
    %c0_3 = arith.constant 0 : index
    %2 = vector.load %arg2[%c0_2, %c0_3] : memref<64x16xf32, #tpu.memory_space<vmem>>, vector<64x16xf32>
    %cst = arith.constant dense<0.000000e+00> : vector<30x16xf32>
    %3 = tpu.matmul %1, %2, %cst {dimension_numbers = #tpu.dot_dimension_numbers<[1], [0], [0], [1], [0, 0, 1, 1], [], []>} : vector<30x64xf32>, vector<64x16xf32>, vector<30x16xf32> -> vector<30x16xf32>
    %cst_4 = arith.constant 5.000000e-01 : f32
    %4 = vector.broadcast %cst_4 : f32 to vector<30x16xf32>
    %5 = arith.mulf %4, %3 : vector<30x16xf32>
    %cst_5 = arith.constant 0.707106769 : f32
    %6 = vector.broadcast %cst_5 : f32 to vector<30x16xf32>
    %7 = arith.mulf %3, %6 : vector<30x16xf32>
    %8 = math.erf %7 : vector<30x16xf32>
    %cst_6 = arith.constant 1.000000e+00 : f32
    %9 = vector.broadcast %cst_6 : f32 to vector<30x16xf32>
    %10 = arith.addf %9, %8 : vector<30x16xf32>
    %11 = arith.mulf %5, %10 : vector<30x16xf32>
    %c0_7 = arith.constant 0 : index
    %c0_8 = arith.constant 0 : index
    %c0_9 = arith.constant 0 : index
    %12 = vector.load %arg3[%c0_7, %c0_8, %c0_9] : memref<1x30x16xf32, #tpu.memory_space<vmem>>, vector<1x30x16xf32>
    %13 = vector.shape_cast %12 : vector<1x30x16xf32> to vector<30x16xf32>
    %14 = vector.shape_cast %11 : vector<30x16xf32> to vector<1x30x16xf32>
    tpu.vector_store %arg3[%c0_7, %c0_8, %c0_9], %14 {strides = array<i32>} : memref<1x30x16xf32, #tpu.memory_space<vmem>>, vector<1x30x16xf32>,
    return
  }
  func.func @transform_0(%arg0: i32) -> (i32, i32, i32) {
    %c0_i32 = arith.constant 0 : i32
    %c0_i32_0 = arith.constant 0 : i32
    %c0_i32_1 = arith.constant 0 : i32
    return %arg0, %c0_i32, %c0_i32_0 : i32, i32, i32
  }
  func.func @transform_1(%arg0: i32) -> (i32, i32) {
    %c0_i32 = arith.constant 0 : i32
    %c0_i32_0 = arith.constant 0 : i32
    %c0_i32_1 = arith.constant 0 : i32
    return %c0_i32, %c0_i32_0 : i32, i32
  }
  func.func @transform_2(%arg0: i32) -> (i32, i32, i32) {
    %c0_i32 = arith.constant 0 : i32
    %c0_i32_0 = arith.constant 0 : i32
    %c0_i32_1 = arith.constant 0 : i32
    return %arg0, %c0_i32, %c0_i32_0 : i32, i32, i32
  }
}

module attributes {stable_mosaic.version = 11 : i64} {
  func.func @_conv_gelu_kernel(%arg0: i32, %arg1: memref<1x14x64xf32, #tpu.memory_space<vmem>>, %arg2: memref<64x16xf32, #tpu.memory_space<vmem>>, %arg3: memref<1x14x16xf32, #tpu.memory_space<vmem>>) attributes {dimension_semantics = [#tpu.dimension_semantics<parallel>], iteration_bounds = array<i64: 2>, scalar_prefetch = 0 : i64, scratch_operands = 0 : i64, tpu.core_type = #tpu.core_type<tc>, window_params = [{transform_indices = @transform_0, window_bounds = array<i64: 1, 14, 64>}, {pipeline_mode = #tpu.pipeline_mode<synchronous>, transform_indices = @transform_1, window_bounds = array<i64: 64, 16>}, {transform_indices = @transform_2, window_bounds = array<i64: 1, 14, 16>}]} {
    %c0 = arith.constant 0 : index
    %c0_0 = arith.constant 0 : index
    %c0_1 = arith.constant 0 : index
    %0 = vector.load %arg1[%c0, %c0_0, %c0_1] : memref<1x14x64xf32, #tpu.memory_space<vmem>>, vector<1x14x64xf32>
    %1 = vector.shape_cast %0 : vector<1x14x64xf32> to vector<14x64xf32>
    %c0_2 = arith.constant 0 : index
    %c0_3 = arith.constant 0 : index
    %2 = vector.load %arg2[%c0_2, %c0_3] : memref<64x16xf32, #tpu.memory_space<vmem>>, vector<64x16xf32>
    %cst = arith.constant dense<0.000000e+00> : vector<14x16xf32>
    %3 = tpu.matmul %1, %2, %cst {dimension_numbers = #tpu.dot_dimension_numbers<[1], [0], [0], [1], [0, 0, 1, 1], [], []>} : vector<14x64xf32>, vector<64x16xf32>, vector<14x16xf32> -> vector<14x16xf32>
    %cst_4 = arith.constant 5.000000e-01 : f32
    %4 = vector.broadcast %cst_4 : f32 to vector<14x16xf32>
    %5 = arith.mulf %4, %3 : vector<14x16xf32>
    %cst_5 = arith.constant 0.707106769 : f32
    %6 = vector.broadcast %cst_5 : f32 to vector<14x16xf32>
    %7 = arith.mulf %3, %6 : vector<14x16xf32>
    %8 = math.erf %7 : vector<14x16xf32>
    %cst_6 = arith.constant 1.000000e+00 : f32
    %9 = vector.broadcast %cst_6 : f32 to vector<14x16xf32>
    %10 = arith.addf %9, %8 : vector<14x16xf32>
    %11 = arith.mulf %5, %10 : vector<14x16xf32>
    %c0_7 = arith.constant 0 : index
    %c0_8 = arith.constant 0 : index
    %c0_9 = arith.constant 0 : index
    %12 = vector.load %arg3[%c0_7, %c0_8, %c0_9] : memref<1x14x16xf32, #tpu.memory_space<vmem>>, vector<1x14x16xf32>
    %13 = vector.shape_cast %12 : vector<1x14x16xf32> to vector<14x16xf32>
    %14 = vector.shape_cast %11 : vector<14x16xf32> to vector<1x14x16xf32>
    tpu.vector_store %arg3[%c0_7, %c0_8, %c0_9], %14 {strides = array<i32>} : memref<1x14x16xf32, #tpu.memory_space<vmem>>, vector<1x14x16xf32>,
    return
  }
  func.func @transform_0(%arg0: i32) -> (i32, i32, i32) {
    %c0_i32 = arith.constant 0 : i32
    %c0_i32_0 = arith.constant 0 : i32
    %c0_i32_1 = arith.constant 0 : i32
    return %arg0, %c0_i32, %c0_i32_0 : i32, i32, i32
  }
  func.func @transform_1(%arg0: i32) -> (i32, i32) {
    %c0_i32 = arith.constant 0 : i32
    %c0_i32_0 = arith.constant 0 : i32
    %c0_i32_1 = arith.constant 0 : i32
    return %c0_i32, %c0_i32_0 : i32, i32
  }
  func.func @transform_2(%arg0: i32) -> (i32, i32, i32) {
    %c0_i32 = arith.constant 0 : i32
    %c0_i32_0 = arith.constant 0 : i32
    %c0_i32_1 = arith.constant 0 : i32
    return %arg0, %c0_i32, %c0_i32_0 : i32, i32, i32
  }
}

module attributes {stable_mosaic.version = 11 : i64} {
  func.func @_fp_posconv_kernel(%arg0: i32, %arg1: memref<1x14x16xf32, #tpu.memory_space<vmem>>, %arg2: memref<1x16xf32, #tpu.memory_space<vmem>>, %arg3: memref<1x16xf32, #tpu.memory_space<vmem>>, %arg4: memref<16x32xf32, #tpu.memory_space<vmem>>, %arg5: memref<1x32xf32, #tpu.memory_space<vmem>>, %arg6: memref<4x32x32xf32, #tpu.memory_space<vmem>>, %arg7: memref<1x32xf32, #tpu.memory_space<vmem>>, %arg8: memref<1x14x32xf32, #tpu.memory_space<vmem>>) attributes {dimension_semantics = [#tpu.dimension_semantics<parallel>], iteration_bounds = array<i64: 2>, scalar_prefetch = 0 : i64, scratch_operands = 0 : i64, tpu.core_type = #tpu.core_type<tc>, window_params = [{transform_indices = @transform_0, window_bounds = array<i64: 1, 14, 16>}, {pipeline_mode = #tpu.pipeline_mode<synchronous>, transform_indices = @transform_1, window_bounds = array<i64: 1, 16>}, {pipeline_mode = #tpu.pipeline_mode<synchronous>, transform_indices = @transform_2, window_bounds = array<i64: 1, 16>}, {pipeline_mode = #tpu.pipeline_mode<synchronous>, transform_indices = @transform_3, window_bounds = array<i64: 16, 32>}, {pipeline_mode = #tpu.pipeline_mode<synchronous>, transform_indices = @transform_4, window_bounds = array<i64: 1, 32>}, {pipeline_mode = #tpu.pipeline_mode<synchronous>, transform_indices = @transform_5, window_bounds = array<i64: 4, 32, 32>}, {pipeline_mode = #tpu.pipeline_mode<synchronous>, transform_indices = @transform_6, window_bounds = array<i64: 1, 32>}, {transform_indices = @transform_7, window_bounds = array<i64: 1, 14, 32>}]} {
    %c0 = arith.constant 0 : index
    %c0_0 = arith.constant 0 : index
    %c0_1 = arith.constant 0 : index
    %0 = vector.load %arg1[%c0, %c0_0, %c0_1] : memref<1x14x16xf32, #tpu.memory_space<vmem>>, vector<1x14x16xf32>
    %1 = vector.shape_cast %0 : vector<1x14x16xf32> to vector<14x16xf32>
    %c0_2 = arith.constant 0 : index
    %c0_3 = arith.constant 0 : index
    %2 = vector.load %arg2[%c0_2, %c0_3] : memref<1x16xf32, #tpu.memory_space<vmem>>, vector<1x16xf32>
    %c0_4 = arith.constant 0 : index
    %c0_5 = arith.constant 0 : index
    %3 = vector.load %arg3[%c0_4, %c0_5] : memref<1x16xf32, #tpu.memory_space<vmem>>, vector<1x16xf32>
    %cst = arith.constant dense<0.000000e+00> : vector<14xf32>
    %4 = vector.multi_reduction <add>, %1, %cst [1] : vector<14x16xf32> to vector<14xf32>
    %5 = vector.shape_cast %4 : vector<14xf32> to vector<14x1xf32>
    %cst_6 = arith.constant 1.600000e+01 : f32
    %6 = vector.broadcast %cst_6 : f32 to vector<14x1xf32>
    %7 = arith.divf %5, %6 : vector<14x1xf32>
    %8 = vector.broadcast %7 : vector<14x1xf32> to vector<14x16xf32>
    %9 = arith.subf %1, %8 : vector<14x16xf32>
    %10 = arith.mulf %9, %9 : vector<14x16xf32>
    %cst_7 = arith.constant dense<0.000000e+00> : vector<14xf32>
    %11 = vector.multi_reduction <add>, %10, %cst_7 [1] : vector<14x16xf32> to vector<14xf32>
    %12 = vector.shape_cast %11 : vector<14xf32> to vector<14x1xf32>
    %cst_8 = arith.constant 1.600000e+01 : f32
    %13 = vector.broadcast %cst_8 : f32 to vector<14x1xf32>
    %14 = arith.divf %12, %13 : vector<14x1xf32>
    %15 = vector.broadcast %7 : vector<14x1xf32> to vector<14x16xf32>
    %16 = arith.subf %1, %15 : vector<14x16xf32>
    %cst_9 = arith.constant 9.99999974E-6 : f32
    %17 = vector.broadcast %cst_9 : f32 to vector<14x1xf32>
    %18 = arith.addf %14, %17 : vector<14x1xf32>
    %19 = math.rsqrt %18 : vector<14x1xf32>
    %20 = vector.broadcast %19 : vector<14x1xf32> to vector<14x16xf32>
    %21 = arith.mulf %16, %20 : vector<14x16xf32>
    %22 = vector.broadcast %2 : vector<1x16xf32> to vector<14x16xf32>
    %23 = arith.mulf %21, %22 : vector<14x16xf32>
    %24 = vector.broadcast %3 : vector<1x16xf32> to vector<14x16xf32>
    %25 = arith.addf %23, %24 : vector<14x16xf32>
    %c0_10 = arith.constant 0 : index
    %c0_11 = arith.constant 0 : index
    %26 = vector.load %arg4[%c0_10, %c0_11] : memref<16x32xf32, #tpu.memory_space<vmem>>, vector<16x32xf32>
    %cst_12 = arith.constant dense<0.000000e+00> : vector<14x32xf32>
    %27 = tpu.matmul %25, %26, %cst_12 {dimension_numbers = #tpu.dot_dimension_numbers<[1], [0], [0], [1], [0, 0, 1, 1], [], []>} : vector<14x16xf32>, vector<16x32xf32>, vector<14x32xf32> -> vector<14x32xf32>
    %c0_13 = arith.constant 0 : index
    %c0_14 = arith.constant 0 : index
    %28 = vector.load %arg5[%c0_13, %c0_14] : memref<1x32xf32, #tpu.memory_space<vmem>>, vector<1x32xf32>
    %29 = vector.broadcast %28 : vector<1x32xf32> to vector<14x32xf32>
    %30 = arith.addf %27, %29 : vector<14x32xf32>
    %31 = tpu.iota {dimensions = array<i32: 0>} : vector<14x14xi32>
    %32 = tpu.iota {dimensions = array<i32: 1>} : vector<14x14xi32>
    %cst_15 = arith.constant 0.000000e+00 : f32
    %33 = vector.broadcast %cst_15 : f32 to vector<14x32xf32>
    %c0_16 = arith.constant 0 : index
    %c0_17 = arith.constant 0 : index
    %34 = vector.load %arg7[%c0_16, %c0_17] : memref<1x32xf32, #tpu.memory_space<vmem>>, vector<1x32xf32>
    %35 = vector.broadcast %34 : vector<1x32xf32> to vector<14x32xf32>
    %36 = arith.addf %33, %35 : vector<14x32xf32>
    %c-2_i32 = arith.constant -2 : i32
    %37 = vector.broadcast %c-2_i32 : i32 to vector<14x14xi32>
    %38 = arith.addi %31, %37 : vector<14x14xi32>
    %39 = arith.cmpi eq, %32, %38 : vector<14x14xi32>
    %cst_18 = arith.constant 1.000000e+00 : f32
    %cst_19 = arith.constant 0.000000e+00 : f32
    %40 = vector.broadcast %cst_18 : f32 to vector<14x14xf32>
    %41 = vector.broadcast %cst_19 : f32 to vector<14x14xf32>
    %42 = arith.select %39, %40, %41 : vector<14x14xi1>, vector<14x14xf32>
    %c0_20 = arith.constant 0 : index
    %c0_21 = arith.constant 0 : index
    %c0_22 = arith.constant 0 : index
    %43 = vector.load %arg6[%c0_20, %c0_21, %c0_22] : memref<4x32x32xf32, #tpu.memory_space<vmem>>, vector<1x32x32xf32>
    %44 = vector.shape_cast %43 : vector<1x32x32xf32> to vector<32x32xf32>
    %cst_23 = arith.constant dense<0.000000e+00> : vector<14x32xf32>
    %45 = tpu.matmul %30, %44, %cst_23 {dimension_numbers = #tpu.dot_dimension_numbers<[1], [0], [0], [1], [0, 0, 1, 1], [], []>} : vector<14x32xf32>, vector<32x32xf32>, vector<14x32xf32> -> vector<14x32xf32>
    %cst_24 = arith.constant dense<0.000000e+00> : vector<14x32xf32>
    %46 = tpu.matmul %42, %45, %cst_24 {dimension_numbers = #tpu.dot_dimension_numbers<[1], [0], [0], [1], [0, 0, 1, 1], [], []>} : vector<14x14xf32>, vector<14x32xf32>, vector<14x32xf32> -> vector<14x32xf32>
    %47 = arith.addf %36, %46 : vector<14x32xf32>
    %c-1_i32 = arith.constant -1 : i32
    %48 = vector.broadcast %c-1_i32 : i32 to vector<14x14xi32>
    %49 = arith.addi %31, %48 : vector<14x14xi32>
    %50 = arith.cmpi eq, %32, %49 : vector<14x14xi32>
    %cst_25 = arith.constant 1.000000e+00 : f32
    %cst_26 = arith.constant 0.000000e+00 : f32
    %51 = vector.broadcast %cst_25 : f32 to vector<14x14xf32>
    %52 = vector.broadcast %cst_26 : f32 to vector<14x14xf32>
    %53 = arith.select %50, %51, %52 : vector<14x14xi1>, vector<14x14xf32>
    %c1 = arith.constant 1 : index
    %c0_27 = arith.constant 0 : index
    %c0_28 = arith.constant 0 : index
    %54 = vector.load %arg6[%c1, %c0_27, %c0_28] : memref<4x32x32xf32, #tpu.memory_space<vmem>>, vector<1x32x32xf32>
    %55 = vector.shape_cast %54 : vector<1x32x32xf32> to vector<32x32xf32>
    %cst_29 = arith.constant dense<0.000000e+00> : vector<14x32xf32>
    %56 = tpu.matmul %30, %55, %cst_29 {dimension_numbers = #tpu.dot_dimension_numbers<[1], [0], [0], [1], [0, 0, 1, 1], [], []>} : vector<14x32xf32>, vector<32x32xf32>, vector<14x32xf32> -> vector<14x32xf32>
    %cst_30 = arith.constant dense<0.000000e+00> : vector<14x32xf32>
    %57 = tpu.matmul %53, %56, %cst_30 {dimension_numbers = #tpu.dot_dimension_numbers<[1], [0], [0], [1], [0, 0, 1, 1], [], []>} : vector<14x14xf32>, vector<14x32xf32>, vector<14x32xf32> -> vector<14x32xf32>
    %58 = arith.addf %47, %57 : vector<14x32xf32>
    %c0_i32 = arith.constant 0 : i32
    %59 = vector.broadcast %c0_i32 : i32 to vector<14x14xi32>
    %60 = arith.addi %31, %59 : vector<14x14xi32>
    %61 = arith.cmpi eq, %32, %60 : vector<14x14xi32>
    %cst_31 = arith.constant 1.000000e+00 : f32
    %cst_32 = arith.constant 0.000000e+00 : f32
    %62 = vector.broadcast %cst_31 : f32 to vector<14x14xf32>
    %63 = vector.broadcast %cst_32 : f32 to vector<14x14xf32>
    %64 = arith.select %61, %62, %63 : vector<14x14xi1>, vector<14x14xf32>
    %c2 = arith.constant 2 : index
    %c0_33 = arith.constant 0 : index
    %c0_34 = arith.constant 0 : index
    %65 = vector.load %arg6[%c2, %c0_33, %c0_34] : memref<4x32x32xf32, #tpu.memory_space<vmem>>, vector<1x32x32xf32>
    %66 = vector.shape_cast %65 : vector<1x32x32xf32> to vector<32x32xf32>
    %cst_35 = arith.constant dense<0.000000e+00> : vector<14x32xf32>
    %67 = tpu.matmul %30, %66, %cst_35 {dimension_numbers = #tpu.dot_dimension_numbers<[1], [0], [0], [1], [0, 0, 1, 1], [], []>} : vector<14x32xf32>, vector<32x32xf32>, vector<14x32xf32> -> vector<14x32xf32>
    %cst_36 = arith.constant dense<0.000000e+00> : vector<14x32xf32>
    %68 = tpu.matmul %64, %67, %cst_36 {dimension_numbers = #tpu.dot_dimension_numbers<[1], [0], [0], [1], [0, 0, 1, 1], [], []>} : vector<14x14xf32>, vector<14x32xf32>, vector<14x32xf32> -> vector<14x32xf32>
    %69 = arith.addf %58, %68 : vector<14x32xf32>
    %c1_i32 = arith.constant 1 : i32
    %70 = vector.broadcast %c1_i32 : i32 to vector<14x14xi32>
    %71 = arith.addi %31, %70 : vector<14x14xi32>
    %72 = arith.cmpi eq, %32, %71 : vector<14x14xi32>
    %cst_37 = arith.constant 1.000000e+00 : f32
    %cst_38 = arith.constant 0.000000e+00 : f32
    %73 = vector.broadcast %cst_37 : f32 to vector<14x14xf32>
    %74 = vector.broadcast %cst_38 : f32 to vector<14x14xf32>
    %75 = arith.select %72, %73, %74 : vector<14x14xi1>, vector<14x14xf32>
    %c3 = arith.constant 3 : index
    %c0_39 = arith.constant 0 : index
    %c0_40 = arith.constant 0 : index
    %76 = vector.load %arg6[%c3, %c0_39, %c0_40] : memref<4x32x32xf32, #tpu.memory_space<vmem>>, vector<1x32x32xf32>
    %77 = vector.shape_cast %76 : vector<1x32x32xf32> to vector<32x32xf32>
    %cst_41 = arith.constant dense<0.000000e+00> : vector<14x32xf32>
    %78 = tpu.matmul %30, %77, %cst_41 {dimension_numbers = #tpu.dot_dimension_numbers<[1], [0], [0], [1], [0, 0, 1, 1], [], []>} : vector<14x32xf32>, vector<32x32xf32>, vector<14x32xf32> -> vector<14x32xf32>
    %cst_42 = arith.constant dense<0.000000e+00> : vector<14x32xf32>
    %79 = tpu.matmul %75, %78, %cst_42 {dimension_numbers = #tpu.dot_dimension_numbers<[1], [0], [0], [1], [0, 0, 1, 1], [], []>} : vector<14x14xf32>, vector<14x32xf32>, vector<14x32xf32> -> vector<14x32xf32>
    %80 = arith.addf %69, %79 : vector<14x32xf32>
    %cst_43 = arith.constant 5.000000e-01 : f32
    %81 = vector.broadcast %cst_43 : f32 to vector<14x32xf32>
    %82 = arith.mulf %81, %80 : vector<14x32xf32>
    %cst_44 = arith.constant 0.707106769 : f32
    %83 = vector.broadcast %cst_44 : f32 to vector<14x32xf32>
    %84 = arith.mulf %80, %83 : vector<14x32xf32>
    %85 = math.erf %84 : vector<14x32xf32>
    %cst_45 = arith.constant 1.000000e+00 : f32
    %86 = vector.broadcast %cst_45 : f32 to vector<14x32xf32>
    %87 = arith.addf %86, %85 : vector<14x32xf32>
    %88 = arith.mulf %82, %87 : vector<14x32xf32>
    %89 = arith.addf %30, %88 : vector<14x32xf32>
    %c0_46 = arith.constant 0 : index
    %c0_47 = arith.constant 0 : index
    %c0_48 = arith.constant 0 : index
    %90 = vector.load %arg8[%c0_46, %c0_47, %c0_48] : memref<1x14x32xf32, #tpu.memory_space<vmem>>, vector<1x14x32xf32>
    %91 = vector.shape_cast %90 : vector<1x14x32xf32> to vector<14x32xf32>
    %92 = vector.shape_cast %89 : vector<14x32xf32> to vector<1x14x32xf32>
    tpu.vector_store %arg8[%c0_46, %c0_47, %c0_48], %92 {strides = array<i32>} : memref<1x14x32xf32, #tpu.memory_space<vmem>>, vector<1x14x32xf32>,
    return
  }
  func.func @transform_0(%arg0: i32) -> (i32, i32, i32) {
    %c0_i32 = arith.constant 0 : i32
    %c0_i32_0 = arith.constant 0 : i32
    %c0_i32_1 = arith.constant 0 : i32
    return %arg0, %c0_i32, %c0_i32_0 : i32, i32, i32
  }
  func.func @transform_1(%arg0: i32) -> (i32, i32) {
    %c0_i32 = arith.constant 0 : i32
    %c0_i32_0 = arith.constant 0 : i32
    %c0_i32_1 = arith.constant 0 : i32
    return %c0_i32, %c0_i32_0 : i32, i32
  }
  func.func @transform_2(%arg0: i32) -> (i32, i32) {
    %c0_i32 = arith.constant 0 : i32
    %c0_i32_0 = arith.constant 0 : i32
    %c0_i32_1 = arith.constant 0 : i32
    return %c0_i32, %c0_i32_0 : i32, i32
  }
  func.func @transform_3(%arg0: i32) -> (i32, i32) {
    %c0_i32 = arith.constant 0 : i32
    %c0_i32_0 = arith.constant 0 : i32
    %c0_i32_1 = arith.constant 0 : i32
    return %c0_i32, %c0_i32_0 : i32, i32
  }
  func.func @transform_4(%arg0: i32) -> (i32, i32) {
    %c0_i32 = arith.constant 0 : i32
    %c0_i32_0 = arith.constant 0 : i32
    %c0_i32_1 = arith.constant 0 : i32
    return %c0_i32, %c0_i32_0 : i32, i32
  }
  func.func @transform_5(%arg0: i32) -> (i32, i32, i32) {
    %c0_i32 = arith.constant 0 : i32
    %c0_i32_0 = arith.constant 0 : i32
    %c0_i32_1 = arith.constant 0 : i32
    %c0_i32_2 = arith.constant 0 : i32
    return %c0_i32, %c0_i32_0, %c0_i32_1 : i32, i32, i32
  }
  func.func @transform_6(%arg0: i32) -> (i32, i32) {
    %c0_i32 = arith.constant 0 : i32
    %c0_i32_0 = arith.constant 0 : i32
    %c0_i32_1 = arith.constant 0 : i32
    return %c0_i32, %c0_i32_0 : i32, i32
  }
  func.func @transform_7(%arg0: i32) -> (i32, i32, i32) {
    %c0_i32 = arith.constant 0 : i32
    %c0_i32_0 = arith.constant 0 : i32
    %c0_i32_1 = arith.constant 0 : i32
    return %arg0, %c0_i32, %c0_i32_0 : i32, i32, i32
  }
}

module attributes {stable_mosaic.version = 11 : i64} {
  func.func @_encoder_layer_kernel(%arg0: i32, %arg1: memref<1x14x32xf32, #tpu.memory_space<vmem>>, %arg2: memref<32x96xf32, #tpu.memory_space<vmem>>, %arg3: memref<1x96xf32, #tpu.memory_space<vmem>>, %arg4: memref<32x32xf32, #tpu.memory_space<vmem>>, %arg5: memref<1x32xf32, #tpu.memory_space<vmem>>, %arg6: memref<1x32xf32, #tpu.memory_space<vmem>>, %arg7: memref<1x32xf32, #tpu.memory_space<vmem>>, %arg8: memref<32x64xf32, #tpu.memory_space<vmem>>, %arg9: memref<1x64xf32, #tpu.memory_space<vmem>>, %arg10: memref<64x32xf32, #tpu.memory_space<vmem>>, %arg11: memref<1x32xf32, #tpu.memory_space<vmem>>, %arg12: memref<1x32xf32, #tpu.memory_space<vmem>>, %arg13: memref<1x32xf32, #tpu.memory_space<vmem>>, %arg14: memref<1x14x32xf32, #tpu.memory_space<vmem>>) attributes {dimension_semantics = [#tpu.dimension_semantics<parallel>], iteration_bounds = array<i64: 2>, scalar_prefetch = 0 : i64, scratch_operands = 0 : i64, tpu.core_type = #tpu.core_type<tc>, window_params = [{transform_indices = @transform_0, window_bounds = array<i64: 1, 14, 32>}, {pipeline_mode = #tpu.pipeline_mode<synchronous>, transform_indices = @transform_1, window_bounds = array<i64: 32, 96>}, {pipeline_mode = #tpu.pipeline_mode<synchronous>, transform_indices = @transform_2, window_bounds = array<i64: 1, 96>}, {pipeline_mode = #tpu.pipeline_mode<synchronous>, transform_indices = @transform_3, window_bounds = array<i64: 32, 32>}, {pipeline_mode = #tpu.pipeline_mode<synchronous>, transform_indices = @transform_4, window_bounds = array<i64: 1, 32>}, {pipeline_mode = #tpu.pipeline_mode<synchronous>, transform_indices = @transform_5, window_bounds = array<i64: 1, 32>}, {pipeline_mode = #tpu.pipeline_mode<synchronous>, transform_indices = @transform_6, window_bounds = array<i64: 1, 32>}, {pipeline_mode = #tpu.pipeline_mode<synchronous>, transform_indices = @transform_7, window_bounds = array<i64: 32, 64>}, {pipeline_mode = #tpu.pipeline_mode<synchronous>, transform_indices = @transform_8, window_bounds = array<i64: 1, 64>}, {pipeline_mode = #tpu.pipeline_mode<synchronous>, transform_indices = @transform_9, window_bounds = array<i64: 64, 32>}, {pipeline_mode = #tpu.pipeline_mode<synchronous>, transform_indices = @transform_10, window_bounds = array<i64: 1, 32>}, {pipeline_mode = #tpu.pipeline_mode<synchronous>, transform_indices = @transform_11, window_bounds = array<i64: 1, 32>}, {pipeline_mode = #tpu.pipeline_mode<synchronous>, transform_indices = @transform_12, window_bounds = array<i64: 1, 32>}, {transform_indices = @transform_13, window_bounds = array<i64: 1, 14, 32>}]} {
    %c0 = arith.constant 0 : index
    %c0_0 = arith.constant 0 : index
    %c0_1 = arith.constant 0 : index
    %0 = vector.load %arg1[%c0, %c0_0, %c0_1] : memref<1x14x32xf32, #tpu.memory_space<vmem>>, vector<1x14x32xf32>
    %1 = vector.shape_cast %0 : vector<1x14x32xf32> to vector<14x32xf32>
    %c0_2 = arith.constant 0 : index
    %c0_3 = arith.constant 0 : index
    %2 = vector.load %arg2[%c0_2, %c0_3] : memref<32x96xf32, #tpu.memory_space<vmem>>, vector<32x96xf32>
    %cst = arith.constant dense<0.000000e+00> : vector<14x96xf32>
    %3 = tpu.matmul %1, %2, %cst {dimension_numbers = #tpu.dot_dimension_numbers<[1], [0], [0], [1], [0, 0, 1, 1], [], []>} : vector<14x32xf32>, vector<32x96xf32>, vector<14x96xf32> -> vector<14x96xf32>
    %c0_4 = arith.constant 0 : index
    %c0_5 = arith.constant 0 : index
    %4 = vector.load %arg3[%c0_4, %c0_5] : memref<1x96xf32, #tpu.memory_space<vmem>>, vector<1x96xf32>
    %5 = vector.broadcast %4 : vector<1x96xf32> to vector<14x96xf32>
    %6 = arith.addf %3, %5 : vector<14x96xf32>
    %c0_6 = arith.constant 0 : index
    %c0_7 = arith.constant 0 : index
    %7 = vector.load %arg4[%c0_6, %c0_7] : memref<32x32xf32, #tpu.memory_space<vmem>>, vector<32x32xf32>
    %cst_8 = arith.constant 0.000000e+00 : f32
    %8 = vector.broadcast %cst_8 : f32 to vector<14x32xf32>
    %c0_9 = arith.constant 0 : index
    %c0_10 = arith.constant 0 : index
    %9 = vector.load %arg5[%c0_9, %c0_10] : memref<1x32xf32, #tpu.memory_space<vmem>>, vector<1x32xf32>
    %10 = vector.broadcast %9 : vector<1x32xf32> to vector<14x32xf32>
    %11 = arith.addf %8, %10 : vector<14x32xf32>
    %12 = vector.extract_strided_slice %6 {offsets = [0, 0], sizes = [14, 8], strides = [1, 1]} : vector<14x96xf32> to vector<14x8xf32>
    %13 = vector.extract_strided_slice %6 {offsets = [0, 32], sizes = [14, 8], strides = [1, 1]} : vector<14x96xf32> to vector<14x8xf32>
    %14 = vector.extract_strided_slice %6 {offsets = [0, 64], sizes = [14, 8], strides = [1, 1]} : vector<14x96xf32> to vector<14x8xf32>
    %cst_11 = arith.constant dense<0.000000e+00> : vector<14x14xf32>
    %15 = tpu.matmul %12, %13, %cst_11 {dimension_numbers = #tpu.dot_dimension_numbers<[1], [1], [0], [0], [0, 0, 1, 0], [], []>} : vector<14x8xf32>, vector<14x8xf32>, vector<14x14xf32> -> vector<14x14xf32>
    %cst_12 = arith.constant dense<0xFF800000> : vector<14xf32>
    %16 = vector.multi_reduction <maximumf>, %15, %cst_12 [1] : vector<14x14xf32> to vector<14xf32>
    %17 = vector.shape_cast %16 : vector<14xf32> to vector<14x1xf32>
    %18 = vector.broadcast %17 : vector<14x1xf32> to vector<14x14xf32>
    %19 = arith.subf %15, %18 : vector<14x14xf32>
    %20 = math.exp %19 : vector<14x14xf32>
    %cst_13 = arith.constant dense<0.000000e+00> : vector<14xf32>
    %21 = vector.multi_reduction <add>, %20, %cst_13 [1] : vector<14x14xf32> to vector<14xf32>
    %22 = vector.shape_cast %21 : vector<14xf32> to vector<14x1xf32>
    %23 = tpu.reciprocal %22 {approx = true} : vector<14x1xf32> -> vector<14x1xf32>
    %24 = vector.broadcast %23 : vector<14x1xf32> to vector<14x14xf32>
    %25 = arith.mulf %20, %24 : vector<14x14xf32>
    %cst_14 = arith.constant dense<0.000000e+00> : vector<14x8xf32>
    %26 = tpu.matmul %25, %14, %cst_14 {dimension_numbers = #tpu.dot_dimension_numbers<[1], [0], [0], [1], [0, 0, 1, 1], [], []>} : vector<14x14xf32>, vector<14x8xf32>, vector<14x8xf32> -> vector<14x8xf32>
    %27 = vector.extract_strided_slice %7 {offsets = [0, 0], sizes = [8, 32], strides = [1, 1]} : vector<32x32xf32> to vector<8x32xf32>
    %cst_15 = arith.constant dense<0.000000e+00> : vector<14x32xf32>
    %28 = tpu.matmul %26, %27, %cst_15 {dimension_numbers = #tpu.dot_dimension_numbers<[1], [0], [0], [1], [0, 0, 1, 1], [], []>} : vector<14x8xf32>, vector<8x32xf32>, vector<14x32xf32> -> vector<14x32xf32>
    %29 = arith.addf %11, %28 : vector<14x32xf32>
    %30 = vector.extract_strided_slice %6 {offsets = [0, 8], sizes = [14, 8], strides = [1, 1]} : vector<14x96xf32> to vector<14x8xf32>
    %31 = vector.extract_strided_slice %6 {offsets = [0, 40], sizes = [14, 8], strides = [1, 1]} : vector<14x96xf32> to vector<14x8xf32>
    %32 = vector.extract_strided_slice %6 {offsets = [0, 72], sizes = [14, 8], strides = [1, 1]} : vector<14x96xf32> to vector<14x8xf32>
    %cst_16 = arith.constant dense<0.000000e+00> : vector<14x14xf32>
    %33 = tpu.matmul %30, %31, %cst_16 {dimension_numbers = #tpu.dot_dimension_numbers<[1], [1], [0], [0], [0, 0, 1, 0], [], []>} : vector<14x8xf32>, vector<14x8xf32>, vector<14x14xf32> -> vector<14x14xf32>
    %cst_17 = arith.constant dense<0xFF800000> : vector<14xf32>
    %34 = vector.multi_reduction <maximumf>, %33, %cst_17 [1] : vector<14x14xf32> to vector<14xf32>
    %35 = vector.shape_cast %34 : vector<14xf32> to vector<14x1xf32>
    %36 = vector.broadcast %35 : vector<14x1xf32> to vector<14x14xf32>
    %37 = arith.subf %33, %36 : vector<14x14xf32>
    %38 = math.exp %37 : vector<14x14xf32>
    %cst_18 = arith.constant dense<0.000000e+00> : vector<14xf32>
    %39 = vector.multi_reduction <add>, %38, %cst_18 [1] : vector<14x14xf32> to vector<14xf32>
    %40 = vector.shape_cast %39 : vector<14xf32> to vector<14x1xf32>
    %41 = tpu.reciprocal %40 {approx = true} : vector<14x1xf32> -> vector<14x1xf32>
    %42 = vector.broadcast %41 : vector<14x1xf32> to vector<14x14xf32>
    %43 = arith.mulf %38, %42 : vector<14x14xf32>
    %cst_19 = arith.constant dense<0.000000e+00> : vector<14x8xf32>
    %44 = tpu.matmul %43, %32, %cst_19 {dimension_numbers = #tpu.dot_dimension_numbers<[1], [0], [0], [1], [0, 0, 1, 1], [], []>} : vector<14x14xf32>, vector<14x8xf32>, vector<14x8xf32> -> vector<14x8xf32>
    %45 = vector.extract_strided_slice %7 {offsets = [8, 0], sizes = [8, 32], strides = [1, 1]} : vector<32x32xf32> to vector<8x32xf32>
    %cst_20 = arith.constant dense<0.000000e+00> : vector<14x32xf32>
    %46 = tpu.matmul %44, %45, %cst_20 {dimension_numbers = #tpu.dot_dimension_numbers<[1], [0], [0], [1], [0, 0, 1, 1], [], []>} : vector<14x8xf32>, vector<8x32xf32>, vector<14x32xf32> -> vector<14x32xf32>
    %47 = arith.addf %29, %46 : vector<14x32xf32>
    %48 = vector.extract_strided_slice %6 {offsets = [0, 16], sizes = [14, 8], strides = [1, 1]} : vector<14x96xf32> to vector<14x8xf32>
    %49 = vector.extract_strided_slice %6 {offsets = [0, 48], sizes = [14, 8], strides = [1, 1]} : vector<14x96xf32> to vector<14x8xf32>
    %50 = vector.extract_strided_slice %6 {offsets = [0, 80], sizes = [14, 8], strides = [1, 1]} : vector<14x96xf32> to vector<14x8xf32>
    %cst_21 = arith.constant dense<0.000000e+00> : vector<14x14xf32>
    %51 = tpu.matmul %48, %49, %cst_21 {dimension_numbers = #tpu.dot_dimension_numbers<[1], [1], [0], [0], [0, 0, 1, 0], [], []>} : vector<14x8xf32>, vector<14x8xf32>, vector<14x14xf32> -> vector<14x14xf32>
    %cst_22 = arith.constant dense<0xFF800000> : vector<14xf32>
    %52 = vector.multi_reduction <maximumf>, %51, %cst_22 [1] : vector<14x14xf32> to vector<14xf32>
    %53 = vector.shape_cast %52 : vector<14xf32> to vector<14x1xf32>
    %54 = vector.broadcast %53 : vector<14x1xf32> to vector<14x14xf32>
    %55 = arith.subf %51, %54 : vector<14x14xf32>
    %56 = math.exp %55 : vector<14x14xf32>
    %cst_23 = arith.constant dense<0.000000e+00> : vector<14xf32>
    %57 = vector.multi_reduction <add>, %56, %cst_23 [1] : vector<14x14xf32> to vector<14xf32>
    %58 = vector.shape_cast %57 : vector<14xf32> to vector<14x1xf32>
    %59 = tpu.reciprocal %58 {approx = true} : vector<14x1xf32> -> vector<14x1xf32>
    %60 = vector.broadcast %59 : vector<14x1xf32> to vector<14x14xf32>
    %61 = arith.mulf %56, %60 : vector<14x14xf32>
    %cst_24 = arith.constant dense<0.000000e+00> : vector<14x8xf32>
    %62 = tpu.matmul %61, %50, %cst_24 {dimension_numbers = #tpu.dot_dimension_numbers<[1], [0], [0], [1], [0, 0, 1, 1], [], []>} : vector<14x14xf32>, vector<14x8xf32>, vector<14x8xf32> -> vector<14x8xf32>
    %63 = vector.extract_strided_slice %7 {offsets = [16, 0], sizes = [8, 32], strides = [1, 1]} : vector<32x32xf32> to vector<8x32xf32>
    %cst_25 = arith.constant dense<0.000000e+00> : vector<14x32xf32>
    %64 = tpu.matmul %62, %63, %cst_25 {dimension_numbers = #tpu.dot_dimension_numbers<[1], [0], [0], [1], [0, 0, 1, 1], [], []>} : vector<14x8xf32>, vector<8x32xf32>, vector<14x32xf32> -> vector<14x32xf32>
    %65 = arith.addf %47, %64 : vector<14x32xf32>
    %66 = vector.extract_strided_slice %6 {offsets = [0, 24], sizes = [14, 8], strides = [1, 1]} : vector<14x96xf32> to vector<14x8xf32>
    %67 = vector.extract_strided_slice %6 {offsets = [0, 56], sizes = [14, 8], strides = [1, 1]} : vector<14x96xf32> to vector<14x8xf32>
    %68 = vector.extract_strided_slice %6 {offsets = [0, 88], sizes = [14, 8], strides = [1, 1]} : vector<14x96xf32> to vector<14x8xf32>
    %cst_26 = arith.constant dense<0.000000e+00> : vector<14x14xf32>
    %69 = tpu.matmul %66, %67, %cst_26 {dimension_numbers = #tpu.dot_dimension_numbers<[1], [1], [0], [0], [0, 0, 1, 0], [], []>} : vector<14x8xf32>, vector<14x8xf32>, vector<14x14xf32> -> vector<14x14xf32>
    %cst_27 = arith.constant dense<0xFF800000> : vector<14xf32>
    %70 = vector.multi_reduction <maximumf>, %69, %cst_27 [1] : vector<14x14xf32> to vector<14xf32>
    %71 = vector.shape_cast %70 : vector<14xf32> to vector<14x1xf32>
    %72 = vector.broadcast %71 : vector<14x1xf32> to vector<14x14xf32>
    %73 = arith.subf %69, %72 : vector<14x14xf32>
    %74 = math.exp %73 : vector<14x14xf32>
    %cst_28 = arith.constant dense<0.000000e+00> : vector<14xf32>
    %75 = vector.multi_reduction <add>, %74, %cst_28 [1] : vector<14x14xf32> to vector<14xf32>
    %76 = vector.shape_cast %75 : vector<14xf32> to vector<14x1xf32>
    %77 = tpu.reciprocal %76 {approx = true} : vector<14x1xf32> -> vector<14x1xf32>
    %78 = vector.broadcast %77 : vector<14x1xf32> to vector<14x14xf32>
    %79 = arith.mulf %74, %78 : vector<14x14xf32>
    %cst_29 = arith.constant dense<0.000000e+00> : vector<14x8xf32>
    %80 = tpu.matmul %79, %68, %cst_29 {dimension_numbers = #tpu.dot_dimension_numbers<[1], [0], [0], [1], [0, 0, 1, 1], [], []>} : vector<14x14xf32>, vector<14x8xf32>, vector<14x8xf32> -> vector<14x8xf32>
    %81 = vector.extract_strided_slice %7 {offsets = [24, 0], sizes = [8, 32], strides = [1, 1]} : vector<32x32xf32> to vector<8x32xf32>
    %cst_30 = arith.constant dense<0.000000e+00> : vector<14x32xf32>
    %82 = tpu.matmul %80, %81, %cst_30 {dimension_numbers = #tpu.dot_dimension_numbers<[1], [0], [0], [1], [0, 0, 1, 1], [], []>} : vector<14x8xf32>, vector<8x32xf32>, vector<14x32xf32> -> vector<14x32xf32>
    %83 = arith.addf %65, %82 : vector<14x32xf32>
    %84 = arith.addf %1, %83 : vector<14x32xf32>
    %c0_31 = arith.constant 0 : index
    %c0_32 = arith.constant 0 : index
    %85 = vector.load %arg6[%c0_31, %c0_32] : memref<1x32xf32, #tpu.memory_space<vmem>>, vector<1x32xf32>
    %c0_33 = arith.constant 0 : index
    %c0_34 = arith.constant 0 : index
    %86 = vector.load %arg7[%c0_33, %c0_34] : memref<1x32xf32, #tpu.memory_space<vmem>>, vector<1x32xf32>
    %cst_35 = arith.constant dense<0.000000e+00> : vector<14xf32>
    %87 = vector.multi_reduction <add>, %84, %cst_35 [1] : vector<14x32xf32> to vector<14xf32>
    %88 = vector.shape_cast %87 : vector<14xf32> to vector<14x1xf32>
    %cst_36 = arith.constant 3.200000e+01 : f32
    %89 = vector.broadcast %cst_36 : f32 to vector<14x1xf32>
    %90 = arith.divf %88, %89 : vector<14x1xf32>
    %91 = vector.broadcast %90 : vector<14x1xf32> to vector<14x32xf32>
    %92 = arith.subf %84, %91 : vector<14x32xf32>
    %93 = arith.mulf %92, %92 : vector<14x32xf32>
    %cst_37 = arith.constant dense<0.000000e+00> : vector<14xf32>
    %94 = vector.multi_reduction <add>, %93, %cst_37 [1] : vector<14x32xf32> to vector<14xf32>
    %95 = vector.shape_cast %94 : vector<14xf32> to vector<14x1xf32>
    %cst_38 = arith.constant 3.200000e+01 : f32
    %96 = vector.broadcast %cst_38 : f32 to vector<14x1xf32>
    %97 = arith.divf %95, %96 : vector<14x1xf32>
    %98 = vector.broadcast %90 : vector<14x1xf32> to vector<14x32xf32>
    %99 = arith.subf %84, %98 : vector<14x32xf32>
    %cst_39 = arith.constant 9.99999974E-6 : f32
    %100 = vector.broadcast %cst_39 : f32 to vector<14x1xf32>
    %101 = arith.addf %97, %100 : vector<14x1xf32>
    %102 = math.rsqrt %101 : vector<14x1xf32>
    %103 = vector.broadcast %102 : vector<14x1xf32> to vector<14x32xf32>
    %104 = arith.mulf %99, %103 : vector<14x32xf32>
    %105 = vector.broadcast %85 : vector<1x32xf32> to vector<14x32xf32>
    %106 = arith.mulf %104, %105 : vector<14x32xf32>
    %107 = vector.broadcast %86 : vector<1x32xf32> to vector<14x32xf32>
    %108 = arith.addf %106, %107 : vector<14x32xf32>
    %c0_40 = arith.constant 0 : index
    %c0_41 = arith.constant 0 : index
    %109 = vector.load %arg8[%c0_40, %c0_41] : memref<32x64xf32, #tpu.memory_space<vmem>>, vector<32x64xf32>
    %cst_42 = arith.constant dense<0.000000e+00> : vector<14x64xf32>
    %110 = tpu.matmul %108, %109, %cst_42 {dimension_numbers = #tpu.dot_dimension_numbers<[1], [0], [0], [1], [0, 0, 1, 1], [], []>} : vector<14x32xf32>, vector<32x64xf32>, vector<14x64xf32> -> vector<14x64xf32>
    %c0_43 = arith.constant 0 : index
    %c0_44 = arith.constant 0 : index
    %111 = vector.load %arg9[%c0_43, %c0_44] : memref<1x64xf32, #tpu.memory_space<vmem>>, vector<1x64xf32>
    %112 = vector.broadcast %111 : vector<1x64xf32> to vector<14x64xf32>
    %113 = arith.addf %110, %112 : vector<14x64xf32>
    %cst_45 = arith.constant 5.000000e-01 : f32
    %114 = vector.broadcast %cst_45 : f32 to vector<14x64xf32>
    %115 = arith.mulf %114, %113 : vector<14x64xf32>
    %cst_46 = arith.constant 0.707106769 : f32
    %116 = vector.broadcast %cst_46 : f32 to vector<14x64xf32>
    %117 = arith.mulf %113, %116 : vector<14x64xf32>
    %118 = math.erf %117 : vector<14x64xf32>
    %cst_47 = arith.constant 1.000000e+00 : f32
    %119 = vector.broadcast %cst_47 : f32 to vector<14x64xf32>
    %120 = arith.addf %119, %118 : vector<14x64xf32>
    %121 = arith.mulf %115, %120 : vector<14x64xf32>
    %c0_48 = arith.constant 0 : index
    %c0_49 = arith.constant 0 : index
    %122 = vector.load %arg10[%c0_48, %c0_49] : memref<64x32xf32, #tpu.memory_space<vmem>>, vector<64x32xf32>
    %cst_50 = arith.constant dense<0.000000e+00> : vector<14x32xf32>
    %123 = tpu.matmul %121, %122, %cst_50 {dimension_numbers = #tpu.dot_dimension_numbers<[1], [0], [0], [1], [0, 0, 1, 1], [], []>} : vector<14x64xf32>, vector<64x32xf32>, vector<14x32xf32> -> vector<14x32xf32>
    %c0_51 = arith.constant 0 : index
    %c0_52 = arith.constant 0 : index
    %124 = vector.load %arg11[%c0_51, %c0_52] : memref<1x32xf32, #tpu.memory_space<vmem>>, vector<1x32xf32>
    %125 = vector.broadcast %124 : vector<1x32xf32> to vector<14x32xf32>
    %126 = arith.addf %123, %125 : vector<14x32xf32>
    %127 = arith.addf %108, %126 : vector<14x32xf32>
    %c0_53 = arith.constant 0 : index
    %c0_54 = arith.constant 0 : index
    %128 = vector.load %arg12[%c0_53, %c0_54] : memref<1x32xf32, #tpu.memory_space<vmem>>, vector<1x32xf32>
    %c0_55 = arith.constant 0 : index
    %c0_56 = arith.constant 0 : index
    %129 = vector.load %arg13[%c0_55, %c0_56] : memref<1x32xf32, #tpu.memory_space<vmem>>, vector<1x32xf32>
    %cst_57 = arith.constant dense<0.000000e+00> : vector<14xf32>
    %130 = vector.multi_reduction <add>, %127, %cst_57 [1] : vector<14x32xf32> to vector<14xf32>
    %131 = vector.shape_cast %130 : vector<14xf32> to vector<14x1xf32>
    %cst_58 = arith.constant 3.200000e+01 : f32
    %132 = vector.broadcast %cst_58 : f32 to vector<14x1xf32>
    %133 = arith.divf %131, %132 : vector<14x1xf32>
    %134 = vector.broadcast %133 : vector<14x1xf32> to vector<14x32xf32>
    %135 = arith.subf %127, %134 : vector<14x32xf32>
    %136 = arith.mulf %135, %135 : vector<14x32xf32>
    %cst_59 = arith.constant dense<0.000000e+00> : vector<14xf32>
    %137 = vector.multi_reduction <add>, %136, %cst_59 [1] : vector<14x32xf32> to vector<14xf32>
    %138 = vector.shape_cast %137 : vector<14xf32> to vector<14x1xf32>
    %cst_60 = arith.constant 3.200000e+01 : f32
    %139 = vector.broadcast %cst_60 : f32 to vector<14x1xf32>
    %140 = arith.divf %138, %139 : vector<14x1xf32>
    %141 = vector.broadcast %133 : vector<14x1xf32> to vector<14x32xf32>
    %142 = arith.subf %127, %141 : vector<14x32xf32>
    %cst_61 = arith.constant 9.99999974E-6 : f32
    %143 = vector.broadcast %cst_61 : f32 to vector<14x1xf32>
    %144 = arith.addf %140, %143 : vector<14x1xf32>
    %145 = math.rsqrt %144 : vector<14x1xf32>
    %146 = vector.broadcast %145 : vector<14x1xf32> to vector<14x32xf32>
    %147 = arith.mulf %142, %146 : vector<14x32xf32>
    %148 = vector.broadcast %128 : vector<1x32xf32> to vector<14x32xf32>
    %149 = arith.mulf %147, %148 : vector<14x32xf32>
    %150 = vector.broadcast %129 : vector<1x32xf32> to vector<14x32xf32>
    %151 = arith.addf %149, %150 : vector<14x32xf32>
    %c0_62 = arith.constant 0 : index
    %c0_63 = arith.constant 0 : index
    %c0_64 = arith.constant 0 : index
    %152 = vector.load %arg14[%c0_62, %c0_63, %c0_64] : memref<1x14x32xf32, #tpu.memory_space<vmem>>, vector<1x14x32xf32>
    %153 = vector.shape_cast %152 : vector<1x14x32xf32> to vector<14x32xf32>
    %154 = vector.shape_cast %151 : vector<14x32xf32> to vector<1x14x32xf32>
    tpu.vector_store %arg14[%c0_62, %c0_63, %c0_64], %154 {strides = array<i32>} : memref<1x14x32xf32, #tpu.memory_space<vmem>>, vector<1x14x32xf32>,
    return
  }
  func.func @transform_0(%arg0: i32) -> (i32, i32, i32) {
    %c0_i32 = arith.constant 0 : i32
    %c0_i32_0 = arith.constant 0 : i32
    %c0_i32_1 = arith.constant 0 : i32
    return %arg0, %c0_i32, %c0_i32_0 : i32, i32, i32
  }
  func.func @transform_1(%arg0: i32) -> (i32, i32) {
    %c0_i32 = arith.constant 0 : i32
    %c0_i32_0 = arith.constant 0 : i32
    %c0_i32_1 = arith.constant 0 : i32
    return %c0_i32, %c0_i32_0 : i32, i32
  }
  func.func @transform_2(%arg0: i32) -> (i32, i32) {
    %c0_i32 = arith.constant 0 : i32
    %c0_i32_0 = arith.constant 0 : i32
    %c0_i32_1 = arith.constant 0 : i32
    return %c0_i32, %c0_i32_0 : i32, i32
  }
  func.func @transform_3(%arg0: i32) -> (i32, i32) {
    %c0_i32 = arith.constant 0 : i32
    %c0_i32_0 = arith.constant 0 : i32
    %c0_i32_1 = arith.constant 0 : i32
    return %c0_i32, %c0_i32_0 : i32, i32
  }
  func.func @transform_4(%arg0: i32) -> (i32, i32) {
    %c0_i32 = arith.constant 0 : i32
    %c0_i32_0 = arith.constant 0 : i32
    %c0_i32_1 = arith.constant 0 : i32
    return %c0_i32, %c0_i32_0 : i32, i32
  }
  func.func @transform_5(%arg0: i32) -> (i32, i32) {
    %c0_i32 = arith.constant 0 : i32
    %c0_i32_0 = arith.constant 0 : i32
    %c0_i32_1 = arith.constant 0 : i32
    return %c0_i32, %c0_i32_0 : i32, i32
  }
  func.func @transform_6(%arg0: i32) -> (i32, i32) {
    %c0_i32 = arith.constant 0 : i32
    %c0_i32_0 = arith.constant 0 : i32
    %c0_i32_1 = arith.constant 0 : i32
    return %c0_i32, %c0_i32_0 : i32, i32
  }
  func.func @transform_7(%arg0: i32) -> (i32, i32) {
    %c0_i32 = arith.constant 0 : i32
    %c0_i32_0 = arith.constant 0 : i32
    %c0_i32_1 = arith.constant 0 : i32
    return %c0_i32, %c0_i32_0 : i32, i32
  }
  func.func @transform_8(%arg0: i32) -> (i32, i32) {
    %c0_i32 = arith.constant 0 : i32
    %c0_i32_0 = arith.constant 0 : i32
    %c0_i32_1 = arith.constant 0 : i32
    return %c0_i32, %c0_i32_0 : i32, i32
  }
  func.func @transform_9(%arg0: i32) -> (i32, i32) {
    %c0_i32 = arith.constant 0 : i32
    %c0_i32_0 = arith.constant 0 : i32
    %c0_i32_1 = arith.constant 0 : i32
    return %c0_i32, %c0_i32_0 : i32, i32
  }
  func.func @transform_10(%arg0: i32) -> (i32, i32) {
    %c0_i32 = arith.constant 0 : i32
    %c0_i32_0 = arith.constant 0 : i32
    %c0_i32_1 = arith.constant 0 : i32
    return %c0_i32, %c0_i32_0 : i32, i32
  }
  func.func @transform_11(%arg0: i32) -> (i32, i32) {
    %c0_i32 = arith.constant 0 : i32
    %c0_i32_0 = arith.constant 0 : i32
    %c0_i32_1 = arith.constant 0 : i32
    return %c0_i32, %c0_i32_0 : i32, i32
  }
  func.func @transform_12(%arg0: i32) -> (i32, i32) {
    %c0_i32 = arith.constant 0 : i32
    %c0_i32_0 = arith.constant 0 : i32
    %c0_i32_1 = arith.constant 0 : i32
    return %c0_i32, %c0_i32_0 : i32, i32
  }
  func.func @transform_13(%arg0: i32) -> (i32, i32, i32) {
    %c0_i32 = arith.constant 0 : i32
    %c0_i32_0 = arith.constant 0 : i32
    %c0_i32_1 = arith.constant 0 : i32
    return %arg0, %c0_i32, %c0_i32_0 : i32, i32, i32
  }
}

</mosaic_0001>

<bundles_post_ra>
// kernel: aves_embedding_forward.6
= control target key start
LH: loop header
LB: loop body
LE: loop exit
PB: predicated region body
PF: predicated region fallthrough
CT: control target
= control target key end

     0   :  { %s906_s15 = smov 0   ;;  %s1356_s0 = inlined_call_operand.vmem [shape: f32[2,63,10], index: 0, kind: input, shape index: {}]   ;;  %s1357_s1 = inlined_call_operand.vmem [shape: f32[10,16], index: 1, kind: input, shape index: {}]   ;;  %s1358_s2 = inlined_call_operand.vmem [shape: f32[1,16], index: 2, kind: input, shape index: {}]   ;;  %s1359_s3 = inlined_call_operand.vmem [shape: f32[1,16], index: 3, kind: input, shape index: {}]   ;;  %s1360_s4 = inlined_call_operand.vmem [shape: f32[2,63,16], index: 4, kind: output, shape index: {}]  }
   0x1 LB: > { %s805_s16 = sadd.s32 4294967295, %s878_s15   ;;  %p809_p0 = scmp.ge.s32.totalorder %s878_s15, 1  ;;  %s878_s15 = sphi %s906_s15, %s14_s15  }
   0x2   : > { %p162_p1 = scmp.lt.s32.totalorder %s878_s15, 3 }
   0x4   : > { %p163_p2 = pnand %p809_p0, %p162_p1 }
   0x5   : > { %p188_p3 = scmp.lt.s32.totalorder (!%p163_p2), %s805_s16, 1 }
   0x6   : > { %166 = sbr.rel (%p163_p2) target bundleno = 342 (0x156), region = 36 }
   0xb   : > { %v207_v0 = vld [vmem:[%s1357_s1 + $0x8] sm:$0x3]  ;;  %vm233_vm0 = vcmask 1041408   ;;  %v206_v1 = vld [vmem:[%s1357_s1] sm:$0xff]  ;;  %s1376_s16 = smov (!%p188_p3, %s805_s16), 1  ;;  %vm208_vm1 = vcmask 80896  }
   0xc   : > { %814 = vmatpush.msk.msra.mxu0 %vm233_vm0, %v207_v0  ;;  %836 = vmatpush.msk.msra.mxu2 %vm233_vm0, %v207_v0  ;;  %s833_s21 = sshll.u32 %s1376_s16, 6  ;;  %vm278_vm2 = vcmask 130048   ;;  %v880_v15 = vmov 63.0   ;;  %vm292_vm3 = vcmask 129024  }
   0xd   : > { %835 = vmatpush.msk.msra.mxu1 %vm233_vm0, %v207_v0  ;;  %837 = vmatpush.msk.msra.mxu3 %vm233_vm0, %v207_v0  ;;  %s192_s24 = scalar_lea.vmem %s1356_s0, %s833_s21  ;;  %852 = vrcp.f32 %v880_v15  ;;  %s1313_s5 = scalar_lea.vmem %s1360_s4, %s833_s21 }
   0xe   : > { %252 = vmatpush.msra.mxu0 %v206_v1  ;;  %839 = vmatpush.msra.mxu2 %v206_v1  ;;  %v198_v2 = vld [vmem:[%s192_s24] sm:$0xff]  ;;  %v200_v4 = vld [vmem:[%s192_s24 + $0x10] sm:$0xff]  ;;  %v199_v6 = vld [vmem:[%s192_s24 + $0x8] sm:$0xff] }
   0xf   : > { %838 = vmatpush.msra.mxu1 %v206_v1  ;;  %840 = vmatpush.msra.mxu3 %v206_v1  ;;  %v202_v3 = vld [vmem:[%s192_s24 + $0x20] sm:$0xff]  ;;  %v204_v5 = vld [vmem:[%s192_s24 + $0x30] sm:$0xff]  ;;  %v203_v7 = vld [vmem:[%s192_s24 + $0x28] sm:$0xff] }
  0x10   : > { %815 = vmatmul.msk.f32.vlgmr.msra.gmra.mxu0 %vm208_vm1, %v198_v2  ;;  %819 = vmatmul.msk.f32.vlgmr.msra.gmra.mxu2 %vm208_vm1, %v202_v3  ;;  %v201_v8 = vld [vmem:[%s192_s24 + $0x18] sm:$0xff] }
  0x11   : > { %817 = vmatmul.msk.f32.vlgmr.msra.gmra.mxu1 %vm208_vm1, %v200_v4  ;;  %821 = vmatmul.msk.f32.vlgmr.msra.gmra.mxu3 %vm208_vm1, %v204_v5  ;;  %v205_v9 = vld [vmem:[%s192_s24 + $0x38] sm:$0x7f] }
  0x13   : > { %v853_v23 = vpop.eup %852 }
  0x14   : > { %v302_v30 = vmul.f32 63.0, %v853_v23  ;;  %vm306_vm4 = vweird.f32 %v853_v23 }
  0x16   : > { %v303_v35 = vsub.f32 1.0, %v302_v30 }
  0x18   : > { %816 = vmatmul.msk.f32.gmra.mxu0 %vm208_vm1, %v199_v6  ;;  %820 = vmatmul.msk.f32.gmra.mxu2 %vm208_vm1, %v203_v7  ;;  %v304_v38 = vmul.f32 %v853_v23, %v303_v35 }
  0x19   : > { %818 = vmatmul.msk.f32.gmra.mxu1 %vm208_vm1, %v201_v8  ;;  %822 = vmatmul.msk.f32.gmra.mxu3 %vm208_vm1, %v205_v9 }
  0x1a   : > { %v305_v41 = vadd.f32 %v853_v23, %v304_v38 }
  0x1c   : > { %v307_v44 = vsel %vm306_vm4, %v853_v23, %v305_v41 }
  0x8d   : > { %v254_v10 = vpop.f32.mrf.mxu0 }
  0x8e   : > { %v260_v11 = vpop.f32.mrf.mxu1  ;;  %v279_v16 = vsel %vm278_vm2, %v254_v10, 0.0 }
  0x8f   : > { %v282_v20 = vsel %vm278_vm2, %v260_v11, 0.0 }
  0x93   : > { %v266_v12 = vpop.f32.mrf.mxu2 }
  0x94   : > { %v272_v13 = vpop.f32.mrf.mxu3  ;;  %v286_v26 = vsel %vm278_vm2, %v266_v12, 0.0 }
  0x95   : > { %v257_v14 = vpop.f32.mrf.mxu0  ;;  %v290_v32 = vsel %vm278_vm2, %v272_v13, 0.0 }
  0x96   : > { %v280_v17 = vsel %vm278_vm2, %v257_v14, 0.0  ;;  %v263_v18 = vpop.f32.mrf.mxu1 }
  0x97   : > { %v281_v19 = vadd.f32 %v280_v17, %v279_v16  ;;  %v284_v21 = vsel %vm278_vm2, %v263_v18, 0.0 }
  0x99   : > { %v283_v22 = vadd.f32 %v282_v20, %v281_v19 }
  0x9b   : > { %v285_v24 = vadd.f32 %v284_v21, %v283_v22  ;;  %v269_v25 = vpop.f32.mrf.mxu2 }
  0x9c   : > { %v288_v27 = vsel %vm278_vm2, %v269_v25, 0.0  ;;  %v275_v29 = vpop.f32.mrf.mxu3 }
  0x9d   : > { %v287_v28 = vadd.f32 %v286_v26, %v285_v24  ;;  %v293_v33 = vsel %vm292_vm3, %v275_v29, 0.0 }
  0x9f   : > { %v289_v31 = vadd.f32 %v288_v27, %v287_v28  ;;  %v971_v28 = vld [vmem:[%s1358_s2] ss:$0 sm:$0xff] }
  0xa1   : > { %v291_v34 = vadd.f32 %v290_v32, %v289_v31 }
  0xa3   : > { %v294_v36 = vadd.f32 %v293_v33, %v291_v34  ;;  %v982_v34 = vld [vmem:[%s1359_s3] ss:$0 sm:$0xff] }
  0xa5   : > { %v295_v37 = vrot.slane %v294_v36, 4 }
  0xa7   : > { %v296_v39 = vadd.f32 %v295_v37, %v294_v36 }
  0xa9   : > { %v297_v40 = vrot.slane %v296_v39, 2 }
  0xab   : > { %v298_v42 = vadd.f32 %v297_v40, %v296_v39 }
  0xad   : > { %v299_v43 = vrot.slane %v298_v42, 1 }
  0xaf   : > { %v300_v45 = vadd.f32 %v299_v43, %v298_v42 }
  0xb1   : > { %v308_v46 = vmul.f32 %v307_v44, %v300_v45 }
  0xb3   : > { %v309_v47 = vsub.f32 %v254_v10, %v308_v46  ;;  %v310_v48 = vsub.f32 %v257_v14, %v308_v46  ;;  %v311_v49 = vsub.f32 %v260_v11, %v308_v46  ;;  %v312_v50 = vsub.f32 %v263_v18, %v308_v46 }
  0xb4   : > { %v944_v51 = vsub.f32 %v266_v12, %v308_v46  ;;  %v946_v55 = vsub.f32 %v269_v25, %v308_v46  ;;  %v950_v60 = vsub.f32 %v272_v13, %v308_v46  ;;  %v955_v0 = vsub.f32 %v275_v29, %v308_v46 }
  0xb5   : > { %v317_v52 = vmul.f32 %v309_v47, %v309_v47  ;;  %v318_v53 = vmul.f32 %v310_v48, %v310_v48  ;;  %v319_v54 = vmul.f32 %v311_v49, %v311_v49  ;;  %v320_v56 = vmul.f32 %v312_v50, %v312_v50 }
  0xb6   : > { %v321_v61 = vmul.f32 %v944_v51, %v944_v51  ;;  %v322_v1 = vmul.f32 %v946_v55, %v946_v55  ;;  %v323_v4 = vmul.f32 %v950_v60, %v950_v60  ;;  %v324_v7 = vmul.f32 %v955_v0, %v955_v0 }
  0xb7   : > { %v325_v57 = vsel %vm278_vm2, %v317_v52, 0.0  ;;  %v326_v58 = vsel %vm278_vm2, %v318_v53, 0.0  ;;  %v328_v62 = vsel %vm278_vm2, %v319_v54, 0.0  ;;  %v330_v2 = vsel %vm278_vm2, %v320_v56, 0.0 }
  0xb8   : > { %v327_v59 = vadd.f32 %v326_v58, %v325_v57  ;;  %v332_v5 = vsel %vm278_vm2, %v321_v61, 0.0  ;;  %v334_v8 = vsel %vm278_vm2, %v322_v1, 0.0  ;;  %v336_v10 = vsel %vm278_vm2, %v323_v4, 0.0 }
  0xb9   : > { %v338_v12 = vsel %vm292_vm3, %v324_v7, 0.0 }
  0xba   : > { %v329_v63 = vadd.f32 %v328_v62, %v327_v59 }
  0xbc   : > { %v331_v3 = vadd.f32 %v330_v2, %v329_v63 }
  0xbe   : > { %v333_v6 = vadd.f32 %v332_v5, %v331_v3 }
  0xc0   : > { %v335_v9 = vadd.f32 %v334_v8, %v333_v6 }
  0xc2   : > { %v337_v11 = vadd.f32 %v336_v10, %v335_v9 }
  0xc4   : > { %v339_v13 = vadd.f32 %v338_v12, %v337_v11 }
  0xc6   : > { %v340_v14 = vrot.slane %v339_v13, 4 }
  0xc8   : > { %v341_v15 = vadd.f32 %v340_v14, %v339_v13 }
  0xca   : > { %v342_v16 = vrot.slane %v341_v15, 2 }
  0xcc   : > { %v343_v17 = vadd.f32 %v342_v16, %v341_v15 }
  0xce   : > { %v344_v18 = vrot.slane %v343_v17, 1 }
  0xd0   : > { %v345_v19 = vadd.f32 %v344_v18, %v343_v17 }
  0xd2   : > { %v346_v20 = vmul.f32 %v345_v19, %v307_v44 }
  0xd4   : > { %v347_v21 = vadd.f32 1e-05, %v346_v20 }
  0xd6   : > { %854 = vrsqrt.f32 %v347_v21  ;;  %vm354_vm6 = vweird.f32 %v347_v21 }
  0xdc   : > { %v855_v22 = vpop.eup %854 }
  0xdd   : > { %v349_v23 = vmul.f32 %v855_v22, %v347_v21  ;;  %vm355_vm5 = vweird.f32 %v855_v22 }
  0xde   : > { %vm356_vm7 = vmor %vm354_vm6, %vm355_vm5 }
  0xdf   : > { %v350_v24 = vmul.f32 %v855_v22, %v349_v23 }
  0xe1   : > { %v351_v25 = vmul.f32 0.5, %v350_v24 }
  0xe3   : > { %v352_v26 = vsub.f32 1.5, %v351_v25 }
  0xe5   : > { %v353_v27 = vmul.f32 %v855_v22, %v352_v26 }
  0xe7   : > { %v973_v29 = vsel %vm356_vm7, %v855_v22, %v353_v27 }
  0xe8   : > { %v358_v30 = vmul.f32 %v973_v29, %v309_v47  ;;  %v359_v31 = vmul.f32 %v973_v29, %v310_v48  ;;  %v360_v32 = vmul.f32 %v973_v29, %v311_v49  ;;  %v361_v33 = vmul.f32 %v973_v29, %v312_v50 }
  0xe9   : > { %v362_v54 = vmul.f32 %v973_v29, %v944_v51  ;;  %v363_v16 = vmul.f32 %v973_v29, %v946_v55 }
  0xea   : > { %v370_v35 = vmul.f32 %v971_v28, %v358_v30  ;;  %v371_v36 = vmul.f32 %v971_v28, %v359_v31  ;;  %v372_v37 = vmul.f32 %v971_v28, %v360_v32  ;;  %v373_v38 = vmul.f32 %v971_v28, %v361_v33 }
  0xeb   : > { %v374_v51 = vmul.f32 %v971_v28, %v362_v54  ;;  %v375_v32 = vmul.f32 %v971_v28, %v363_v16 }
  0xec   : > { %v989_v39 = vadd.f32 %v982_v34, %v370_v35  ;;  %v992_v40 = vadd.f32 %v982_v34, %v371_v36  ;;  %v995_v41 = vadd.f32 %v982_v34, %v372_v37  ;;  %v998_v42 = vadd.f32 %v982_v34, %v373_v38 }
  0xed   : > { %v1048_v23 = vadd.f32 %v982_v34, %v374_v51 }
  0xee   : > { %v1001_v43 = vmul.f32 0.70710677, %v989_v39  ;;  %v1004_v44 = vmul.f32 0.70710677, %v992_v40  ;;  %v1007_v45 = vmul.f32 0.70710677, %v995_v41 }
  0xef   : > { %v1010_v46 = vmul.f32 0.70710677, %v998_v42 }
  0xf0   : > { %v406_v47 = vmul.f32 %v1001_v43, %v1001_v43  ;;  %v446_v48 = vmul.f32 %v1004_v44, %v1004_v44  ;;  %v486_v49 = vmul.f32 %v1007_v45, %v1007_v45 }
  0xf1   : > { %v526_v50 = vmul.f32 %v1010_v46, %v1010_v46 }
  0xf2   : > { %v1020_v52 = vmin.f32 %v406_v47, 16.0  ;;  %v1022_v53 = vmin.f32 %v446_v48, 16.0  ;;  %v1026_v56 = vmin.f32 %v486_v49, 16.0  ;;  %v364_v49 = vmul.f32 %v973_v29, %v950_v60 }
  0xf3   : > { %v1028_v57 = vmin.f32 %v526_v50, 16.0  ;;  %v1062_v50 = vmul.f32 0.70710677, %v1048_v23 }
  0xf4   : > { %v408_v58 = vmul.f32 2.1237322e-06, %v1020_v52  ;;  %v419_v59 = vmul.f32 3.8918573e-05, %v1020_v52  ;;  %v448_v61 = vmul.f32 2.1237322e-06, %v1022_v53 }
  0xf5   : > { %v459_v62 = vmul.f32 3.8918573e-05, %v1022_v53  ;;  %v488_v63 = vmul.f32 2.1237322e-06, %v1026_v56  ;;  %v499_v1 = vmul.f32 3.8918573e-05, %v1026_v56 }
  0xf6   : > { %v409_v2 = vadd.f32 0.00028619796, %v408_v58  ;;  %v420_v3 = vadd.f32 0.001143296, %v419_v59  ;;  %v449_v4 = vadd.f32 0.00028619796, %v448_v61 }
  0xf7   : > { %v460_v5 = vadd.f32 0.001143296, %v459_v62  ;;  %v489_v6 = vadd.f32 0.00028619796, %v488_v63  ;;  %v500_v7 = vadd.f32 0.001143296, %v499_v1  ;;  %v1068_v63 = vadd.f32 %v982_v34, %v375_v32 }
  0xf8   : > { %v410_v8 = vmul.f32 %v409_v2, %v1020_v52  ;;  %v421_v9 = vmul.f32 %v420_v3, %v1020_v52  ;;  %v450_v10 = vmul.f32 %v449_v4, %v1022_v53  ;;  %v528_v11 = vmul.f32 2.1237322e-06, %v1028_v57 }
  0xf9   : > { %v461_v12 = vmul.f32 %v460_v5, %v1022_v53  ;;  %v490_v13 = vmul.f32 %v489_v6, %v1026_v56  ;;  %v501_v14 = vmul.f32 %v500_v7, %v1026_v56  ;;  %v539_v15 = vmul.f32 3.8918573e-05, %v1028_v57 }
  0xfa   : > { %v411_v17 = vadd.f32 0.0036580483, %v410_v8  ;;  %v422_v18 = vadd.f32 0.014752088, %v421_v9  ;;  %v451_v19 = vadd.f32 0.0036580483, %v450_v10  ;;  %v365_v6 = vmul.f32 %v973_v29, %v955_v0 }
  0xfb   : > { %v462_v20 = vadd.f32 0.014752088, %v461_v12  ;;  %v491_v21 = vadd.f32 0.0036580483, %v490_v13  ;;  %v502_v22 = vadd.f32 0.014752088, %v501_v14  ;;  %v376_v7 = vmul.f32 %v971_v28, %v364_v49 }
  0xfc   : > { %v412_v24 = vmul.f32 %v411_v17, %v1020_v52  ;;  %v423_v25 = vmul.f32 %v422_v18, %v1020_v52  ;;  %v529_v26 = vadd.f32 0.00028619796, %v528_v11  ;;  %v452_v27 = vmul.f32 %v451_v19, %v1022_v53 }
  0xfd   : > { %v463_v30 = vmul.f32 %v462_v20, %v1022_v53  ;;  %v503_v55 = vmul.f32 %v502_v22, %v1026_v56  ;;  %v540_v31 = vadd.f32 0.001143296, %v539_v15  ;;  %v492_v35 = vmul.f32 %v491_v21, %v1026_v56 }
  0xfe   : > { %v424_v33 = vadd.f32 0.112945676, %v423_v25  ;;  %v530_v36 = vmul.f32 %v529_v26, %v1028_v57  ;;  %v413_v37 = vadd.f32 0.05243302, %v412_v24  ;;  %v453_v58 = vadd.f32 0.05243302, %v452_v27 }
  0xff   : > { %v464_v38 = vadd.f32 0.112945676, %v463_v30  ;;  %v504_v47 = vadd.f32 0.112945676, %v503_v55  ;;  %v541_v48 = vmul.f32 %v540_v31, %v1028_v57  ;;  %v493_v2 = vadd.f32 0.05243302, %v492_v35 }
 0x100   : > { %v425_v54 = vmul.f32 %v424_v33, %v1020_v52  ;;  %v531_v3 = vadd.f32 0.0036580483, %v530_v36  ;;  %v414_v4 = vmul.f32 %v413_v37, %v1020_v52  ;;  %v566_v9 = vmul.f32 %v1062_v50, %v1062_v50 }
 0x101   : > { %v465_v59 = vmul.f32 %v464_v38, %v1022_v53  ;;  %v505_v61 = vmul.f32 %v504_v47, %v1026_v56  ;;  %v542_v62 = vadd.f32 0.014752088, %v541_v48  ;;  %v454_v10 = vmul.f32 %v453_v58, %v1022_v53 }
 0x102   : > { %v426_v1 = vadd.f32 0.4994258, %v425_v54  ;;  %v1082_v14 = vmul.f32 0.70710677, %v1068_v63  ;;  %v494_v0 = vmul.f32 %v493_v2, %v1026_v56  ;;  %v532_v29 = vmul.f32 %v531_v3, %v1028_v57 }
 0x103   : > { %v466_v60 = vadd.f32 0.4994258, %v465_v59  ;;  %v506_v51 = vadd.f32 0.4994258, %v505_v61  ;;  %v543_v5 = vmul.f32 %v542_v62, %v1028_v57  ;;  %v415_v16 = vadd.f32 0.18741608, %v414_v4 }
 0x104   : > { %v427_v8 = vmul.f32 %v426_v1, %v1020_v52  ;;  %v377_v19 = vmul.f32 %v971_v28, %v365_v6  ;;  %v1094_v20 = vadd.f32 %v982_v34, %v376_v7  ;;  %v455_v21 = vadd.f32 0.18741608, %v454_v10 }
 0x105   : > { %v467_v11 = vmul.f32 %v466_v60, %v1022_v53  ;;  %v507_v12 = vmul.f32 %v506_v51, %v1026_v56  ;;  %v544_v13 = vadd.f32 0.112945676, %v543_v5  ;;  %v1099_v24 = vmin.f32 %v566_v9, 16.0 }
 0x106   : > { %v1084_v15 = vadd.f32 1.0, %v427_v8  ;;  %v495_v25 = vadd.f32 0.18741608, %v494_v0  ;;  %v533_v26 = vadd.f32 0.05243302, %v532_v29  ;;  %v606_v27 = vmul.f32 %v1082_v14, %v1082_v14 }
 0x107   : > { %v1088_v17 = vadd.f32 1.0, %v467_v11  ;;  %v1090_v18 = vadd.f32 1.0, %v507_v12  ;;  %v545_v22 = vmul.f32 %v544_v13, %v1028_v57  ;;  %v416_v30 = vmul.f32 %v415_v16, %v1020_v52 }
 0x108   : > { %856 = vrcp.f32 %v1084_v15  ;;  %v1106_v28 = vadd.f32 %v982_v34, %v377_v19  ;;  %v1109_v55 = vmul.f32 0.70710677, %v1094_v20  ;;  %v456_v31 = vmul.f32 %v455_v21, %v1022_v53 }
 0x109   : > { %858 = vrcp.f32 %v1088_v17  ;;  %v546_v32 = vadd.f32 0.4994258, %v545_v22  ;;  %v568_v33 = vmul.f32 2.1237322e-06, %v1099_v24  ;;  %v496_v36 = vmul.f32 %v495_v25, %v1026_v56 }
 0x10a   : > { %860 = vrcp.f32 %v1090_v18  ;;  %v534_v37 = vmul.f32 %v533_v26, %v1028_v57  ;;  %v579_v52 = vmul.f32 3.8918573e-05, %v1099_v24  ;;  %v1118_v38 = vmin.f32 %v606_v27, 16.0 }
 0x10b   : > { %v417_v47 = vadd.f32 1.1283791, %v416_v30  ;;  %v547_v53 = vmul.f32 %v546_v32, %v1028_v57  ;;  %v569_v49 = vadd.f32 0.00028619796, %v568_v33  ;;  %v1126_v54 = vmul.f32 0.5, %v989_v39 }
 0x10c   : > { %v1129_v56 = vmul.f32 0.5, %v992_v40  ;;  %v1132_v58 = vmul.f32 0.5, %v995_v41  ;;  %v1135_v59 = vmul.f32 0.70710677, %v1106_v28  ;;  %v457_v62 = vadd.f32 1.1283791, %v456_v31 }
 0x10d   : > { %v1139_v1 = vadd.f32 1.0, %v547_v53  ;;  %v570_v2 = vmul.f32 %v569_v49, %v1099_v24  ;;  %v580_v3 = vadd.f32 0.001143296, %v579_v52  ;;  %v535_v40 = vadd.f32 0.18741608, %v534_v37 }
 0x10e   : > { %v1113_v35 = vpop.eup %856  ;;  %v646_v41 = vmul.f32 %v1109_v55, %v1109_v55  ;;  %v1147_v60 = vmul.f32 %v417_v47, %v1001_v43  ;;  %v497_v51 = vadd.f32 1.1283791, %v496_v36  ;;  %v608_v5 = vmul.f32 2.1237322e-06, %v1118_v38 }
 0x10f   : > { %v1120_v34 = vpop.eup %858  ;;  %v430_v48 = vmul.f32 %v1113_v35, %v1084_v15  ;;  %862 = vrcp.f32 %v1139_v1  ;;  %vm434_vm8 = vweird.f32 %v1084_v15  ;;  %v438_v6 = vand.u32 2147483647, %v1084_v15 }
 0x110   : > { %v1137_v61 = vpop.eup %860  ;;  %v470_v39 = vmul.f32 %v1120_v34, %v1088_v17  ;;  %v440_v7 = vand.u32 2147483648, %v1084_v15  ;;  %v1157_v9 = vmul.f32 %v457_v62, %v1004_v44  ;;  %v478_v43 = vand.u32 2147483647, %v1088_v17 }
 0x111   : > { %v431_v4 = vsub.f32 1.0, %v430_v48  ;;  %v510_v8 = vmul.f32 %v1137_v61, %v1090_v18  ;;  %v571_v10 = vadd.f32 0.0036580483, %v570_v2  ;;  %v581_v11 = vmul.f32 %v580_v3, %v1099_v24 }
 0x112   : > { %v471_v13 = vsub.f32 1.0, %v470_v39  ;;  %v480_v0 = vand.u32 2147483648, %v1088_v17  ;;  %v536_v29 = vmul.f32 %v535_v40, %v1028_v57  ;;  %v1165_v16 = vmul.f32 %v497_v51, %v1007_v45 }
 0x113   : > { %v432_v12 = vmul.f32 %v1113_v35, %v431_v4  ;;  %v520_v19 = vand.u32 2147483648, %v1090_v18  ;;  %v582_v21 = vadd.f32 0.014752088, %v581_v11  ;;  %v609_v44 = vadd.f32 0.00028619796, %v608_v5 }
 0x114   : > { %v441_v22 = vor.u32 1.1754944e-38, %v440_v7  ;;  %v511_v25 = vsub.f32 1.0, %v510_v8  ;;  %v518_v26 = vand.u32 2147483647, %v1090_v18  ;;  %v1169_v27 = vmin.f32 %v646_v41, 16.0 }
 0x115   : > { %v1171_v30 = vpop.eup %862  ;;  %vm435_vm9 = vweird.f32 %v1113_v35  ;;  %vm1174_vm10 = vcmp.eq.f32.partialorder %v438_v6, 8.507059e+37  ;;  %vm474_vm11 = vweird.f32 %v1088_v17  ;;  %v572_v45 = vmul.f32 %v571_v10, %v1099_v24 }
 0x116   : > { %v583_v57 = vmul.f32 %v582_v21, %v1099_v24  ;;  %v619_v32 = vmul.f32 3.8918573e-05, %v1118_v38  ;;  %v433_v33 = vadd.f32 %v1113_v35, %v432_v12  ;;  %v472_v36 = vmul.f32 %v1120_v34, %v471_v13  ;;  %vm1195_vm15 = vmor %vm434_vm8, %vm435_vm9 }
 0x117   : > { %v537_v37 = vadd.f32 1.1283791, %v536_v29  ;;  %v550_v52 = vmul.f32 %v1171_v30, %v1139_v1  ;;  %v481_v47 = vor.u32 1.1754944e-38, %v480_v0  ;;  %vm514_vm12 = vweird.f32 %v1090_v18 }
 0x118   : > { %v521_v48 = vor.u32 1.1754944e-38, %v520_v19  ;;  %v584_v53 = vadd.f32 0.112945676, %v583_v57  ;;  %v610_v49 = vmul.f32 %v609_v44, %v1118_v38  ;;  %vm475_vm13 = vweird.f32 %v1120_v34 }
 0x119   : > { %v512_v62 = vmul.f32 %v1137_v61, %v511_v25  ;;  %vm515_vm14 = vweird.f32 %v1137_v61  ;;  %v551_v2 = vsub.f32 1.0, %v550_v52  ;;  %v573_v4 = vadd.f32 0.05243302, %v572_v45  ;;  %vm1231_vm4 = vmor %vm474_vm11, %vm475_vm13 }
 0x11a   : > { %v585_v39 = vmul.f32 %v584_v53, %v1099_v24  ;;  %v620_v40 = vadd.f32 0.001143296, %v619_v32  ;;  %v648_v41 = vmul.f32 2.1237322e-06, %v1169_v27  ;;  %v437_v51 = vsel %vm1195_vm15, %v1113_v35, %v433_v33  ;;  %vm1250_vm6 = vmor %vm514_vm12, %vm515_vm14 }
 0x11b   : > { %v473_v5 = vadd.f32 %v1120_v34, %v472_v36  ;;  %vm1205_vm0 = vcmp.eq.f32.partialorder %v478_v43, 8.507059e+37  ;;  %v1210_v15 = vmul.f32 %v537_v37, %v1010_v46  ;;  %v659_v7 = vmul.f32 3.8918573e-05, %v1169_v27 }
 0x11c   : > { %vm1213_vm1 = vcmp.eq.f32.partialorder %v518_v26, 8.507059e+37  ;;  %v586_v10 = vadd.f32 0.4994258, %v585_v39  ;;  %v611_v11 = vadd.f32 0.0036580483, %v610_v49  ;;  %v621_v12 = vmul.f32 %v620_v40, %v1118_v38 }
 0x11d   : > { %v649_v35 = vadd.f32 0.00028619796, %v648_v41  ;;  %v513_v13 = vadd.f32 %v1137_v61, %v512_v62  ;;  %v552_v43 = vmul.f32 %v1171_v30, %v551_v2  ;;  %v660_v0 = vadd.f32 0.001143296, %v659_v7 }
 0x11e   : > { %v686_v46 = vmul.f32 %v1135_v59, %v1135_v59  ;;  %v574_v29 = vmul.f32 %v573_v4, %v1099_v24  ;;  %v587_v19 = vmul.f32 %v586_v10, %v1099_v24  ;;  %v622_v21 = vadd.f32 0.014752088, %v621_v12 }
 0x11f   : > { %v650_v44 = vmul.f32 %v649_v35, %v1169_v27  ;;  %v442_v25 = vsel %vm1174_vm10, %v441_v22, %v437_v51  ;;  %vm554_vm5 = vweird.f32 %v1139_v1  ;;  %v560_v45 = vand.u32 2147483648, %v1139_v1 }
 0x120   : > { %v661_v57 = vmul.f32 %v660_v0, %v1169_v27  ;;  %v477_v32 = vsel %vm1231_vm4, %v1120_v34, %v473_v5  ;;  %v1241_v31 = vadd.f32 1.0, %v587_v19  ;;  %v623_v22 = vmul.f32 %v622_v21, %v1118_v38 }
 0x121   : > { %v1244_v33 = vmin.f32 %v686_v46, 16.0  ;;  %v553_v36 = vadd.f32 %v1171_v30, %v552_v43  ;;  %vm555_vm7 = vweird.f32 %v1171_v30  ;;  %v651_v37 = vadd.f32 0.0036580483, %v650_v44 }
 0x122   : > { %v662_v34 = vadd.f32 0.014752088, %v661_v57  ;;  %v517_v52 = vsel %vm1250_vm6, %v1137_v61, %v513_v13  ;;  %v575_v53 = vadd.f32 0.18741608, %v574_v29  ;;  %864 = vrcp.f32 %v1241_v31  ;;  %vm1267_vm8 = vmor %vm554_vm5, %vm555_vm7 }
 0x123   : > { %v612_v49 = vmul.f32 %v611_v11, %v1118_v38  ;;  %v443_v18 = vmul.f32 %v442_v25, %v1147_v60  ;;  %v558_v62 = vand.u32 2147483647, %v1139_v1  ;;  %v561_v2 = vor.u32 1.1754944e-38, %v560_v45 }
 0x124   : > { %v624_v3 = vadd.f32 0.112945676, %v623_v22  ;;  %v482_v4 = vsel %vm1205_vm0, %v481_v47, %v477_v32  ;;  %v652_v61 = vmul.f32 %v651_v37, %v1169_v27  ;;  %v663_v40 = vmul.f32 %v662_v34, %v1169_v27 }
 0x125   : > { %v688_v41 = vmul.f32 2.1237322e-06, %v1244_v33  ;;  %v522_v60 = vsel %vm1213_vm1, %v521_v48, %v517_v52  ;;  %v557_v51 = vsel %vm1267_vm8, %v1171_v30, %v553_v36  ;;  %v699_v1 = vmul.f32 3.8918573e-05, %v1244_v33 }
 0x126   : > { %v625_v47 = vmul.f32 %v624_v3, %v1118_v38  ;;  %v576_v5 = vmul.f32 %v575_v53, %v1099_v24  ;;  %v613_v6 = vadd.f32 0.05243302, %v612_v49  ;;  %v664_v7 = vadd.f32 0.112945676, %v663_v40 }
 0x127   : > { %v689_v10 = vadd.f32 0.00028619796, %v688_v41  ;;  %v483_v11 = vmul.f32 %v482_v4, %v1157_v9  ;;  %vm559_vm9 = vcmp.eq.f32.partialorder %v558_v62, 8.507059e+37  ;;  %v700_v35 = vadd.f32 0.001143296, %v699_v1 }
 0x128   : > { %v626_v12 = vadd.f32 0.4994258, %v625_v47  ;;  %v865_v8 = vpop.eup %864  ;;  %v823_v48 = vclamps-f32 %v443_v18, 1.0  ;;  %v562_v13 = vsel %vm559_vm9, %v561_v2, %v557_v51  ;;  %v653_v43 = vadd.f32 0.05243302, %v652_v61 }
 0x129   : > { %v665_v30 = vmul.f32 %v664_v7, %v1169_v27  ;;  %v523_v0 = vmul.f32 %v522_v60, %v1165_v16  ;;  %v590_v46 = vmul.f32 %v865_v8, %v1241_v31  ;;  %v690_v29 = vmul.f32 %v689_v10, %v1244_v33 }
 0x12a   : > { %v627_v24 = vmul.f32 %v626_v12, %v1118_v38  ;;  %v577_v19 = vadd.f32 1.1283791, %v576_v5  ;;  %v614_v9 = vmul.f32 %v613_v6, %v1118_v38  ;;  %v701_v44 = vmul.f32 %v700_v35, %v1244_v33 }
 0x12b   : > { %v666_v21 = vadd.f32 0.4994258, %v665_v30  ;;  %v563_v25 = vmul.f32 %v562_v13, %v1210_v15  ;;  %v591_v26 = vsub.f32 1.0, %v590_v46  ;;  %v598_v45 = vand.u32 2147483647, %v1241_v31 }
 0x12c   : > { %v1292_v57 = vadd.f32 1.0, %v627_v24  ;;  %v600_v16 = vand.u32 2147483648, %v1241_v31  ;;  %v654_v32 = vmul.f32 %v653_v43, %v1169_v27  ;;  %v702_v17 = vadd.f32 0.014752088, %v701_v44 }
 0x12d   : > { %v667_v22 = vmul.f32 %v666_v21, %v1169_v27  ;;  %v592_v36 = vmul.f32 %v865_v8, %v591_v26  ;;  %vm595_vm10 = vweird.f32 %v865_v8  ;;  %v691_v37 = vadd.f32 0.0036580483, %v690_v29 }
 0x12e   : > { %866 = vrcp.f32 %v1292_v57  ;;  %v824_v34 = vclamps-f32 %v483_v11, 1.0  ;;  %v825_v52 = vclamps-f32 %v523_v0, 1.0  ;;  %v615_v15 = vadd.f32 0.18741608, %v614_v9 }
 0x12f   : > { %v1298_v53 = vadd.f32 1.0, %v667_v22  ;;  %v578_v49 = vmul.f32 %v577_v19, %v1062_v50  ;;  %v593_v18 = vadd.f32 %v865_v8, %v592_v36  ;;  %vm594_vm11 = vweird.f32 %v1241_v31 }
 0x130   : > { %v703_v62 = vmul.f32 %v702_v17, %v1244_v33  ;;  %v826_v2 = vclamps-f32 %v563_v25, 1.0  ;;  %vm596_vm12 = vmor %vm594_vm11, %vm595_vm10  ;;  %v601_v3 = vor.u32 1.1754944e-38, %v600_v16  ;;  %v655_v4 = vadd.f32 0.18741608, %v654_v32 }
 0x131   : > { %868 = vrcp.f32 %v1298_v53  ;;  %v597_v39 = vsel %vm596_vm12, %v865_v8, %v593_v18  ;;  %vm599_vm13 = vcmp.eq.f32.partialorder %v598_v45, 8.507059e+37  ;;  %v692_v61 = vmul.f32 %v691_v37, %v1244_v33 }
 0x132   : > { %v726_v40 = vadd.f32 1.0, %v823_v48  ;;  %v602_v41 = vsel %vm599_vm13, %v601_v3, %v597_v39  ;;  %v704_v60 = vadd.f32 0.112945676, %v703_v62  ;;  %v727_v50 = vadd.f32 1.0, %v824_v34 }
 0x133   : > { %v728_v51 = vadd.f32 1.0, %v825_v52  ;;  %v393_v31 = vmul.f32 0.5, %v998_v42  ;;  %v394_v1 = vmul.f32 0.5, %v1048_v23  ;;  %v603_v5 = vmul.f32 %v602_v41, %v578_v49 }
 0x134   : > { %v867_v47 = vpop.eup %866  ;;  %v616_v6 = vmul.f32 %v615_v15, %v1118_v38  ;;  %v656_v10 = vmul.f32 %v655_v4, %v1169_v27  ;;  %v705_v11 = vmul.f32 %v704_v60, %v1244_v33  ;;  %v729_v12 = vadd.f32 1.0, %v826_v2 }
 0x135   : > { %v630_v7 = vmul.f32 %v867_v47, %v1292_v57  ;;  %v827_v42 = vclamps-f32 %v603_v5, 1.0  ;;  %v693_v35 = vadd.f32 0.05243302, %v692_v61  ;;  %v734_v23 = vmul.f32 %v726_v40, %v1126_v54 }
 0x136   : > { %v735_v38 = vmul.f32 %v727_v50, %v1129_v56  ;;  %v706_v13 = vadd.f32 0.4994258, %v705_v11  ;;  %v736_v43 = vmul.f32 %v728_v51, %v1132_v58  ;;  %v737_v30 = vmul.f32 %v729_v12, %v393_v31 }
 0x137   : > { %v869_v8 = vpop.eup %868  ;;  %v631_v48 = vsub.f32 1.0, %v630_v7  ;;  %v617_v0 = vadd.f32 1.1283791, %v616_v6  ;;  %v640_v27 = vand.u32 2147483648, %v1292_v57  ;;  %v730_v24 = vadd.f32 1.0, %v827_v42  ;;  %742 = vst.msk [vmem:[%s1313_s5] sm:$0xff] %vm278_vm2, %v734_v23 }
 0x138   : > { %v670_v46 = vmul.f32 %v869_v8, %v1298_v53  ;;  %vm635_vm14 = vweird.f32 %v867_v47  ;;  %v638_v56 = vand.u32 2147483647, %v1292_v57  ;;  %v707_v29 = vmul.f32 %v706_v13, %v1244_v33  ;;  %743 = vst.msk [vmem:[%s1313_s5 + $0x8] sm:$0xff] %vm278_vm2, %v735_v38 }
 0x139   : > { %v632_v54 = vmul.f32 %v867_v47, %v631_v48  ;;  %vm634_vm15 = vweird.f32 %v1292_v57  ;;  %v657_v58 = vadd.f32 1.1283791, %v656_v10  ;;  %v738_v9 = vmul.f32 %v730_v24, %v394_v1  ;;  %744 = vst.msk [vmem:[%s1313_s5 + $0x10] sm:$0xff] %vm278_vm2, %v736_v43 }
 0x13a   : > { %v671_v19 = vsub.f32 1.0, %v670_v46  ;;  %v680_v44 = vand.u32 2147483648, %v1298_v53  ;;  %v694_v25 = vmul.f32 %v693_v35, %v1244_v33  ;;  %v708_v26 = vadd.f32 1.0, %v707_v29  ;;  %745 = vst.msk [vmem:[%s1313_s5 + $0x18] sm:$0xff] %vm278_vm2, %v737_v30  ;;  %vm636_vm0 = vmor %vm634_vm15, %vm635_vm14 }
 0x13b   : > { %v633_v21 = vadd.f32 %v867_v47, %v632_v54  ;;  %v641_v45 = vor.u32 1.1754944e-38, %v640_v27  ;;  %vm675_vm1 = vweird.f32 %v869_v8  ;;  %v678_v32 = vand.u32 2147483647, %v1298_v53  ;;  %746 = vst.msk [vmem:[%s1313_s5 + $0x20] sm:$0xff] %vm278_vm2, %v738_v9 }
 0x13c   : > { %v672_v16 = vmul.f32 %v869_v8, %v671_v19  ;;  %v618_v57 = vmul.f32 %v617_v0, %v1082_v14  ;;  %vm639_vm4 = vcmp.eq.f32.partialorder %v638_v56, 8.507059e+37  ;;  %870 = vrcp.f32 %v708_v26 }
 0x13d   : > { %v637_v22 = vsel %vm636_vm0, %v867_v47, %v633_v21  ;;  %vm674_vm5 = vweird.f32 %v1298_v53  ;;  %v681_v34 = vor.u32 1.1754944e-38, %v680_v44  ;;  %v695_v52 = vadd.f32 0.18741608, %v694_v25 }
 0x13e   : > { %v642_v17 = vsel %vm639_vm4, %v641_v45, %v637_v22  ;;  %v673_v36 = vadd.f32 %v869_v8, %v672_v16  ;;  %vm676_vm6 = vmor %vm674_vm5, %vm675_vm1  ;;  %v658_v15 = vmul.f32 %v657_v58, %v1109_v55  ;;  %vm679_vm7 = vcmp.eq.f32.partialorder %v678_v32, 8.507059e+37 }
 0x13f   : > { %v643_v37 = vmul.f32 %v642_v17, %v618_v57  ;;  %v395_v3 = vmul.f32 0.5, %v1068_v63  ;;  %v696_v4 = vmul.f32 %v695_v52, %v1244_v33  ;;  %v396_v41 = vmul.f32 0.5, %v1094_v20 }
 0x140   : > { %v677_v49 = vsel %vm676_vm6, %v869_v8, %v673_v36  ;;  %v720_v51 = vand.u32 2147483648, %v708_v26  ;;  %v718_v31 = vand.u32 2147483647, %v708_v26  ;;  %vm714_vm9 = vweird.f32 %v708_v26 }
 0x141   : > { %v828_v18 = vclamps-f32 %v643_v37, 1.0  ;;  %v682_v62 = vsel %vm679_vm7, %v681_v34, %v677_v49  ;;  %v697_v50 = vadd.f32 1.1283791, %v696_v4  ;;  %v397_v11 = vmul.f32 0.5, %v1106_v28 }
 0x142   : > { %v683_v2 = vmul.f32 %v682_v62, %v658_v15  ;;  %v871_v14 = vpop.eup %870  ;;  %v721_v33 = vor.u32 1.1754944e-38, %v720_v51  ;;  %vm719_vm11 = vcmp.eq.f32.partialorder %v718_v31, 8.507059e+37 }
 0x143   : > { %v731_v39 = vadd.f32 1.0, %v828_v18  ;;  %v710_v61 = vmul.f32 %v871_v14, %v708_v26  ;;  %vm715_vm8 = vweird.f32 %v871_v14  ;;  %v698_v5 = vmul.f32 %v697_v50, %v1135_v59 }
 0x144   : > { %v829_v53 = vclamps-f32 %v683_v2, 1.0  ;;  %vm716_vm10 = vmor %vm714_vm9, %vm715_vm8 }
 0x145   : > { %v739_v40 = vmul.f32 %v731_v39, %v395_v3  ;;  %v711_v60 = vsub.f32 1.0, %v710_v61 }
 0x146   : > { %v732_v55 = vadd.f32 1.0, %v829_v53 }
 0x147   : > { %747 = vst.msk [vmem:[%s1313_s5 + $0x28] sm:$0xff] %vm278_vm2, %v739_v40  ;;  %v712_v47 = vmul.f32 %v871_v14, %v711_v60 }
 0x148   : > { %v740_v63 = vmul.f32 %v732_v55, %v396_v41 }
 0x149   : > { %v713_v1 = vadd.f32 %v871_v14, %v712_v47 }
 0x14a   : > { %748 = vst.msk [vmem:[%s1313_s5 + $0x30] sm:$0xff] %vm278_vm2, %v740_v63 }
 0x14b   : > { %v717_v20 = vsel %vm716_vm10, %v871_v14, %v713_v1 }
 0x14c   : > { %v722_v6 = vsel %vm719_vm11, %v721_v33, %v717_v20 }
 0x14d   : > { %v723_v7 = vmul.f32 %v722_v6, %v698_v5 }
 0x14f   : > { %v830_v10 = vclamps-f32 %v723_v7, 1.0 }
 0x151   : > { %v733_v12 = vadd.f32 1.0, %v830_v10 }
 0x153   : > { %v741_v42 = vmul.f32 %v733_v12, %v397_v11 }
 0x155   : > { %749 = vst.msk [vmem:[%s1313_s5 + $0x38] sm:$0x7f] %vm292_vm3, %v741_v42 }
 0x156 PF: > { %s14_s15 = sadd.s32 1, %s878_s15  }
 0x157   : > { %p11_p4 = scmp.ge.s32.totalorder %s14_s15, 4  }
 0x159   :  { %13 = sbr.rel (!%p11_p4) target bundleno = 1 (0x1), region = 66 }

// kernel: aves_embedding_forward.7
= control target key start
LH: loop header
LB: loop body
LE: loop exit
PB: predicated region body
PF: predicated region fallthrough
CT: control target
= control target key end

     0   :  { %s519_s9 = smov 0   ;;  %s668_s0 = inlined_call_operand.vmem [shape: f32[2,30,64], index: 0, kind: input, shape index: {}]   ;;  %s669_s1 = inlined_call_operand.vmem [shape: f32[64,16], index: 1, kind: input, shape index: {}]   ;;  %s670_s2 = inlined_call_operand.vmem [shape: f32[2,30,16], index: 2, kind: output, shape index: {}]  }
   0x1 LB: > { %s435_s10 = sadd.s32 4294967295, %s502_s9   ;;  %p439_p0 = scmp.ge.s32.totalorder %s502_s9, 1  ;;  %s502_s9 = sphi %s519_s9, %s12_s9  }
   0x2   : > { %p112_p1 = scmp.lt.s32.totalorder %s502_s9, 3 }
   0x4   : > { %p113_p2 = pnand %p439_p0, %p112_p1 }
   0x5   : > { %p134_p3 = scmp.lt.s32.totalorder (!%p113_p2), %s435_s10, 1 }
   0x6   : > { %116 = sbr.rel (%p113_p2) target bundleno = 215 (0xd7), region = 28 }
   0xb   : > { %v155_v0 = vld [vmem:[%s669_s1 + $0x38] sm:$0xff]  ;;  %v154_v1 = vld [vmem:[%s669_s1 + $0x30] sm:$0xff]  ;;  %v153_v2 = vld [vmem:[%s669_s1 + $0x28] sm:$0xff]  ;;  %s672_s10 = smov (!%p134_p3, %s435_s10), 1  ;;  %vm156_vm0 = vcmask 523264   ;;  %vm374_vm10 = vcmask 130048  }
   0xc   : > { %177 = vmatpush.msra.mxu0 %v155_v0  ;;  %456 = vmatpush.msra.mxu1 %v155_v0  ;;  %v152_v3 = vld [vmem:[%s669_s1 + $0x20] sm:$0xff]  ;;  %v151_v4 = vld [vmem:[%s669_s1 + $0x18] sm:$0xff]  ;;  %v150_v5 = vld [vmem:[%s669_s1 + $0x10] sm:$0xff]  ;;  %s454_s23 = sshll.u32 %s672_s10, 5 }
   0xd   : > { %457 = vmatpush.msra.mxu2 %v155_v0  ;;  %458 = vmatpush.msra.mxu3 %v155_v0  ;;  %v149_v6 = vld [vmem:[%s669_s1 + $0x8] sm:$0xff]  ;;  %s138_s28 = scalar_lea.vmem %s668_s0, %s454_s23  ;;  %v148_v7 = vld [vmem:[%s669_s1] sm:$0xff]  ;;  %s650_s5 = scalar_lea.vmem %s670_s2, %s454_s23 }
   0xe   : > { %178 = vmatpush.msra.mxu0 %v154_v1  ;;  %459 = vmatpush.msra.mxu1 %v154_v1  ;;  %v144_v8 = vld [vmem:[%s138_s28] sm:$0xff]  ;;  %v145_v9 = vld [vmem:[%s138_s28 + $0x8] sm:$0xff]  ;;  %v146_v10 = vld [vmem:[%s138_s28 + $0x10] sm:$0xff] }
   0xf   : > { %460 = vmatpush.msra.mxu2 %v154_v1  ;;  %461 = vmatpush.msra.mxu3 %v154_v1  ;;  %v147_v11 = vld [vmem:[%s138_s28 + $0x18] sm:$0x3f] }
  0x10   : > { %179 = vmatpush.msra.mxu0 %v153_v2  ;;  %462 = vmatpush.msra.mxu1 %v153_v2 }
  0x11   : > { %463 = vmatpush.msra.mxu2 %v153_v2  ;;  %464 = vmatpush.msra.mxu3 %v153_v2 }
  0x12   : > { %180 = vmatpush.msra.mxu0 %v152_v3  ;;  %465 = vmatpush.msra.mxu1 %v152_v3 }
  0x13   : > { %466 = vmatpush.msra.mxu2 %v152_v3  ;;  %467 = vmatpush.msra.mxu3 %v152_v3 }
  0x14   : > { %181 = vmatpush.msra.mxu0 %v151_v4  ;;  %468 = vmatpush.msra.mxu1 %v151_v4 }
  0x15   : > { %469 = vmatpush.msra.mxu2 %v151_v4  ;;  %470 = vmatpush.msra.mxu3 %v151_v4 }
  0x16   : > { %182 = vmatpush.msra.mxu0 %v150_v5  ;;  %471 = vmatpush.msra.mxu1 %v150_v5 }
  0x17   : > { %472 = vmatpush.msra.mxu2 %v150_v5  ;;  %473 = vmatpush.msra.mxu3 %v150_v5 }
  0x18   : > { %183 = vmatpush.msra.mxu0 %v149_v6  ;;  %474 = vmatpush.msra.mxu1 %v149_v6 }
  0x19   : > { %475 = vmatpush.msra.mxu2 %v149_v6  ;;  %476 = vmatpush.msra.mxu3 %v149_v6 }
  0x1a   : > { %184 = vmatpush.msra.mxu0 %v148_v7  ;;  %477 = vmatpush.msra.mxu1 %v148_v7 }
  0x1b   : > { %478 = vmatpush.msra.mxu2 %v148_v7  ;;  %479 = vmatpush.msra.mxu3 %v148_v7 }
  0x1c   : > { %444 = vmatmul.msk.f32.vlgmr.msra.gmra.mxu0 %vm156_vm0, %v144_v8  ;;  %445 = vmatmul.msk.f32.vlgmr.msra.gmra.mxu1 %vm156_vm0, %v145_v9 }
  0x1d   : > { %446 = vmatmul.msk.f32.vlgmr.msra.gmra.mxu2 %vm156_vm0, %v146_v10  ;;  %447 = vmatmul.msk.f32.vlgmr.msra.gmra.mxu3 %vm156_vm0, %v147_v11 }
  0x99   : > { %v559_v12 = vpop.f32.mrf.mxu0  ;;  %v561_v13 = vpop.f32.mrf.mxu1 }
  0x9a   : > { %v564_v14 = vmul.f32 0.70710677, %v559_v12  ;;  %v567_v15 = vmul.f32 0.70710677, %v561_v13 }
  0x9c   : > { %v206_v16 = vmul.f32 %v564_v14, %v564_v14  ;;  %v246_v17 = vmul.f32 %v567_v15, %v567_v15 }
  0x9e   : > { %v573_v18 = vmin.f32 %v206_v16, 16.0  ;;  %v575_v19 = vmin.f32 %v246_v17, 16.0 }
  0xa0   : > { %v208_v20 = vmul.f32 2.1237322e-06, %v573_v18  ;;  %v219_v21 = vmul.f32 3.8918573e-05, %v573_v18  ;;  %v248_v22 = vmul.f32 2.1237322e-06, %v575_v19  ;;  %v580_v23 = vpop.f32.mrf.mxu2  ;;  %v582_v24 = vpop.f32.mrf.mxu3 }
  0xa1   : > { %v259_v25 = vmul.f32 3.8918573e-05, %v575_v19  ;;  %v586_v26 = vmul.f32 0.70710677, %v580_v23  ;;  %v591_v32 = vmul.f32 0.70710677, %v582_v24 }
  0xa2   : > { %v209_v27 = vadd.f32 0.00028619796, %v208_v20  ;;  %v220_v28 = vadd.f32 0.001143296, %v219_v21  ;;  %v249_v29 = vadd.f32 0.00028619796, %v248_v22 }
  0xa3   : > { %v260_v30 = vadd.f32 0.001143296, %v259_v25  ;;  %v286_v31 = vmul.f32 %v586_v26, %v586_v26  ;;  %v326_v38 = vmul.f32 %v591_v32, %v591_v32 }
  0xa4   : > { %v210_v33 = vmul.f32 %v209_v27, %v573_v18  ;;  %v221_v34 = vmul.f32 %v220_v28, %v573_v18  ;;  %v250_v35 = vmul.f32 %v249_v29, %v575_v19 }
  0xa5   : > { %v261_v36 = vmul.f32 %v260_v30, %v575_v19  ;;  %v597_v37 = vmin.f32 %v286_v31, 16.0  ;;  %v607_v51 = vmin.f32 %v326_v38, 16.0 }
  0xa6   : > { %v211_v39 = vadd.f32 0.0036580483, %v210_v33  ;;  %v222_v40 = vadd.f32 0.014752088, %v221_v34  ;;  %v251_v41 = vadd.f32 0.0036580483, %v250_v35 }
  0xa7   : > { %v262_v42 = vadd.f32 0.014752088, %v261_v36  ;;  %v288_v43 = vmul.f32 2.1237322e-06, %v597_v37  ;;  %v299_v44 = vmul.f32 3.8918573e-05, %v597_v37 }
  0xa8   : > { %v212_v45 = vmul.f32 %v211_v39, %v573_v18  ;;  %v223_v46 = vmul.f32 %v222_v40, %v573_v18  ;;  %v252_v47 = vmul.f32 %v251_v41, %v575_v19  ;;  %v328_v62 = vmul.f32 2.1237322e-06, %v607_v51 }
  0xa9   : > { %v263_v48 = vmul.f32 %v262_v42, %v575_v19  ;;  %v289_v49 = vadd.f32 0.00028619796, %v288_v43  ;;  %v300_v50 = vadd.f32 0.001143296, %v299_v44  ;;  %v339_v63 = vmul.f32 3.8918573e-05, %v607_v51 }
  0xaa   : > { %v213_v52 = vadd.f32 0.05243302, %v212_v45  ;;  %v224_v53 = vadd.f32 0.112945676, %v223_v46  ;;  %v253_v59 = vadd.f32 0.05243302, %v252_v47 }
  0xab   : > { %v264_v54 = vadd.f32 0.112945676, %v263_v48  ;;  %v290_v55 = vmul.f32 %v289_v49, %v597_v37  ;;  %v301_v56 = vmul.f32 %v300_v50, %v597_v37  ;;  %v340_v6 = vadd.f32 0.001143296, %v339_v63 }
  0xac   : > { %v214_v57 = vmul.f32 %v213_v52, %v573_v18  ;;  %v225_v58 = vmul.f32 %v224_v53, %v573_v18  ;;  %v254_v5 = vmul.f32 %v253_v59, %v575_v19  ;;  %v329_v10 = vadd.f32 0.00028619796, %v328_v62 }
  0xad   : > { %v265_v60 = vmul.f32 %v264_v54, %v575_v19  ;;  %v302_v61 = vadd.f32 0.014752088, %v301_v56  ;;  %v291_v2 = vadd.f32 0.0036580483, %v290_v55  ;;  %v341_v21 = vmul.f32 %v340_v6, %v607_v51 }
  0xae   : > { %v226_v0 = vadd.f32 0.4994258, %v225_v58  ;;  %v215_v7 = vadd.f32 0.18741608, %v214_v57  ;;  %v255_v22 = vadd.f32 0.18741608, %v254_v5  ;;  %v330_v27 = vmul.f32 %v329_v10, %v607_v51 }
  0xaf   : > { %v266_v1 = vadd.f32 0.4994258, %v265_v60  ;;  %v303_v3 = vmul.f32 %v302_v61, %v597_v37  ;;  %v292_v17 = vmul.f32 %v291_v2, %v597_v37  ;;  %v342_v30 = vadd.f32 0.014752088, %v341_v21 }
  0xb0   : > { %v227_v4 = vmul.f32 %v226_v0, %v573_v18  ;;  %v216_v25 = vmul.f32 %v215_v7, %v573_v18  ;;  %v256_v31 = vmul.f32 %v255_v22, %v575_v19  ;;  %v331_v35 = vadd.f32 0.0036580483, %v330_v27 }
  0xb1   : > { %v267_v8 = vmul.f32 %v266_v1, %v575_v19  ;;  %v304_v9 = vadd.f32 0.112945676, %v303_v3  ;;  %v293_v28 = vadd.f32 0.05243302, %v292_v17  ;;  %v343_v36 = vmul.f32 %v342_v30, %v607_v51 }
  0xb2   : > { %v228_v11 = vadd.f32 1.0, %v227_v4  ;;  %v217_v33 = vadd.f32 1.1283791, %v216_v25  ;;  %v257_v42 = vadd.f32 1.1283791, %v256_v31  ;;  %v332_v19 = vmul.f32 %v331_v35, %v607_v51 }
  0xb3   : > { %v268_v16 = vadd.f32 1.0, %v267_v8  ;;  %v305_v20 = vmul.f32 %v304_v9, %v597_v37  ;;  %v294_v41 = vmul.f32 %v293_v28, %v597_v37  ;;  %v344_v44 = vadd.f32 0.112945676, %v343_v36 }
  0xb4   : > { %488 = vrcp.f32 %v228_v11  ;;  %v218_v45 = vmul.f32 %v217_v33, %v564_v14  ;;  %v238_v47 = vand.u32 2147483647, %v228_v11  ;;  %v240_v48 = vand.u32 2147483648, %v228_v11 }
  0xb5   : > { %490 = vrcp.f32 %v268_v16  ;;  %v306_v29 = vadd.f32 0.4994258, %v305_v20  ;;  %v345_v50 = vmul.f32 %v344_v44, %v607_v51  ;;  %v280_v53 = vand.u32 2147483648, %v268_v16 }
  0xb6   : > { %v295_v54 = vadd.f32 0.18741608, %v294_v41  ;;  %v278_v56 = vand.u32 2147483647, %v268_v16  ;;  %vm234_vm3 = vweird.f32 %v228_v11  ;;  %v258_v14 = vmul.f32 %v257_v42, %v567_v15 }
  0xb7   : > { %v307_v34 = vmul.f32 %v306_v29, %v597_v37  ;;  %v346_v57 = vadd.f32 0.4994258, %v345_v50  ;;  %v333_v59 = vadd.f32 0.05243302, %v332_v19  ;;  %v241_v60 = vor.u32 1.1754944e-38, %v240_v48 }
  0xb8   : > { %vm274_vm5 = vweird.f32 %v268_v16  ;;  %vm239_vm6 = vcmp.eq.f32.partialorder %v238_v47, 8.507059e+37  ;;  %v281_v1 = vor.u32 1.1754944e-38, %v280_v53  ;;  %v296_v2 = vmul.f32 %v295_v54, %v597_v37 }
  0xb9   : > { %v629_v18 = vadd.f32 1.0, %v307_v34  ;;  %v347_v62 = vmul.f32 %v346_v57, %v607_v51  ;;  %vm279_vm8 = vcmp.eq.f32.partialorder %v278_v56, 8.507059e+37  ;;  %v334_v7 = vmul.f32 %v333_v59, %v607_v51 }
  0xba   : > { %v489_v38 = vpop.eup %488  ;;  %v198_v22 = vmul.f32 0.5, %v559_v12  ;;  %v199_v27 = vmul.f32 0.5, %v561_v13  ;;  %v200_v42 = vmul.f32 0.5, %v580_v23  ;;  %v201_v53 = vmul.f32 0.5, %v582_v24 }
  0xbb   : > { %v491_v39 = vpop.eup %490  ;;  %v230_v40 = vmul.f32 %v489_v38, %v228_v11  ;;  %492 = vrcp.f32 %v629_v18  ;;  %vm235_vm1 = vweird.f32 %v489_v38  ;;  %v348_v8 = vadd.f32 1.0, %v347_v62 }
  0xbc   : > { %v270_v43 = vmul.f32 %v491_v39, %v268_v16  ;;  %vm275_vm2 = vweird.f32 %v491_v39  ;;  %vm236_vm4 = vmor %vm234_vm3, %vm235_vm1  ;;  %v297_v16 = vadd.f32 1.1283791, %v296_v2  ;;  %v320_v17 = vand.u32 2147483648, %v629_v18 }
  0xbd   : > { %v231_v46 = vsub.f32 1.0, %v230_v40  ;;  %vm276_vm7 = vmor %vm274_vm5, %vm275_vm2  ;;  %494 = vrcp.f32 %v348_v8  ;;  %v318_v21 = vand.u32 2147483647, %v629_v18  ;;  %v335_v28 = vadd.f32 0.18741608, %v334_v7 }
  0xbe   : > { %v271_v49 = vsub.f32 1.0, %v270_v43  ;;  %vm314_vm11 = vweird.f32 %v629_v18  ;;  %v321_v12 = vor.u32 1.1754944e-38, %v320_v17  ;;  %v298_v13 = vmul.f32 %v297_v16, %v586_v26 }
  0xbf   : > { %v232_v52 = vmul.f32 %v489_v38, %v231_v46  ;;  %vm319_vm13 = vcmp.eq.f32.partialorder %v318_v21, 8.507059e+37  ;;  %v360_v44 = vand.u32 2147483648, %v348_v8  ;;  %v358_v46 = vand.u32 2147483647, %v348_v8 }
  0xc0   : > { %v272_v55 = vmul.f32 %v491_v39, %v271_v49  ;;  %vm354_vm15 = vweird.f32 %v348_v8  ;;  %vm378_vm2 = vcmask 128000  }
  0xc1   : > { %v233_v58 = vadd.f32 %v489_v38, %v232_v52  ;;  %v493_v63 = vpop.eup %492  ;;  %vm359_vm1 = vcmp.eq.f32.partialorder %v358_v46, 8.507059e+37 }
  0xc2   : > { %v273_v61 = vadd.f32 %v491_v39, %v272_v55  ;;  %v310_v15 = vmul.f32 %v493_v63, %v629_v18  ;;  %vm315_vm9 = vweird.f32 %v493_v63 }
  0xc3   : > { %v237_v0 = vsel %vm236_vm4, %v489_v38, %v233_v58  ;;  %vm316_vm12 = vmor %vm314_vm11, %vm315_vm9  ;;  %v495_v35 = vpop.eup %494  ;;  %v336_v38 = vmul.f32 %v335_v28, %v607_v51  ;;  %v361_v51 = vor.u32 1.1754944e-38, %v360_v44 }
  0xc4   : > { %v242_v3 = vsel %vm239_vm6, %v241_v60, %v237_v0  ;;  %v277_v4 = vsel %vm276_vm7, %v491_v39, %v273_v61  ;;  %v311_v10 = vsub.f32 1.0, %v310_v15  ;;  %v350_v40 = vmul.f32 %v495_v35, %v348_v8 }
  0xc5   : > { %v243_v5 = vmul.f32 %v242_v3, %v218_v45  ;;  %v282_v6 = vsel %vm279_vm8, %v281_v1, %v277_v4  ;;  %v337_v43 = vadd.f32 1.1283791, %v336_v38  ;;  %vm355_vm14 = vweird.f32 %v495_v35 }
  0xc6   : > { %v283_v9 = vmul.f32 %v282_v6, %v258_v14  ;;  %v312_v37 = vmul.f32 %v493_v63, %v311_v10  ;;  %v351_v18 = vsub.f32 1.0, %v350_v40  ;;  %vm356_vm0 = vmor %vm354_vm15, %vm355_vm14 }
  0xc7   : > { %v448_v11 = vclamps-f32 %v243_v5, 1.0  ;;  %v338_v48 = vmul.f32 %v337_v43, %v591_v32 }
  0xc8   : > { %v449_v20 = vclamps-f32 %v283_v9, 1.0  ;;  %v313_v30 = vadd.f32 %v493_v63, %v312_v37  ;;  %v352_v45 = vmul.f32 %v495_v35, %v351_v18 }
  0xc9   : > { %v366_v25 = vadd.f32 1.0, %v448_v11 }
  0xca   : > { %v367_v29 = vadd.f32 1.0, %v449_v20  ;;  %v317_v34 = vsel %vm316_vm12, %v493_v63, %v313_v30  ;;  %v353_v47 = vadd.f32 %v495_v35, %v352_v45 }
  0xcb   : > { %v370_v31 = vmul.f32 %v366_v25, %v198_v22  ;;  %v322_v36 = vsel %vm319_vm13, %v321_v12, %v317_v34 }
  0xcc   : > { %v371_v33 = vmul.f32 %v367_v29, %v199_v27  ;;  %v323_v39 = vmul.f32 %v322_v36, %v298_v13  ;;  %v357_v49 = vsel %vm356_vm0, %v495_v35, %v353_v47 }
  0xcd   : > { %375 = vst.msk [vmem:[%s650_s5] sm:$0xff] %vm374_vm10, %v370_v31  ;;  %v362_v50 = vsel %vm359_vm1, %v361_v51, %v357_v49 }
  0xce   : > { %376 = vst.msk [vmem:[%s650_s5 + $0x8] sm:$0xff] %vm374_vm10, %v371_v33  ;;  %v450_v41 = vclamps-f32 %v323_v39, 1.0  ;;  %v363_v23 = vmul.f32 %v362_v50, %v338_v48 }
  0xd0   : > { %v368_v26 = vadd.f32 1.0, %v450_v41  ;;  %v451_v52 = vclamps-f32 %v363_v23, 1.0 }
  0xd2   : > { %v372_v19 = vmul.f32 %v368_v26, %v200_v42  ;;  %v369_v54 = vadd.f32 1.0, %v451_v52 }
  0xd4   : > { %377 = vst.msk [vmem:[%s650_s5 + $0x10] sm:$0xff] %vm374_vm10, %v372_v19  ;;  %v373_v55 = vmul.f32 %v369_v54, %v201_v53 }
  0xd6   : > { %379 = vst.msk [vmem:[%s650_s5 + $0x18] sm:$0x3f] %vm378_vm2, %v373_v55 }
  0xd7 PF: > { %s12_s9 = sadd.s32 1, %s502_s9  }
  0xd8   : > { %p9_p4 = scmp.ge.s32.totalorder %s12_s9, 4  }
  0xda   :  { %11 = sbr.rel (!%p9_p4) target bundleno = 1 (0x1), region = 58 }

// kernel: aves_embedding_forward.8
= control target key start
LH: loop header
LB: loop body
LE: loop exit
PB: predicated region body
PF: predicated region fallthrough
CT: control target
= control target key end

     0   :  { %s391_s9 = smov 0   ;;  %s457_s0 = inlined_call_operand.vmem [shape: f32[2,14,64], index: 0, kind: input, shape index: {}]   ;;  %s458_s1 = inlined_call_operand.vmem [shape: f32[64,16], index: 1, kind: input, shape index: {}]   ;;  %s459_s2 = inlined_call_operand.vmem [shape: f32[2,14,16], index: 2, kind: output, shape index: {}]  }
   0x1 LB: > { %s331_s10 = sadd.s32 4294967295, %s374_s9   ;;  %p335_p0 = scmp.ge.s32.totalorder %s374_s9, 1  ;;  %s374_s9 = sphi %s391_s9, %s12_s9  }
   0x2   : > { %p112_p1 = scmp.lt.s32.totalorder %s374_s9, 3 }
   0x4   : > { %p113_p2 = pnand %p335_p0, %p112_p1 }
   0x5   : > { %p134_p3 = scmp.lt.s32.totalorder (!%p113_p2), %s331_s10, 1 }
   0x6   : > { %116 = sbr.rel (%p113_p2) target bundleno = 206 (0xce), region = 28 }
   0xb   : > { %v153_v0 = vld [vmem:[%s458_s1 + $0x38] sm:$0xff]  ;;  %v152_v1 = vld [vmem:[%s458_s1 + $0x30] sm:$0xff]  ;;  %v151_v2 = vld [vmem:[%s458_s1 + $0x28] sm:$0xff]  ;;  %s461_s10 = smov (!%p134_p3, %s331_s10), 1  ;;  %vm154_vm0 = vcmask 523264   ;;  %vm272_vm9 = vcmask 130048  }
   0xc   : > { %169 = vmatpush.msra.mxu0 %v153_v0  ;;  %348 = vmatpush.msra.mxu1 %v153_v0  ;;  %v150_v3 = vld [vmem:[%s458_s1 + $0x20] sm:$0xff]  ;;  %v149_v4 = vld [vmem:[%s458_s1 + $0x18] sm:$0xff]  ;;  %s346_s21 = sshll.u32 %s461_s10, 4  ;;  %v148_v5 = vld [vmem:[%s458_s1 + $0x10] sm:$0xff]  ;;  %vm274_vm10 = vcmask 128000  }
   0xd   : > { %v147_v6 = vld [vmem:[%s458_s1 + $0x8] sm:$0xff]  ;;  %s138_s28 = scalar_lea.vmem %s457_s0, %s346_s21  ;;  %v146_v7 = vld [vmem:[%s458_s1] sm:$0xff]  ;;  %s143_s5 = scalar_lea.vmem %s459_s2, %s346_s21 }
   0xe   : > { %170 = vmatpush.msra.mxu0 %v152_v1  ;;  %349 = vmatpush.msra.mxu1 %v152_v1  ;;  %v144_v8 = vld [vmem:[%s138_s28] sm:$0xff]  ;;  %v145_v9 = vld [vmem:[%s138_s28 + $0x8] sm:$0x3f] }
  0x10   : > { %171 = vmatpush.msra.mxu0 %v151_v2  ;;  %350 = vmatpush.msra.mxu1 %v151_v2 }
  0x12   : > { %172 = vmatpush.msra.mxu0 %v150_v3  ;;  %351 = vmatpush.msra.mxu1 %v150_v3 }
  0x14   : > { %173 = vmatpush.msra.mxu0 %v149_v4  ;;  %352 = vmatpush.msra.mxu1 %v149_v4 }
  0x16   : > { %174 = vmatpush.msra.mxu0 %v148_v5  ;;  %353 = vmatpush.msra.mxu1 %v148_v5 }
  0x18   : > { %175 = vmatpush.msra.mxu0 %v147_v6  ;;  %354 = vmatpush.msra.mxu1 %v147_v6 }
  0x1a   : > { %176 = vmatpush.msra.mxu0 %v146_v7  ;;  %355 = vmatpush.msra.mxu1 %v146_v7 }
  0x1b   : > { %340 = vmatmul.msk.f32.vlgmr.msra.gmra.mxu0 %vm154_vm0, %v144_v8  ;;  %341 = vmatmul.msk.f32.vlgmr.msra.gmra.mxu1 %vm154_vm0, %v145_v9 }
  0x98   : > { %v431_v10 = vpop.f32.mrf.mxu0  ;;  %v433_v11 = vpop.f32.mrf.mxu1 }
  0x99   : > { %v436_v12 = vmul.f32 0.70710677, %v431_v10  ;;  %v439_v13 = vmul.f32 0.70710677, %v433_v11 }
  0x9b   : > { %v188_v14 = vmul.f32 %v436_v12, %v436_v12  ;;  %v228_v15 = vmul.f32 %v439_v13, %v439_v13 }
  0x9d   : > { %v189_v16 = vmin.f32 %v188_v14, 16.0  ;;  %v229_v17 = vmin.f32 %v228_v15, 16.0 }
  0x9f   : > { %v190_v18 = vmul.f32 2.1237322e-06, %v189_v16  ;;  %v201_v19 = vmul.f32 3.8918573e-05, %v189_v16  ;;  %v230_v20 = vmul.f32 2.1237322e-06, %v229_v17 }
  0xa0   : > { %v241_v21 = vmul.f32 3.8918573e-05, %v229_v17 }
  0xa1   : > { %v191_v22 = vadd.f32 0.00028619796, %v190_v18  ;;  %v202_v23 = vadd.f32 0.001143296, %v201_v19  ;;  %v231_v24 = vadd.f32 0.00028619796, %v230_v20 }
  0xa2   : > { %v242_v25 = vadd.f32 0.001143296, %v241_v21 }
  0xa3   : > { %v192_v26 = vmul.f32 %v191_v22, %v189_v16  ;;  %v203_v27 = vmul.f32 %v202_v23, %v189_v16  ;;  %v232_v28 = vmul.f32 %v231_v24, %v229_v17  ;;  %v184_v24 = vmul.f32 0.5, %v431_v10 }
  0xa4   : > { %v243_v29 = vmul.f32 %v242_v25, %v229_v17 }
  0xa5   : > { %v193_v30 = vadd.f32 0.0036580483, %v192_v26  ;;  %v204_v31 = vadd.f32 0.014752088, %v203_v27  ;;  %v233_v34 = vadd.f32 0.0036580483, %v232_v28 }
  0xa6   : > { %v244_v32 = vadd.f32 0.014752088, %v243_v29 }
  0xa7   : > { %v205_v33 = vmul.f32 %v204_v31, %v189_v16  ;;  %v194_v36 = vmul.f32 %v193_v30, %v189_v16  ;;  %v234_v40 = vmul.f32 %v233_v34, %v229_v17 }
  0xa8   : > { %v245_v35 = vmul.f32 %v244_v32, %v229_v17 }
  0xa9   : > { %v206_v37 = vadd.f32 0.112945676, %v205_v33  ;;  %v195_v42 = vadd.f32 0.05243302, %v194_v36  ;;  %v235_v46 = vadd.f32 0.05243302, %v234_v40 }
  0xaa   : > { %v246_v38 = vadd.f32 0.112945676, %v245_v35 }
  0xab   : > { %v207_v39 = vmul.f32 %v206_v37, %v189_v16  ;;  %v196_v48 = vmul.f32 %v195_v42, %v189_v16  ;;  %v236_v51 = vmul.f32 %v235_v46, %v229_v17 }
  0xac   : > { %v247_v41 = vmul.f32 %v246_v38, %v229_v17 }
  0xad   : > { %v208_v43 = vadd.f32 0.4994258, %v207_v39  ;;  %v197_v52 = vadd.f32 0.18741608, %v196_v48  ;;  %v237_v53 = vadd.f32 0.18741608, %v236_v51 }
  0xae   : > { %v248_v44 = vadd.f32 0.4994258, %v247_v41 }
  0xaf   : > { %v209_v45 = vmul.f32 %v208_v43, %v189_v16  ;;  %v198_v55 = vmul.f32 %v197_v52, %v189_v16  ;;  %v238_v58 = vmul.f32 %v237_v53, %v229_v17 }
  0xb0   : > { %v249_v47 = vmul.f32 %v248_v44, %v229_v17 }
  0xb1   : > { %v210_v49 = vadd.f32 1.0, %v209_v45  ;;  %v199_v61 = vadd.f32 1.1283791, %v198_v55  ;;  %v239_v3 = vadd.f32 1.1283791, %v238_v58 }
  0xb2   : > { %v250_v50 = vadd.f32 1.0, %v249_v47 }
  0xb3   : > { %364 = vrcp.f32 %v210_v49  ;;  %v222_v62 = vand.u32 2147483648, %v210_v49  ;;  %v220_v1 = vand.u32 2147483647, %v210_v49  ;;  %vm216_vm3 = vweird.f32 %v210_v49 }
  0xb4   : > { %366 = vrcp.f32 %v250_v50  ;;  %v262_v2 = vand.u32 2147483648, %v250_v50  ;;  %v260_v5 = vand.u32 2147483647, %v250_v50  ;;  %vm256_vm5 = vweird.f32 %v250_v50 }
  0xb5   : > { %v223_v7 = vor.u32 1.1754944e-38, %v222_v62  ;;  %v200_v9 = vmul.f32 %v199_v61, %v436_v12  ;;  %vm221_vm6 = vcmp.eq.f32.partialorder %v220_v1, 8.507059e+37  ;;  %v240_v17 = vmul.f32 %v239_v3, %v439_v13 }
  0xb6   : > { %v263_v15 = vor.u32 1.1754944e-38, %v262_v2  ;;  %vm261_vm8 = vcmp.eq.f32.partialorder %v260_v5, 8.507059e+37  ;;  %v185_v12 = vmul.f32 0.5, %v433_v11 }
  0xb9   : > { %v365_v54 = vpop.eup %364 }
  0xba   : > { %v367_v56 = vpop.eup %366  ;;  %v212_v57 = vmul.f32 %v365_v54, %v210_v49  ;;  %vm217_vm1 = vweird.f32 %v365_v54 }
  0xbb   : > { %v252_v59 = vmul.f32 %v367_v56, %v250_v50  ;;  %vm257_vm2 = vweird.f32 %v367_v56  ;;  %vm218_vm4 = vmor %vm216_vm3, %vm217_vm1 }
  0xbc   : > { %v213_v60 = vsub.f32 1.0, %v212_v57  ;;  %vm258_vm7 = vmor %vm256_vm5, %vm257_vm2 }
  0xbd   : > { %v253_v63 = vsub.f32 1.0, %v252_v59 }
  0xbe   : > { %v214_v0 = vmul.f32 %v365_v54, %v213_v60 }
  0xbf   : > { %v254_v4 = vmul.f32 %v367_v56, %v253_v63 }
  0xc0   : > { %v215_v6 = vadd.f32 %v365_v54, %v214_v0 }
  0xc1   : > { %v255_v8 = vadd.f32 %v367_v56, %v254_v4 }
  0xc2   : > { %v219_v14 = vsel %vm218_vm4, %v365_v54, %v215_v6 }
  0xc3   : > { %v224_v16 = vsel %vm221_vm6, %v223_v7, %v219_v14  ;;  %v259_v18 = vsel %vm258_vm7, %v367_v56, %v255_v8 }
  0xc4   : > { %v225_v19 = vmul.f32 %v224_v16, %v200_v9  ;;  %v264_v20 = vsel %vm261_vm8, %v263_v15, %v259_v18 }
  0xc5   : > { %v265_v21 = vmul.f32 %v264_v20, %v240_v17 }
  0xc6   : > { %v342_v22 = vclamps-f32 %v225_v19, 1.0 }
  0xc7   : > { %v343_v23 = vclamps-f32 %v265_v21, 1.0 }
  0xc8   : > { %v268_v25 = vadd.f32 1.0, %v342_v22 }
  0xc9   : > { %v269_v26 = vadd.f32 1.0, %v343_v23 }
  0xca   : > { %v270_v13 = vmul.f32 %v268_v25, %v184_v24 }
  0xcb   : > { %v271_v27 = vmul.f32 %v269_v26, %v185_v12 }
  0xcc   : > { %273 = vst.msk [vmem:[%s143_s5] sm:$0xff] %vm272_vm9, %v270_v13 }
  0xcd   : > { %275 = vst.msk [vmem:[%s143_s5 + $0x8] sm:$0x3f] %vm274_vm10, %v271_v27 }
  0xce PF: > { %s12_s9 = sadd.s32 1, %s374_s9  }
  0xcf   : > { %p9_p4 = scmp.ge.s32.totalorder %s12_s9, 4  }
  0xd1   :  { %11 = sbr.rel (!%p9_p4) target bundleno = 1 (0x1), region = 58 }

// kernel: aves_embedding_forward.9
= control target key start
LH: loop header
LB: loop body
LE: loop exit
PB: predicated region body
PF: predicated region fallthrough
CT: control target
= control target key end

     0   :  { %s942_s24 = smov 0   ;;  %s1091_s0 = inlined_call_operand.vmem [shape: f32[2,14,16], index: 0, kind: input, shape index: {}]   ;;  %s1092_s1 = inlined_call_operand.vmem [shape: f32[1,16], index: 1, kind: input, shape index: {}]   ;;  %s1093_s2 = inlined_call_operand.vmem [shape: f32[1,16], index: 2, kind: input, shape index: {}]   ;;  %s1094_s3 = inlined_call_operand.vmem [shape: f32[16,32], index: 3, kind: input, shape index: {}]   ;;  %s1095_s4 = inlined_call_operand.vmem [shape: f32[1,32], index: 4, kind: input, shape index: {}]   ;;  %s1096_s5 = inlined_call_operand.vmem [shape: f32[4,32,32], index: 5, kind: input, shape index: {}]   ;;  %s1097_s6 = inlined_call_operand.vmem [shape: f32[1,32], index: 6, kind: input, shape index: {}]   ;;  %s1098_s7 = inlined_call_operand.vmem [shape: f32[2,14,32], index: 7, kind: output, shape index: {}]  }
   0x1 LB: > { %s817_s25 = sadd.s32 4294967295, %s898_s24   ;;  %p821_p0 = scmp.ge.s32.totalorder %s898_s24, 1  ;;  %s898_s24 = sphi %s942_s24, %s17_s24  }
   0x2   : > { %p237_p1 = scmp.lt.s32.totalorder %s898_s24, 3 }
   0x4   : > { %p238_p2 = pnand %p821_p0, %p237_p1 }
   0x5   : > { %p269_p3 = scmp.lt.s32.totalorder (!%p238_p2), %s817_s25, 1 }
   0x6   : > { %241 = sbr.rel (%p238_p2) target bundleno = 905 (0x389), region = 48 }
   0xb   : > { %s1100_s25 = smov (!%p269_p3, %s817_s25), 1  ;;  %vm283_vm0 = vcmask 130048   ;;  %vm287_vm1 = vcmask 128000   ;;  %v900_v4 = vmov 16.0   ;;  %v347_v21 = vld [vmem:[%s1094_s3 + $0x8] sm:$0xff]  ;;  %v346_v22 = vld [vmem:[%s1094_s3] sm:$0xff] }
   0xc   : > { %s864_s26 = sshll.u32 %s1100_s25, 4  ;;  %882 = vrcp.f32 %v900_v4  ;;  %372 = vmatpush.msra.mxu0 %v347_v21  ;;  %866 = vmatpush.msra.mxu2 %v347_v21  ;;  %v400_v26 = vld [vmem:[%s1096_s5 + $0x18] sm:$0xff]  ;;  %v399_v28 = vld [vmem:[%s1096_s5 + $0x10] sm:$0xff]  ;;  %v878_v41 = vld [vmem:[%s1092_s1] ss:$0 sm:$0xff]  ;;  %vm401_vm9 = vcmask 261120   ;;  %v381_v4 = vlaneseq }
   0xd   : > { %s273_s29 = scalar_lea.vmem %s1091_s0, %s864_s26  ;;  %v836_v27 = vld [vmem:[%s1096_s5 + $0x38] sm:$0xff]  ;;  %420 = vmatpush.msra.mxu1 %v400_v26  ;;  %v835_v29 = vld [vmem:[%s1096_s5 + $0x30] sm:$0xff]  ;;  %v879_v45 = vld [vmem:[%s1093_s2] ss:$0 sm:$0xff]  ;;  %vm438_vm10 = vcmask 1045504   ;;  %vm431_vm12 = vcmask 113664   ;;  %s278_s13 = scalar_lea.vmem %s1098_s7, %s864_s26 }
   0xe   : > { %v279_v0 = vld [vmem:[%s273_s29] sm:$0xff]  ;;  %v280_v2 = vld [vmem:[%s273_s29 + $0x8] sm:$0x3f]  ;;  %373 = vmatpush.msra.mxu0 %v346_v22  ;;  %867 = vmatpush.msra.mxu2 %v346_v22  ;;  %v854_v59 = vld [vmem:[%s1096_s5 + $0x78] sm:$0xff] }
   0xf   : > { %v284_v1 = vsel %vm283_vm0, %v279_v0, 0.0  ;;  %v288_v3 = vsel %vm287_vm1, %v280_v2, 0.0  ;;  %490 = vmatpush.msra.mxu3 %v836_v27  ;;  %421 = vmatpush.msra.mxu1 %v399_v28  ;;  %v398_v55 = vld [vmem:[%s1096_s5 + $0x8] sm:$0xff]  ;;  %v397_v57 = vld [vmem:[%s1096_s5] sm:$0xff]  ;;  %v853_v60 = vld [vmem:[%s1096_s5 + $0x70] sm:$0xff] }
  0x10   : > { %285 = vadd.xlane.f32.xlu0 %v284_v1  ;;  %v834_v56 = vld [vmem:[%s1096_s5 + $0x28] sm:$0xff]  ;;  %v833_v58 = vld [vmem:[%s1096_s5 + $0x20] sm:$0xff] }
  0x11   : > { %491 = vmatpush.msra.mxu3 %v835_v29  ;;  %422 = vmatpush.msra.mxu1 %v398_v55  ;;  %v852_v61 = vld [vmem:[%s1096_s5 + $0x68] sm:$0xff]  ;;  %v851_v62 = vld [vmem:[%s1096_s5 + $0x60] sm:$0xff] }
  0x12   : > { %v883_v5 = vpop.eup %882  ;;  %v880_v63 = vld [vmem:[%s1095_s4] ss:$0 sm:$0xff] }
  0x13   : > { %v292_v6 = vmul.f32 16.0, %v883_v5  ;;  %vm296_vm2 = vweird.f32 %v883_v5  ;;  %492 = vmatpush.msra.mxu3 %v834_v56  ;;  %423 = vmatpush.msra.mxu1 %v397_v57  ;;  %v842_v21 = vld [vmem:[%s1096_s5 + $0x40] sm:$0xff] }
  0x15   : > { %v293_v7 = vsub.f32 1.0, %v292_v6  ;;  %493 = vmatpush.msra.mxu3 %v833_v58 }
  0x17   : > { %v294_v8 = vmul.f32 %v883_v5, %v293_v7  ;;  %624 = vmatpush.msrb.mxu3 %v854_v59  ;;  %v385_v7 = vand.u32 127, %v381_v4 }
  0x18   : > { %289 = vadd.xlane.f32.xlu0 %v288_v3 }
  0x19   : > { %v295_v9 = vadd.f32 %v883_v5, %v294_v8  ;;  %625 = vmatpush.msrb.mxu3 %v853_v60 }
  0x1b   : > { %v297_v10 = vsel %vm296_vm2, %v883_v5, %v295_v9  ;;  %626 = vmatpush.msrb.mxu3 %v852_v61  ;;  %v382_v5 = vshrl.u32 %v381_v4, 7 }
  0x1d   : > { %627 = vmatpush.msrb.mxu3 %v851_v62  ;;  %v391_v8 = vadd.s32 4294967294, %v382_v5  ;;  %v601_v27 = vadd.s32 1, %v382_v5  ;;  %vm535_vm2 = vcmp.eq.s32.totalorder %v385_v7, %v382_v5 }
  0x1f   : > { %vm393_vm11 = vcmp.eq.s32.totalorder %v385_v7, %v391_v8 }
  0x83   : > { %v286_v11 = vpop.xlane.xlu0 %285 }
  0x84   : > { %v298_v12 = vmul.f32 %v297_v10, %v286_v11 }
  0x86   : > { %v300_v13 = vsub.f32 %v279_v0, %v298_v12  ;;  %v467_v12 = vadd.s32 4294967295, %v382_v5 }
  0x88   : > { %v302_v14 = vmul.f32 %v300_v13, %v300_v13  ;;  %vm469_vm13 = vcmp.eq.s32.totalorder %v385_v7, %v467_v12 }
  0x8a   : > { %v304_v15 = vsel %vm283_vm0, %v302_v14, 0.0 }
  0x8b   : > { %305 = vadd.xlane.f32.xlu1 %v304_v15  ;;  %v290_v16 = vpop.xlane.xlu0 %289 }
  0x8c   : > { %v299_v17 = vmul.f32 %v297_v10, %v290_v16  ;;  %v845_v16 = vld [vmem:[%s1096_s5 + $0x58] sm:$0xff] }
  0x8e   : > { %v301_v18 = vsub.f32 %v280_v2, %v299_v17  ;;  %v844_v17 = vld [vmem:[%s1096_s5 + $0x50] sm:$0xff] }
  0x90   : > { %v303_v19 = vmul.f32 %v301_v18, %v301_v18 }
  0x92   : > { %v307_v20 = vsel %vm287_vm1, %v303_v19, 0.0  ;;  %v843_v19 = vld [vmem:[%s1096_s5 + $0x48] sm:$0xff] }
  0x93   : > { %308 = vadd.xlane.f32.xlu1 %v307_v20 }
  0xfe   : > { %v306_v23 = vpop.xlane.xlu1 %305 }
  0xff   : > { %v310_v24 = vmul.f32 %v306_v23, %v297_v10 }
 0x101   : > { %v312_v25 = vadd.f32 1e-05, %v310_v24 }
 0x103   : > { %884 = vrsqrt.f32 %v312_v25  ;;  %vm320_vm4 = vweird.f32 %v312_v25 }
 0x106   : > { %v309_v30 = vpop.xlane.xlu1 %308 }
 0x107   : > { %v311_v31 = vmul.f32 %v309_v30, %v297_v10  ;;  %v383_v10 = vadd.s32 8, %v382_v5 }
 0x109   : > { %v885_v32 = vpop.eup %884  ;;  %v313_v33 = vadd.f32 1e-05, %v311_v31  ;;  %v392_v15 = vadd.s32 4294967294, %v383_v10  ;;  %v468_v22 = vadd.s32 4294967295, %v383_v10  ;;  %v602_v30 = vadd.s32 1, %v383_v10 }
 0x10a   : > { %v315_v34 = vmul.f32 %v885_v32, %v312_v25  ;;  %vm321_vm3 = vweird.f32 %v885_v32 }
 0x10b   : > { %886 = vrsqrt.f32 %v313_v33  ;;  %vm322_vm5 = vmor %vm320_vm4, %vm321_vm3  ;;  %vm330_vm7 = vweird.f32 %v313_v33  ;;  %vm394_vm14 = vcmp.eq.s32.totalorder %v385_v7, %v392_v15  ;;  %vm470_vm15 = vcmp.eq.s32.totalorder %v385_v7, %v468_v22 }
 0x10c   : > { %v316_v35 = vmul.f32 %v885_v32, %v315_v34  ;;  %vm604_vm1 = vcmp.eq.s32.totalorder %v385_v7, %v602_v30  ;;  %vm536_vm3 = vcmp.eq.s32.totalorder %v385_v7, %v383_v10 }
 0x10e   : > { %v317_v36 = vmul.f32 0.5, %v316_v35 }
 0x110   : > { %v318_v37 = vsub.f32 1.5, %v317_v36 }
 0x111   : > { %v887_v38 = vpop.eup %886 }
 0x112   : > { %v319_v39 = vmul.f32 %v885_v32, %v318_v37  ;;  %v325_v40 = vmul.f32 %v887_v38, %v313_v33  ;;  %vm331_vm6 = vweird.f32 %v887_v38 }
 0x113   : > { %vm332_vm8 = vmor %vm330_vm7, %vm331_vm6 }
 0x114   : > { %v323_v42 = vsel %vm322_vm5, %v885_v32, %v319_v39  ;;  %v326_v43 = vmul.f32 %v887_v38, %v325_v40  ;;  %v881_v39 = vld [vmem:[%s1097_s6] ss:$0 sm:$0xff] }
 0x115   : > { %v334_v44 = vmul.f32 %v323_v42, %v300_v13  ;;  %v901_v13 = vmov 0.0  }
 0x116   : > { %v327_v46 = vmul.f32 0.5, %v326_v43  ;;  %v395_v14 = vsel %vm393_vm11, 1.0, %v901_v13  ;;  %v471_v20 = vsel %vm469_vm13, 1.0, %v901_v13  ;;  %v396_v23 = vsel %vm394_vm14, 1.0, %v901_v13 }
 0x117   : > { %v339_v47 = vmul.f32 %v878_v41, %v334_v44  ;;  %v472_v25 = vsel %vm470_vm15, 1.0, %v901_v13  ;;  %v606_v31 = vsel %vm604_vm1, 1.0, %v901_v13  ;;  %v537_v35 = vsel %vm535_vm2, 1.0, %v901_v13 }
 0x118   : > { %v328_v48 = vsub.f32 1.5, %v327_v46  ;;  %v538_v36 = vsel %vm536_vm3, 1.0, %v901_v13  ;;  %vm760_vm13 = vcmask 259072  }
 0x119   : > { %v344_v49 = vadd.f32 %v879_v45, %v339_v47 }
 0x11a   : > { %v329_v50 = vmul.f32 %v887_v38, %v328_v48 }
 0x11b   : > { %826 = vmatmul.msk.f32.vlgmr.msra.gmra.mxu0 %vm283_vm0, %v344_v49 }
 0x11c   : > { %v333_v51 = vsel %vm332_vm8, %v887_v38, %v329_v50 }
 0x11d   : > { %v335_v52 = vmul.f32 %v333_v51, %v301_v18 }
 0x11f   : > { %v340_v53 = vmul.f32 %v878_v41, %v335_v52 }
 0x121   : > { %v345_v54 = vadd.f32 %v879_v45, %v340_v53 }
 0x123   : > { %827 = vmatmul.msk.f32.vlgmr.msra.gmra.mxu2 %vm283_vm0, %v345_v54  ;;  %vm603_vm0 = vcmp.eq.s32.totalorder %v385_v7, %v601_v27 }
 0x124   : > { %v605_v28 = vsel %vm603_vm0, 1.0, %v901_v13 }
 0x198   : > { %v375_v0 = vpop.f32.mrf.mxu0 }
 0x199   : > { %v1015_v1 = vadd.f32 %v880_v63, %v375_v0 }
 0x19b   : > { %828 = vmatmul.msk.f32.vlgmr.msra.gmra.mxu1 %vm401_vm9, %v1015_v1  ;;  %837 = vmatmul.msk.f32.vlgmr.msra.gmra.mxu3 %vm401_vm9, %v1015_v1 }
 0x1a6   : > { %v378_v2 = vpop.f32.mrf.mxu2 }
 0x1a7   : > { %v1021_v3 = vadd.f32 %v880_v63, %v378_v2 }
 0x1a9   : > { %829 = vmatmul.msk.f32.gmra.mxu1 %vm401_vm9, %v1021_v3  ;;  %838 = vmatmul.msk.f32.gmra.mxu3 %vm401_vm9, %v1021_v3 }
 0x1b1   : > { %855 = vmatmul.msk.f32.vlgmr.msrb.gmra.mxu3 %vm401_vm9, %v1015_v1 }
 0x1b9   : > { %856 = vmatmul.msk.f32.gmra.mxu3 %vm401_vm9, %v1021_v3 }
 0x218   : > { %v425_v6 = vpop.f32.mrf.mxu1 }
 0x21e   : > { %v495_v9 = vpop.f32.mrf.mxu3 }
 0x226   : > { %v428_v11 = vpop.f32.mrf.mxu1 }
 0x227   : > { %830 = vmatpush.msk.msrb.mxu2 %vm438_vm10, %v428_v11 }
 0x229   : > { %457 = vmatpush.msrb.mxu2 %v425_v6 }
 0x22a   : > { %831 = vmatmul.msk.f32.vlgmr.msrb.gmra.mxu2 %vm431_vm12, %v395_v14 }
 0x22b   : > { %556 = vmatpush.msra.mxu2 %v845_v16 }
 0x22c   : > { %v498_v18 = vpop.f32.mrf.mxu3 }
 0x22d   : > { %839 = vmatpush.msk.msrb.mxu0 %vm438_vm10, %v498_v18  ;;  %557 = vmatpush.msra.mxu2 %v844_v17 }
 0x22f   : > { %525 = vmatpush.msrb.mxu0 %v495_v9  ;;  %558 = vmatpush.msra.mxu2 %v843_v19 }
 0x230   : > { %840 = vmatmul.msk.f32.vlgmr.msrb.gmra.mxu0 %vm431_vm12, %v471_v20 }
 0x231   : > { %559 = vmatpush.msra.mxu2 %v842_v21 }
 0x232   : > { %832 = vmatmul.msk.f32.gmra.mxu2 %vm431_vm12, %v396_v23 }
 0x234   : > { %v629_v24 = vpop.f32.mrf.mxu3 }
 0x238   : > { %841 = vmatmul.msk.f32.gmra.mxu0 %vm431_vm12, %v472_v25 }
 0x23a   : > { %846 = vmatmul.msk.f32.vlgmr.msra.gmra.mxu2 %vm401_vm9, %v1015_v1 }
 0x23c   : > { %v632_v26 = vpop.f32.mrf.mxu3 }
 0x23d   : > { %857 = vmatpush.msk.msra.mxu0 %vm438_vm10, %v632_v26 }
 0x23f   : > { %659 = vmatpush.msra.mxu0 %v629_v24 }
 0x240   : > { %858 = vmatmul.msk.f32.vlgmr.msra.gmra.mxu0 %vm431_vm12, %v605_v28 }
 0x242   : > { %847 = vmatmul.msk.f32.gmra.mxu2 %vm401_vm9, %v1021_v3 }
 0x248   : > { %859 = vmatmul.msk.f32.gmra.mxu0 %vm431_vm12, %v606_v31 }
 0x2ad   : > { %v459_v29 = vpop.f32.mrf.mxu2  ;;  %v527_v37 = vpop.f32.mrf.mxu0 }
 0x2ae   : > { %v465_v40 = vadd.f32 %v881_v39, %v459_v29 }
 0x2b0   : > { %v533_v42 = vadd.f32 %v527_v37, %v465_v40 }
 0x2b5   : > { %v462_v32 = vpop.f32.mrf.mxu2  ;;  %v530_v38 = vpop.f32.mrf.mxu0 }
 0x2b6   : > { %v466_v45 = vadd.f32 %v881_v39, %v462_v32 }
 0x2b8   : > { %v534_v48 = vadd.f32 %v530_v38, %v466_v45 }
 0x2bd   : > { %v561_v33 = vpop.f32.mrf.mxu2  ;;  %v661_v41 = vpop.f32.mrf.mxu0 }
 0x2c5   : > { %v564_v34 = vpop.f32.mrf.mxu2  ;;  %v664_v51 = vpop.f32.mrf.mxu0 }
 0x2c6   : > { %848 = vmatpush.msk.msrb.mxu1 %vm438_vm10, %v564_v34 }
 0x2c8   : > { %591 = vmatpush.msrb.mxu1 %v561_v33 }
 0x2c9   : > { %849 = vmatmul.msk.f32.vlgmr.msrb.gmra.mxu1 %vm431_vm12, %v537_v35 }
 0x2d1   : > { %850 = vmatmul.msk.f32.gmra.mxu1 %vm431_vm12, %v538_v36 }
 0x346   : > { %v593_v43 = vpop.f32.mrf.mxu1 }
 0x347   : > { %v599_v44 = vadd.f32 %v593_v43, %v533_v42 }
 0x349   : > { %v1062_v46 = vadd.f32 %v661_v41, %v599_v44 }
 0x34b   : > { %v1065_v47 = vmul.f32 0.70710677, %v1062_v46 }
 0x34d   : > { %v673_v49 = vmul.f32 %v1065_v47, %v1065_v47 }
 0x34e   : > { %v596_v50 = vpop.f32.mrf.mxu1 }
 0x34f   : > { %v674_v52 = vmin.f32 %v673_v49, 16.0  ;;  %v600_v53 = vadd.f32 %v596_v50, %v534_v48 }
 0x351   : > { %v675_v54 = vmul.f32 2.1237322e-06, %v674_v52  ;;  %v686_v55 = vmul.f32 3.8918573e-05, %v674_v52  ;;  %v1069_v56 = vadd.f32 %v664_v51, %v600_v53 }
 0x353   : > { %v676_v57 = vadd.f32 0.00028619796, %v675_v54  ;;  %v687_v58 = vadd.f32 0.001143296, %v686_v55  ;;  %v1072_v59 = vmul.f32 0.70710677, %v1069_v56 }
 0x355   : > { %v677_v60 = vmul.f32 %v676_v57, %v674_v52  ;;  %v688_v61 = vmul.f32 %v687_v58, %v674_v52  ;;  %v713_v62 = vmul.f32 %v1072_v59, %v1072_v59  ;;  %v669_v58 = vmul.f32 0.5, %v1062_v46 }
 0x357   : > { %v689_v63 = vadd.f32 0.014752088, %v688_v61  ;;  %v678_v0 = vadd.f32 0.0036580483, %v677_v60  ;;  %v714_v2 = vmin.f32 %v713_v62, 16.0 }
 0x359   : > { %v690_v4 = vmul.f32 %v689_v63, %v674_v52  ;;  %v715_v5 = vmul.f32 2.1237322e-06, %v714_v2  ;;  %v726_v6 = vmul.f32 3.8918573e-05, %v714_v2  ;;  %v679_v8 = vmul.f32 %v678_v0, %v674_v52 }
 0x35b   : > { %v691_v7 = vadd.f32 0.112945676, %v690_v4  ;;  %v716_v9 = vadd.f32 0.00028619796, %v715_v5  ;;  %v727_v10 = vadd.f32 0.001143296, %v726_v6 }
 0x35c   : > { %v680_v15 = vadd.f32 0.05243302, %v679_v8  ;;  %v670_v6 = vmul.f32 0.5, %v1069_v56 }
 0x35d   : > { %v692_v11 = vmul.f32 %v691_v7, %v674_v52  ;;  %v717_v12 = vmul.f32 %v716_v9, %v714_v2  ;;  %v728_v13 = vmul.f32 %v727_v10, %v714_v2 }
 0x35e   : > { %v681_v21 = vmul.f32 %v680_v15, %v674_v52 }
 0x35f   : > { %v693_v14 = vadd.f32 0.4994258, %v692_v11  ;;  %v729_v16 = vadd.f32 0.014752088, %v728_v13  ;;  %v718_v18 = vadd.f32 0.0036580483, %v717_v12 }
 0x360   : > { %v682_v25 = vadd.f32 0.18741608, %v681_v21 }
 0x361   : > { %v694_v17 = vmul.f32 %v693_v14, %v674_v52  ;;  %v730_v19 = vmul.f32 %v729_v16, %v714_v2  ;;  %v719_v23 = vmul.f32 %v718_v18, %v714_v2 }
 0x362   : > { %v683_v30 = vmul.f32 %v682_v25, %v674_v52 }
 0x363   : > { %v695_v20 = vadd.f32 1.0, %v694_v17  ;;  %v731_v22 = vadd.f32 0.112945676, %v730_v19  ;;  %v720_v27 = vadd.f32 0.05243302, %v719_v23 }
 0x364   : > { %v684_v36 = vadd.f32 1.1283791, %v683_v30 }
 0x365   : > { %888 = vrcp.f32 %v695_v20  ;;  %v732_v24 = vmul.f32 %v731_v22, %v714_v2  ;;  %v721_v33 = vmul.f32 %v720_v27, %v714_v2  ;;  %v707_v35 = vand.u32 2147483648, %v695_v20 }
 0x366   : > { %v705_v38 = vand.u32 2147483647, %v695_v20  ;;  %vm701_vm5 = vweird.f32 %v695_v20  ;;  %v685_v43 = vmul.f32 %v684_v36, %v1065_v47 }
 0x367   : > { %v733_v26 = vadd.f32 0.4994258, %v732_v24  ;;  %v722_v39 = vadd.f32 0.18741608, %v721_v33  ;;  %v708_v41 = vor.u32 1.1754944e-38, %v707_v35 }
 0x368   : > { %vm706_vm7 = vcmp.eq.f32.partialorder %v705_v38, 8.507059e+37 }
 0x369   : > { %v734_v28 = vmul.f32 %v733_v26, %v714_v2  ;;  %v723_v48 = vmul.f32 %v722_v39, %v714_v2 }
 0x36b   : > { %v889_v29 = vpop.eup %888  ;;  %v735_v32 = vadd.f32 1.0, %v734_v28  ;;  %v724_v54 = vadd.f32 1.1283791, %v723_v48 }
 0x36c   : > { %v697_v31 = vmul.f32 %v889_v29, %v695_v20  ;;  %vm702_vm4 = vweird.f32 %v889_v29 }
 0x36d   : > { %890 = vrcp.f32 %v735_v32  ;;  %vm703_vm6 = vmor %vm701_vm5, %vm702_vm4  ;;  %v747_v53 = vand.u32 2147483648, %v735_v32  ;;  %v745_v57 = vand.u32 2147483647, %v735_v32  ;;  %vm741_vm10 = vweird.f32 %v735_v32 }
 0x36e   : > { %v698_v34 = vsub.f32 1.0, %v697_v31  ;;  %v725_v63 = vmul.f32 %v724_v54, %v1072_v59 }
 0x36f   : > { %v748_v62 = vor.u32 1.1754944e-38, %v747_v53  ;;  %vm746_vm12 = vcmp.eq.f32.partialorder %v745_v57, 8.507059e+37 }
 0x370   : > { %v699_v37 = vmul.f32 %v889_v29, %v698_v34 }
 0x372   : > { %v700_v40 = vadd.f32 %v889_v29, %v699_v37 }
 0x373   : > { %v891_v42 = vpop.eup %890 }
 0x374   : > { %v704_v44 = vsel %vm703_vm6, %v889_v29, %v700_v40  ;;  %v737_v49 = vmul.f32 %v891_v42, %v735_v32  ;;  %vm742_vm8 = vweird.f32 %v891_v42 }
 0x375   : > { %v709_v45 = vsel %vm706_vm7, %v708_v41, %v704_v44  ;;  %vm743_vm11 = vmor %vm741_vm10, %vm742_vm8 }
 0x376   : > { %v710_v50 = vmul.f32 %v709_v45, %v685_v43  ;;  %v738_v51 = vsub.f32 1.0, %v737_v49 }
 0x378   : > { %v860_v52 = vclamps-f32 %v710_v50, 1.0  ;;  %v739_v55 = vmul.f32 %v891_v42, %v738_v51 }
 0x37a   : > { %v753_v60 = vadd.f32 1.0, %v860_v52  ;;  %v740_v61 = vadd.f32 %v891_v42, %v739_v55 }
 0x37c   : > { %v755_v47 = vmul.f32 %v753_v60, %v669_v58  ;;  %v744_v0 = vsel %vm743_vm11, %v891_v42, %v740_v61 }
 0x37d   : > { %v749_v4 = vsel %vm746_vm12, %v748_v62, %v744_v0 }
 0x37e   : > { %v757_v2 = vadd.f32 %v755_v47, %v1015_v1  ;;  %v750_v5 = vmul.f32 %v749_v4, %v725_v63 }
 0x380   : > { %759 = vst.msk [vmem:[%s278_s13] sm:$0xff] %vm401_vm9, %v757_v2  ;;  %v861_v46 = vclamps-f32 %v750_v5, 1.0 }
 0x382   : > { %v754_v7 = vadd.f32 1.0, %v861_v46 }
 0x384   : > { %v756_v8 = vmul.f32 %v754_v7, %v670_v6 }
 0x386   : > { %v758_v9 = vadd.f32 %v756_v8, %v1021_v3 }
 0x388   : > { %761 = vst.msk [vmem:[%s278_s13 + $0x8] sm:$0x3f] %vm760_vm13, %v758_v9 }
 0x389 PF: > { %s17_s24 = sadd.s32 1, %s898_s24  }
 0x38a   : > { %p14_p4 = scmp.ge.s32.totalorder %s17_s24, 4  }
 0x38c   :  { %16 = sbr.rel (!%p14_p4) target bundleno = 1 (0x1), region = 81 }

// kernel: aves_embedding_forward.10
= control target key start
LH: loop header
LB: loop body
LE: loop exit
PB: predicated region body
PF: predicated region fallthrough
CT: control target
= control target key end

     0   :  { %s1577_s25 = smov 0   ;;  %s1839_s0 = inlined_call_operand.vmem [shape: f32[2,14,32], index: 0, kind: input, shape index: {}]   ;;  %s1840_s1 = inlined_call_operand.vmem [shape: f32[32,96], index: 1, kind: input, shape index: {}]   ;;  %s1841_s2 = inlined_call_operand.vmem [shape: f32[1,96], index: 2, kind: input, shape index: {}]   ;;  %s1842_s3 = inlined_call_operand.vmem [shape: f32[32,32], index: 3, kind: input, shape index: {}]   ;;  %s1843_s4 = inlined_call_operand.vmem [shape: f32[1,32], index: 4, kind: input, shape index: {}]   ;;  %s1844_s5 = inlined_call_operand.vmem [shape: f32[1,32], index: 5, kind: input, shape index: {}]   ;;  %s1845_s6 = inlined_call_operand.vmem [shape: f32[1,32], index: 6, kind: input, shape index: {}]   ;;  %s1846_s7 = inlined_call_operand.vmem [shape: f32[32,64], index: 7, kind: input, shape index: {}]   ;;  %s1847_s8 = inlined_call_operand.vmem [shape: f32[1,64], index: 8, kind: input, shape index: {}]   ;;  %s1848_s9 = inlined_call_operand.vmem [shape: f32[64,32], index: 9, kind: input, shape index: {}]   ;;  %s1849_s10 = inlined_call_operand.vmem [shape: f32[1,32], index: 10, kind: input, shape index: {}]   ;;  %s1850_s11 = inlined_call_operand.vmem [shape: f32[1,32], index: 11, kind: input, shape index: {}]   ;;  %s1851_s12 = inlined_call_operand.vmem [shape: f32[1,32], index: 12, kind: input, shape index: {}]   ;;  %s1852_s13 = inlined_call_operand.vmem [shape: f32[2,14,32], index: 13, kind: output, shape index: {}]  }
   0x1 LB: > { %s1352_s26 = sadd.s32 4294967295, %s1493_s25   ;;  %p1356_p0 = scmp.ge.s32.totalorder %s1493_s25, 1  ;;  %s1493_s25 = sphi %s1577_s25, %s23_s25  }
   0x2   : > { %p387_p1 = scmp.lt.s32.totalorder %s1493_s25, 3 }
   0x4   : > { %p388_p2 = pnand %p1356_p0, %p387_p1 }
   0x5   : > { %p431_p3 = scmp.lt.s32.totalorder (!%p388_p2), %s1352_s26, 1  ;;  %s1495_s24 = smov (!%p388_p2), 96  }
   0x6   : > { %391 = sbr.rel (%p388_p2) target bundleno = 2841 (0xb19), region = 72  ;;  %s1496_s27 = smov (!%p388_p2), 64  }
   0x7   : > { %s1497_s28 = smov (!%p388_p2), 120   ;;  %s1498_s29 = smov (!%p388_p2), 56  }
   0x8   : > { %s1499_s30 = smov (!%p388_p2), 88   ;;  %s1500_s16 = smov (!%p388_p2), 80  }
   0x9   : > { %s1501_s17 = smov (!%p388_p2), 112   ;;  %s1502_s19 = smov (!%p388_p2), 72  }
   0xa   : > { %s1503_s20 = smov (!%p388_p2), 104  }
   0xb   : > { %v446_v0 = vld [vmem:[%s1840_s1 + $0x18] sm:$0xff]  ;;  %v445_v1 = vld [vmem:[%s1840_s1 + $0x10] sm:$0xff]  ;;  %v444_v2 = vld [vmem:[%s1840_s1 + $0x8] sm:$0xff]  ;;  %s1854_s26 = smov (!%p431_p3, %s1352_s26), 1  ;;  %vm451_vm0 = vcmask 261120   ;;  %vm496_vm1 = vcmask 64512  }
   0xc   : > { %1409 = vmatpush.msra.mxu1 %v446_v0  ;;  %470 = vmatpush.msra.mxu0 %v446_v0  ;;  %v443_v3 = vld [vmem:[%s1840_s1] sm:$0xff]  ;;  %s1407_s18 = sshll.u32 %s1854_s26, 4  ;;  %vm528_vm2 = vcmask 113664   ;;  %vm532_vm3 = vcmask 111616   ;;  %vm563_vm4 = vcmask 1045504   ;;  %v482_v52 = vld [vmem:[%s1842_s3 + $0x8] sm:$0xff] }
   0xd   : > { %s435_s21 = scalar_lea.vmem %s1839_s0, %s1407_s18  ;;  %v1433_v6 = vld [vmem:[%s1841_s2] ss:$0 sm:$0xff]  ;;  %vm1011_vm5 = vcmask 259072  }
   0xe   : > { %1410 = vmatpush.msra.mxu1 %v445_v1  ;;  %471 = vmatpush.msra.mxu0 %v445_v1  ;;  %v1605_v4 = vld [vmem:[%s435_s21 + $0x8] sm:$0x3f]  ;;  %v1607_v5 = vld [vmem:[%s435_s21] sm:$0xff] }
   0xf   : > { %v481_v27 = vld [vmem:[%s1842_s3] sm:$0xff] }
  0x10   : > { %1411 = vmatpush.msra.mxu1 %v444_v2  ;;  %472 = vmatpush.msra.mxu0 %v444_v2 }
  0x11   : > { %610 = vmatpush.msra.mxu3 %v481_v27 }
  0x12   : > { %1412 = vmatpush.msra.mxu1 %v443_v3  ;;  %473 = vmatpush.msra.mxu0 %v443_v3 }
  0x13   : > { %1362 = vmatmul.msk.f32.vlgmr.msra.gmra.mxu1 %vm451_vm0, %v1605_v4  ;;  %1361 = vmatmul.msk.f32.vlgmr.msra.gmra.mxu0 %vm451_vm0, %v1607_v5 }
  0x14   : > { %738 = vmatpush.msrb.mxu0 %v482_v52 }
  0x90   : > { %v478_v7 = vpop.f32.mrf.mxu1  ;;  %v475_v9 = vpop.f32.mrf.mxu0 }
  0x91   : > { %v1616_v8 = vadd.f32 %v1433_v6, %v478_v7  ;;  %v1619_v10 = vadd.f32 %v1433_v6, %v475_v9 }
  0x93   : > { %494 = vrot.lane.b32.xlu0 %v1616_v8, %s1495_s24 }
  0x9b   : > { %492 = vrot.lane.b32.xlu0 %v1619_v10, %s1495_s24 }
 0x105   : > { %v495_v11 = vpop.permute.xlu0 %494 }
 0x106   : > { %1363 = vmatpush.xpose.msk.msrb.mxu1 %vm496_vm1, %v495_v11 }
 0x10d   : > { %v493_v12 = vpop.permute.xlu0 %492 }
 0x10e   : > { %1364 = vmatpush.xpose.msk.msrb.mxu1 %vm496_vm1, %v493_v12 }
 0x111   : > { %1365 = vmatmul.msk.f32.vlgmr.msrb.gmra.mxu1 %vm496_vm1, %v1619_v10 }
 0x119   : > { %1366 = vmatmul.msk.f32.gmra.mxu1 %vm496_vm1, %v1616_v8 }
 0x18e   : > { %v522_v13 = vpop.f32.mrf.mxu1 }
 0x18f   : > { %v529_v14 = vsel %vm528_vm2, %v522_v13, -inf }
 0x190   : > { %530 = vmax.xlane.f32.xlu1 %v529_v14 }
 0x196   : > { %v525_v15 = vpop.f32.mrf.mxu1 }
 0x197   : > { %v533_v16 = vsel %vm532_vm3, %v525_v15, -inf }
 0x198   : > { %534 = vmax.xlane.f32.xlu1 %v533_v16 }
 0x1b1   : > { %552 = vrot.lane.b32.xlu1 %v1619_v10, %s1496_s27 }
 0x1b9   : > { %620 = vrot.lane.b32.xlu1 %v1619_v10, %s1497_s28 }
 0x203   : > { %v531_v17 = vpop.xlane.xlu1 %530 }
 0x204   : > { %v536_v18 = vsub.f32 %v522_v13, %v531_v17 }
 0x206   : > { %v538_v19 = vmul.f32 1.442695, %v536_v18 }
 0x208   : > { %1441 = vpow2.f32 %v538_v19 }
 0x20b   : > { %v535_v20 = vpop.xlane.xlu1 %534 }
 0x20c   : > { %v537_v21 = vsub.f32 %v525_v15, %v535_v20 }
 0x20e   : > { %v1442_v22 = vpop.eup %1441  ;;  %v540_v23 = vmul.f32 1.442695, %v537_v21 }
 0x20f   : > { %v542_v24 = vsel %vm528_vm2, %v1442_v22, 0.0 }
 0x210   : > { %1443 = vpow2.f32 %v540_v23  ;;  %543 = vadd.xlane.f32.xlu2 %v542_v24 }
 0x216   : > { %v1444_v25 = vpop.eup %1443 }
 0x217   : > { %v545_v26 = vsel %vm532_vm3, %v1444_v25, 0.0 }
 0x218   : > { %546 = vadd.xlane.f32.xlu0 %v545_v26  ;;  %v1434_v26 = vld [vmem:[%s1843_s4] ss:$0 sm:$0xff] }
 0x223   : > { %v553_v32 = vpop.permute.xlu1 %552 }
 0x228   : > { %554 = vrot.lane.b32.xlu2 %v1616_v8, %s1496_s27  ;;  %s1504_s27 = smov 48  }
 0x22b   : > { %v621_v41 = vpop.permute.xlu1 %620 }
 0x22c   : > { %683 = vrot.lane.b32.xlu0 %v1616_v8, %s1498_s29 }
 0x230   : > { %626 = vrot.lane.b32.xlu2 %v1616_v8, %s1499_s30 }
 0x238   : > { %624 = vrot.lane.b32.xlu2 %v1619_v10, %s1499_s30 }
 0x240   : > { %622 = vrot.lane.b32.xlu2 %v1616_v8, %s1497_s28  ;;  %s1505_s28 = smov 40  }
 0x283   : > { %v544_v28 = vpop.xlane.xlu2 %543 }
 0x284   : > { %1445 = vrcp.f32 %v544_v28 }
 0x28a   : > { %v1446_v29 = vpop.eup %1445 }
 0x28b   : > { %v555_v30 = vpop.permute.xlu2 %554  ;;  %v547_v31 = vpop.xlane.xlu0 %546  ;;  %v550_v33 = vmul.f32 %v1446_v29, %v1442_v22 }
 0x28c   : > { %1447 = vrcp.f32 %v547_v31  ;;  %1367 = vmatpush.msk.msra.mxu2 %vm563_vm4, %v555_v30 }
 0x28e   : > { %581 = vmatpush.msra.mxu2 %v553_v32 }
 0x28f   : > { %1368 = vmatmul.msk.f32.vlgmr.msra.gmra.mxu2 %vm528_vm2, %v550_v33 }
 0x292   : > { %v1448_v34 = vpop.eup %1447 }
 0x293   : > { %v627_v35 = vpop.permute.xlu2 %626  ;;  %v551_v36 = vmul.f32 %v1448_v34, %v1444_v25 }
 0x294   : > { %1372 = vmatpush.xpose.msk.msrb.mxu3 %vm496_vm1, %v627_v35 }
 0x297   : > { %1369 = vmatmul.msk.f32.gmra.mxu2 %vm528_vm2, %v551_v36 }
 0x29b   : > { %v625_v37 = vpop.permute.xlu2 %624 }
 0x29c   : > { %1373 = vmatpush.xpose.msk.msrb.mxu3 %vm496_vm1, %v625_v37 }
 0x29e   : > { %v684_v38 = vpop.permute.xlu0 %683 }
 0x29f   : > { %1376 = vmatpush.msk.msrb.mxu2 %vm563_vm4, %v684_v38 }
 0x2a3   : > { %v623_v42 = vpop.permute.xlu2 %622 }
 0x312   : > { %v583_v39 = vpop.f32.mrf.mxu2 }
 0x313   : > { %1370 = vmatmul.msk.f32.vlgmr.msra.gmra.mxu3 %vm496_vm1, %v583_v39 }
 0x31a   : > { %v586_v40 = vpop.f32.mrf.mxu2 }
 0x31b   : > { %1371 = vmatmul.msk.f32.gmra.mxu3 %vm496_vm1, %v586_v40 }
 0x323   : > { %1374 = vmatmul.msk.f32.vlgmr.msrb.gmra.mxu3 %vm496_vm1, %v621_v41 }
 0x32b   : > { %1375 = vmatmul.msk.f32.gmra.mxu3 %vm496_vm1, %v623_v42 }
 0x396   : > { %v1653_v43 = vpop.f32.mrf.mxu3 }
 0x397   : > { %v618_v27 = vadd.f32 %v1434_v26, %v1653_v43 }
 0x39e   : > { %v1655_v44 = vpop.f32.mrf.mxu3 }
 0x39f   : > { %v619_v30 = vadd.f32 %v1434_v26, %v1655_v44 }
 0x3a6   : > { %v653_v45 = vpop.f32.mrf.mxu3 }
 0x3a7   : > { %v659_v46 = vsel %vm528_vm2, %v653_v45, -inf }
 0x3a8   : > { %660 = vmax.xlane.f32.xlu1 %v659_v46 }
 0x3ae   : > { %v656_v47 = vpop.f32.mrf.mxu3 }
 0x3af   : > { %v662_v48 = vsel %vm532_vm3, %v656_v47, -inf }
 0x3b0   : > { %663 = vmax.xlane.f32.xlu2 %v662_v48 }
 0x3c1   : > { %681 = vrot.lane.b32.xlu1 %v1619_v10, %s1498_s29  ;;  %s440_s29 = scalar_lea.vmem %s1852_s13, %s1407_s18 }
 0x3c8   : > { %754 = vrot.lane.b32.xlu2 %v1616_v8, %s1500_s16 }
 0x3c9   : > { %752 = vrot.lane.b32.xlu1 %v1619_v10, %s1500_s16 }
 0x3d0   : > { %748 = vrot.lane.b32.xlu2 %v1619_v10, %s1501_s17 }
 0x3d1   : > { %882 = vrot.lane.b32.xlu1 %v1616_v8, %s1502_s19 }
 0x3d8   : > { %750 = vrot.lane.b32.xlu2 %v1616_v8, %s1501_s17 }
 0x3d9   : > { %876 = vrot.lane.b32.xlu1 %v1619_v10, %s1503_s20 }
 0x3e0   : > { %878 = vrot.lane.b32.xlu2 %v1616_v8, %s1503_s20 }
 0x41b   : > { %v661_v49 = vpop.xlane.xlu1 %660 }
 0x41c   : > { %v665_v50 = vsub.f32 %v653_v45, %v661_v49 }
 0x41e   : > { %v667_v51 = vmul.f32 1.442695, %v665_v50 }
 0x420   : > { %1449 = vpow2.f32 %v667_v51 }
 0x423   : > { %v664_v53 = vpop.xlane.xlu2 %663 }
 0x424   : > { %v666_v54 = vsub.f32 %v656_v47, %v664_v53 }
 0x426   : > { %v1450_v55 = vpop.eup %1449  ;;  %v669_v56 = vmul.f32 1.442695, %v666_v54 }
 0x427   : > { %v671_v57 = vsel %vm528_vm2, %v1450_v55, 0.0 }
 0x428   : > { %1451 = vpow2.f32 %v669_v56  ;;  %672 = vadd.xlane.f32.xlu0 %v671_v57 }
 0x42b   : > { %v755_v58 = vpop.permute.xlu2 %754 }
 0x42c   : > { %1381 = vmatpush.xpose.msk.msra.mxu1 %vm496_vm1, %v755_v58 }
 0x42e   : > { %v1452_v59 = vpop.eup %1451 }
 0x42f   : > { %v674_v60 = vsel %vm532_vm3, %v1452_v59, 0.0 }
 0x430   : > { %675 = vadd.xlane.f32.xlu0 %v674_v60 }
 0x433   : > { %v682_v61 = vpop.permute.xlu1 %681  ;;  %v749_v63 = vpop.permute.xlu2 %748 }
 0x434   : > { %709 = vmatpush.msrb.mxu2 %v682_v61 }
 0x43b   : > { %v753_v62 = vpop.permute.xlu1 %752  ;;  %v751_v1 = vpop.permute.xlu2 %750 }
 0x43c   : > { %1382 = vmatpush.xpose.msk.msra.mxu1 %vm496_vm1, %v753_v62 }
 0x43f   : > { %1383 = vmatmul.msk.f32.vlgmr.msra.gmra.mxu1 %vm496_vm1, %v749_v63 }
 0x443   : > { %v883_v0 = vpop.permute.xlu1 %882  ;;  %v879_v25 = vpop.permute.xlu2 %878 }
 0x444   : > { %1390 = vmatpush.xpose.msk.msra.mxu0 %vm496_vm1, %v883_v0  ;;  %880 = vrot.lane.b32.xlu0 %v1619_v10, %s1502_s19  ;;  %v483_v0 = vld [vmem:[%s1842_s3 + $0x10] sm:$0xff] }
 0x445   : > { %866 = vmatpush.msra.mxu2 %v483_v0 }
 0x447   : > { %1384 = vmatmul.msk.f32.gmra.mxu1 %vm496_vm1, %v751_v1 }
 0x44b   : > { %v877_v18 = vpop.permute.xlu1 %876 }
 0x49b   : > { %v673_v2 = vpop.xlane.xlu0 %672 }
 0x49c   : > { %1453 = vrcp.f32 %v673_v2 }
 0x4a2   : > { %v1454_v3 = vpop.eup %1453 }
 0x4a3   : > { %v676_v6 = vpop.xlane.xlu0 %675  ;;  %v679_v7 = vmul.f32 %v1454_v3, %v1450_v55  ;;  %v484_v3 = vld [vmem:[%s1842_s3 + $0x18] sm:$0xff] }
 0x4a4   : > { %1455 = vrcp.f32 %v676_v6 }
 0x4a5   : > { %1377 = vmatmul.msk.f32.vlgmr.msrb.gmra.mxu2 %vm528_vm2, %v679_v7 }
 0x4aa   : > { %v1456_v9 = vpop.eup %1455 }
 0x4ab   : > { %v680_v11 = vmul.f32 %v1456_v9, %v1452_v59 }
 0x4ad   : > { %1378 = vmatmul.msk.f32.gmra.mxu2 %vm528_vm2, %v680_v11 }
 0x4b6   : > { %v881_v12 = vpop.permute.xlu0 %880 }
 0x4b7   : > { %1391 = vmatpush.xpose.msk.msra.mxu0 %vm496_vm1, %v881_v12 }
 0x4bc   : > { %v781_v13 = vpop.f32.mrf.mxu1 }
 0x4bd   : > { %v787_v14 = vsel %vm528_vm2, %v781_v13, -inf }
 0x4be   : > { %788 = vmax.xlane.f32.xlu1 %v787_v14 }
 0x4c4   : > { %v784_v15 = vpop.f32.mrf.mxu1 }
 0x4c5   : > { %v790_v16 = vsel %vm532_vm3, %v784_v15, -inf }
 0x4c6   : > { %791 = vmax.xlane.f32.xlu2 %v790_v16 }
 0x528   : > { %v711_v17 = vpop.f32.mrf.mxu2 }
 0x529   : > { %1379 = vmatmul.msk.f32.vlgmr.msrb.gmra.mxu0 %vm496_vm1, %v711_v17 }
 0x530   : > { %v714_v19 = vpop.f32.mrf.mxu2 }
 0x531   : > { %1380 = vmatmul.msk.f32.gmra.mxu0 %vm496_vm1, %v714_v19  ;;  %v789_v20 = vpop.xlane.xlu1 %788 }
 0x532   : > { %v793_v21 = vsub.f32 %v781_v13, %v789_v20 }
 0x534   : > { %v795_v22 = vmul.f32 1.442695, %v793_v21 }
 0x536   : > { %1457 = vpow2.f32 %v795_v22 }
 0x539   : > { %1392 = vmatmul.msk.f32.vlgmr.msra.gmra.mxu0 %vm496_vm1, %v877_v18  ;;  %v792_v33 = vpop.xlane.xlu2 %791 }
 0x53a   : > { %v794_v34 = vsub.f32 %v784_v15, %v792_v33 }
 0x53c   : > { %v1458_v23 = vpop.eup %1457  ;;  %v797_v37 = vmul.f32 1.442695, %v794_v34 }
 0x53d   : > { %v799_v24 = vsel %vm528_vm2, %v1458_v23, 0.0 }
 0x53e   : > { %800 = vadd.xlane.f32.xlu2 %v799_v24  ;;  %1459 = vpow2.f32 %v797_v37  ;;  %v1506_v24 = vmov 32.0  }
 0x541   : > { %1393 = vmatmul.msk.f32.gmra.mxu0 %vm496_vm1, %v879_v25 }
 0x544   : > { %v1460_v40 = vpop.eup %1459 }
 0x545   : > { %v802_v41 = vsel %vm532_vm3, %v1460_v40, 0.0 }
 0x5a6   : > { %v740_v28 = vpop.f32.mrf.mxu0 }
 0x5a7   : > { %v1695_v29 = vadd.f32 %v740_v28, %v618_v27 }
 0x5ae   : > { %v743_v31 = vpop.f32.mrf.mxu0 }
 0x5af   : > { %v1698_v32 = vadd.f32 %v743_v31, %v619_v30 }
 0x5b6   : > { %v909_v35 = vpop.f32.mrf.mxu0 }
 0x5b7   : > { %v915_v36 = vsel %vm528_vm2, %v909_v35, -inf }
 0x5b8   : > { %916 = vmax.xlane.f32.xlu0 %v915_v36 }
 0x5be   : > { %v912_v38 = vpop.f32.mrf.mxu0 }
 0x5bf   : > { %v918_v39 = vsel %vm532_vm3, %v912_v38, -inf }
 0x5c0   : > { %919 = vmax.xlane.f32.xlu1 %v918_v39  ;;  %v1073_v39 = vld [vmem:[%s1846_s7 + $0x18] sm:$0xff] }
 0x5c1   : > { %1096 = vmatpush.msrb.mxu2 %v1073_v39 }
 0x5c8   : > { %803 = vadd.xlane.f32.xlu1 %v802_v41  ;;  %v1071_v41 = vld [vmem:[%s1846_s7 + $0x8] sm:$0xff] }
 0x5cc   : > { %811 = vrot.lane.b32.xlu0 %v1616_v8, %s1504_s27 }
 0x5e1   : > { %809 = vrot.lane.b32.xlu1 %v1619_v10, %s1504_s27 }
 0x5e9   : > { %937 = vrot.lane.b32.xlu1 %v1619_v10, %s1505_s28  ;;  %v801_v10 = vpop.xlane.xlu2 %800 }
 0x62b   : > { %v917_v42 = vpop.xlane.xlu0 %916 }
 0x62c   : > { %v921_v43 = vsub.f32 %v909_v35, %v917_v42  ;;  %v1070_v42 = vld [vmem:[%s1846_s7] sm:$0xff] }
 0x62e   : > { %v923_v44 = vmul.f32 1.442695, %v921_v43 }
 0x630   : > { %1461 = vpow2.f32 %v923_v44 }
 0x633   : > { %v920_v45 = vpop.xlane.xlu1 %919 }
 0x634   : > { %v922_v46 = vsub.f32 %v912_v38, %v920_v45 }
 0x636   : > { %v1462_v47 = vpop.eup %1461  ;;  %v925_v48 = vmul.f32 1.442695, %v922_v46 }
 0x637   : > { %v927_v49 = vsel %vm528_vm2, %v1462_v47, 0.0 }
 0x638   : > { %1463 = vpow2.f32 %v925_v48  ;;  %928 = vadd.xlane.f32.xlu2 %v927_v49 }
 0x639   : > { %1465 = vrcp.f32 %v801_v10 }
 0x63b   : > { %v804_v53 = vpop.xlane.xlu1 %803 }
 0x63c   : > { %1467 = vrcp.f32 %v804_v53 }
 0x63e   : > { %v1464_v50 = vpop.eup %1463  ;;  %v812_v51 = vpop.permute.xlu0 %811 }
 0x63f   : > { %1385 = vmatpush.msk.msra.mxu3 %vm563_vm4, %v812_v51  ;;  %v930_v52 = vsel %vm532_vm3, %v1464_v50, 0.0  ;;  %v1466_v54 = vpop.eup %1465 }
 0x640   : > { %931 = vadd.xlane.f32.xlu0 %v930_v52  ;;  %v807_v55 = vmul.f32 %v1466_v54, %v1458_v23 }
 0x642   : > { %v1468_v57 = vpop.eup %1467 }
 0x643   : > { %v808_v58 = vmul.f32 %v1468_v57, %v1460_v40  ;;  %v1072_v40 = vld [vmem:[%s1846_s7 + $0x10] sm:$0xff] }
 0x644   : > { %1097 = vmatpush.msrb.mxu2 %v1072_v40  ;;  %v1196_v40 = vld [vmem:[%s1848_s9 + $0x8] sm:$0xff] }
 0x646   : > { %1098 = vmatpush.msrb.mxu2 %v1071_v41 }
 0x648   : > { %1099 = vmatpush.msrb.mxu2 %v1070_v42 }
 0x650   : > { %939 = vrot.lane.b32.xlu2 %v1616_v8, %s1505_s28 }
 0x653   : > { %v810_v56 = vpop.permute.xlu1 %809 }
 0x654   : > { %837 = vmatpush.msra.mxu3 %v810_v56  ;;  %v1435_v56 = vld [vmem:[%s1844_s5] ss:$0 sm:$0xff] }
 0x655   : > { %1386 = vmatmul.msk.f32.vlgmr.msra.gmra.mxu3 %vm528_vm2, %v807_v55 }
 0x656   : > { %994 = vmatpush.msrb.mxu3 %v484_v3 }
 0x65b   : > { %v938_v63 = vpop.permute.xlu1 %937 }
 0x65d   : > { %1387 = vmatmul.msk.f32.gmra.mxu3 %vm528_vm2, %v808_v58 }
 0x6ab   : > { %v929_v59 = vpop.xlane.xlu2 %928 }
 0x6ac   : > { %1469 = vrcp.f32 %v929_v59 }
 0x6b2   : > { %v1470_v60 = vpop.eup %1469 }
 0x6b3   : > { %v932_v61 = vpop.xlane.xlu0 %931  ;;  %v940_v62 = vpop.permute.xlu2 %939  ;;  %v935_v8 = vmul.f32 %v1470_v60, %v1462_v47  ;;  %v1436_v60 = vld [vmem:[%s1845_s6] ss:$0 sm:$0xff] }
 0x6b4   : > { %1471 = vrcp.f32 %v932_v61  ;;  %1394 = vmatpush.msk.msrb.mxu1 %vm563_vm4, %v940_v62  ;;  %vm1207_vm4 = vcmask 523264  }
 0x6b5   : > { %1473 = vrcp.f32 %v1506_v24  ;;  %v1200_v24 = vld [vmem:[%s1848_s9 + $0x28] sm:$0xff] }
 0x6b6   : > { %965 = vmatpush.msrb.mxu1 %v938_v63 }
 0x6b7   : > { %1395 = vmatmul.msk.f32.vlgmr.msrb.gmra.mxu1 %vm528_vm2, %v935_v8 }
 0x6ba   : > { %v1472_v1 = vpop.eup %1471 }
 0x6bb   : > { %v936_v2 = vmul.f32 %v1472_v1, %v1464_v50  ;;  %v1474_v25 = vpop.eup %1473 }
 0x6bc   : > { %v1016_v26 = vmul.f32 32.0, %v1474_v25  ;;  %vm1020_vm6 = vweird.f32 %v1474_v25 }
 0x6be   : > { %v1017_v27 = vsub.f32 1.0, %v1016_v26 }
 0x6bf   : > { %1396 = vmatmul.msk.f32.gmra.mxu1 %vm528_vm2, %v936_v2 }
 0x6d8   : > { %v839_v6 = vpop.f32.mrf.mxu3 }
 0x6d9   : > { %1388 = vmatmul.msk.f32.vlgmr.msra.gmra.mxu2 %vm496_vm1, %v839_v6 }
 0x6e0   : > { %v842_v7 = vpop.f32.mrf.mxu3 }
 0x6e1   : > { %1389 = vmatmul.msk.f32.gmra.mxu2 %vm496_vm1, %v842_v7  ;;  %v1437_v7 = vld [vmem:[%s1847_s8] ss:$0 sm:$0xff] }
 0x734   : > { %v967_v9 = vpop.f32.mrf.mxu1 }
 0x735   : > { %1397 = vmatmul.msk.f32.vlgmr.msrb.gmra.mxu3 %vm496_vm1, %v967_v9 }
 0x73c   : > { %v970_v11 = vpop.f32.mrf.mxu1 }
 0x73d   : > { %1398 = vmatmul.msk.f32.gmra.mxu3 %vm496_vm1, %v970_v11 }
 0x75c   : > { %v868_v12 = vpop.f32.mrf.mxu2 }
 0x75d   : > { %v874_v13 = vadd.f32 %v868_v12, %v1695_v29 }
 0x764   : > { %v871_v17 = vpop.f32.mrf.mxu2 }
 0x765   : > { %v875_v19 = vadd.f32 %v871_v17, %v1698_v32 }
 0x7b8   : > { %v996_v14 = vpop.f32.mrf.mxu3 }
 0x7b9   : > { %v1002_v15 = vadd.f32 %v996_v14, %v874_v13 }
 0x7bb   : > { %v1004_v16 = vadd.f32 %v1002_v15, %v1607_v5  ;;  %v1018_v5 = vmul.f32 %v1474_v25, %v1017_v27 }
 0x7bd   : > { %v1008_v18 = vsel %vm451_vm0, %v1004_v16, 0.0  ;;  %v1019_v28 = vadd.f32 %v1474_v25, %v1018_v5  ;;  %v1199_v5 = vld [vmem:[%s1848_s9 + $0x20] sm:$0xff] }
 0x7be   : > { %1009 = vadd.xlane.f32.xlu2 %v1008_v18 }
 0x7bf   : > { %v1731_v29 = vsel %vm1020_vm6, %v1474_v25, %v1019_v28 }
 0x7c0   : > { %v999_v20 = vpop.f32.mrf.mxu3 }
 0x7c1   : > { %v1003_v21 = vadd.f32 %v999_v20, %v875_v19  ;;  %v1201_v20 = vld [vmem:[%s1848_s9 + $0x30] sm:$0xff] }
 0x7c3   : > { %v1005_v22 = vadd.f32 %v1003_v21, %v1605_v4 }
 0x7c5   : > { %v1012_v23 = vsel %vm1011_vm5, %v1005_v22, 0.0 }
 0x7c6   : > { %1013 = vadd.xlane.f32.xlu1 %v1012_v23 }
 0x831   : > { %v1010_v30 = vpop.xlane.xlu2 %1009 }
 0x832   : > { %v1022_v31 = vmul.f32 %v1731_v29, %v1010_v30 }
 0x834   : > { %v1024_v32 = vsub.f32 %v1004_v16, %v1022_v31  ;;  %v1202_v16 = vld [vmem:[%s1848_s9 + $0x38] sm:$0xff] }
 0x835   : > { %1222 = vmatpush.msrb.mxu0 %v1202_v16 }
 0x836   : > { %v1026_v33 = vmul.f32 %v1024_v32, %v1024_v32 }
 0x837   : > { %1223 = vmatpush.msrb.mxu0 %v1201_v20 }
 0x838   : > { %v1028_v4 = vsel %vm451_vm0, %v1026_v33, 0.0 }
 0x839   : > { %1029 = vadd.xlane.f32.xlu0 %v1028_v4  ;;  %v1014_v34 = vpop.xlane.xlu1 %1013  ;;  %1224 = vmatpush.msrb.mxu0 %v1200_v24 }
 0x83a   : > { %v1023_v35 = vmul.f32 %v1731_v29, %v1014_v34 }
 0x83b   : > { %1225 = vmatpush.msrb.mxu0 %v1199_v5 }
 0x83c   : > { %v1025_v36 = vsub.f32 %v1005_v22, %v1023_v35  ;;  %v1197_v35 = vld [vmem:[%s1848_s9 + $0x10] sm:$0xff] }
 0x83e   : > { %v1027_v37 = vmul.f32 %v1025_v36, %v1025_v36 }
 0x840   : > { %v1031_v38 = vsel %vm1011_vm5, %v1027_v37, 0.0 }
 0x841   : > { %1032 = vadd.xlane.f32.xlu0 %v1031_v38 }
 0x8ac   : > { %v1030_v43 = vpop.xlane.xlu0 %1029 }
 0x8ad   : > { %v1034_v44 = vmul.f32 %v1030_v43, %v1731_v29 }
 0x8af   : > { %v1036_v45 = vadd.f32 1e-05, %v1034_v44  ;;  %v1195_v44 = vld [vmem:[%s1848_s9] sm:$0xff] }
 0x8b1   : > { %1475 = vrsqrt.f32 %v1036_v45  ;;  %vm1044_vm8 = vweird.f32 %v1036_v45 }
 0x8b4   : > { %v1033_v46 = vpop.xlane.xlu0 %1032 }
 0x8b5   : > { %v1035_v47 = vmul.f32 %v1033_v46, %v1731_v29 }
 0x8b7   : > { %v1476_v48 = vpop.eup %1475  ;;  %v1037_v49 = vadd.f32 1e-05, %v1035_v47 }
 0x8b8   : > { %v1039_v50 = vmul.f32 %v1476_v48, %v1036_v45  ;;  %vm1045_vm7 = vweird.f32 %v1476_v48 }
 0x8b9   : > { %1477 = vrsqrt.f32 %v1037_v49  ;;  %vm1046_vm9 = vmor %vm1044_vm8, %vm1045_vm7  ;;  %vm1054_vm11 = vweird.f32 %v1037_v49 }
 0x8ba   : > { %v1040_v51 = vmul.f32 %v1476_v48, %v1039_v50 }
 0x8bc   : > { %v1041_v52 = vmul.f32 0.5, %v1040_v51 }
 0x8be   : > { %v1042_v10 = vsub.f32 1.5, %v1041_v52 }
 0x8bf   : > { %v1478_v53 = vpop.eup %1477 }
 0x8c0   : > { %v1043_v54 = vmul.f32 %v1476_v48, %v1042_v10  ;;  %v1049_v55 = vmul.f32 %v1478_v53, %v1037_v49  ;;  %vm1055_vm10 = vweird.f32 %v1478_v53 }
 0x8c1   : > { %vm1056_vm12 = vmor %vm1054_vm11, %vm1055_vm10 }
 0x8c2   : > { %v1047_v57 = vsel %vm1046_vm9, %v1476_v48, %v1043_v54  ;;  %v1050_v58 = vmul.f32 %v1478_v53, %v1049_v55 }
 0x8c3   : > { %v1058_v59 = vmul.f32 %v1047_v57, %v1024_v32  ;;  %v1198_v32 = vld [vmem:[%s1848_s9 + $0x18] sm:$0xff] }
 0x8c4   : > { %v1051_v61 = vmul.f32 0.5, %v1050_v58  ;;  %1226 = vmatpush.msrb.mxu0 %v1198_v32 }
 0x8c5   : > { %v1063_v62 = vmul.f32 %v1435_v56, %v1058_v59 }
 0x8c6   : > { %v1052_v63 = vsub.f32 1.5, %v1051_v61  ;;  %1227 = vmatpush.msrb.mxu0 %v1197_v35 }
 0x8c7   : > { %v1757_v8 = vadd.f32 %v1436_v60, %v1063_v62 }
 0x8c8   : > { %v1053_v0 = vmul.f32 %v1478_v53, %v1052_v63  ;;  %1228 = vmatpush.msrb.mxu0 %v1196_v40 }
 0x8c9   : > { %1399 = vmatmul.msk.f32.vlgmr.msrb.gmra.mxu2 %vm451_vm0, %v1757_v8 }
 0x8ca   : > { %v1057_v1 = vsel %vm1056_vm12, %v1478_v53, %v1053_v0  ;;  %1229 = vmatpush.msrb.mxu0 %v1195_v44 }
 0x8cb   : > { %v1059_v2 = vmul.f32 %v1057_v1, %v1025_v36 }
 0x8cd   : > { %v1064_v3 = vmul.f32 %v1435_v56, %v1059_v2 }
 0x8cf   : > { %v1761_v6 = vadd.f32 %v1436_v60, %v1064_v3 }
 0x8d1   : > { %1400 = vmatmul.msk.f32.gmra.mxu2 %vm451_vm0, %v1761_v6 }
 0x94c   : > { %v1101_v9 = vpop.f32.mrf.mxu2 }
 0x94d   : > { %v1768_v11 = vadd.f32 %v1437_v7, %v1101_v9 }
 0x94f   : > { %v1771_v12 = vmul.f32 0.70710677, %v1768_v11 }
 0x951   : > { %v1111_v13 = vmul.f32 %v1771_v12, %v1771_v12 }
 0x953   : > { %v1112_v14 = vmin.f32 %v1111_v13, 16.0 }
 0x954   : > { %v1104_v15 = vpop.f32.mrf.mxu2 }
 0x955   : > { %v1113_v17 = vmul.f32 2.1237322e-06, %v1112_v14  ;;  %v1124_v18 = vmul.f32 3.8918573e-05, %v1112_v14  ;;  %v1778_v19 = vadd.f32 %v1437_v7, %v1104_v15 }
 0x957   : > { %v1114_v21 = vadd.f32 0.00028619796, %v1113_v17  ;;  %v1125_v22 = vadd.f32 0.001143296, %v1124_v18  ;;  %v1784_v23 = vmul.f32 0.70710677, %v1778_v19 }
 0x959   : > { %v1115_v25 = vmul.f32 %v1114_v21, %v1112_v14  ;;  %v1126_v26 = vmul.f32 %v1125_v22, %v1112_v14  ;;  %v1151_v27 = vmul.f32 %v1784_v23, %v1784_v23 }
 0x95b   : > { %v1127_v28 = vadd.f32 0.014752088, %v1126_v26  ;;  %v1116_v30 = vadd.f32 0.0036580483, %v1115_v25  ;;  %v1152_v31 = vmin.f32 %v1151_v27, 16.0 }
 0x95d   : > { %v1128_v33 = vmul.f32 %v1127_v28, %v1112_v14  ;;  %v1153_v4 = vmul.f32 2.1237322e-06, %v1152_v31  ;;  %v1164_v34 = vmul.f32 3.8918573e-05, %v1152_v31  ;;  %v1117_v37 = vmul.f32 %v1116_v30, %v1112_v14 }
 0x95e   : > { %v1107_v30 = vmul.f32 0.5, %v1768_v11  ;;  %v1438_v11 = vld [vmem:[%s1849_s10] ss:$0 sm:$0xff] }
 0x95f   : > { %v1129_v36 = vadd.f32 0.112945676, %v1128_v33  ;;  %v1154_v38 = vadd.f32 0.00028619796, %v1153_v4  ;;  %v1165_v39 = vadd.f32 0.001143296, %v1164_v34 }
 0x960   : > { %v1118_v46 = vadd.f32 0.05243302, %v1117_v37 }
 0x961   : > { %v1130_v41 = vmul.f32 %v1129_v36, %v1112_v14  ;;  %v1155_v42 = vmul.f32 %v1154_v38, %v1152_v31  ;;  %v1166_v43 = vmul.f32 %v1165_v39, %v1152_v31  ;;  %v1108_v38 = vmul.f32 0.5, %v1778_v19 }
 0x962   : > { %v1119_v52 = vmul.f32 %v1118_v46, %v1112_v14 }
 0x963   : > { %v1131_v45 = vadd.f32 0.4994258, %v1130_v41  ;;  %v1167_v47 = vadd.f32 0.014752088, %v1166_v43  ;;  %v1156_v49 = vadd.f32 0.0036580483, %v1155_v42 }
 0x964   : > { %v1120_v55 = vadd.f32 0.18741608, %v1119_v52 }
 0x965   : > { %v1132_v48 = vmul.f32 %v1131_v45, %v1112_v14  ;;  %v1168_v50 = vmul.f32 %v1167_v47, %v1152_v31  ;;  %v1157_v53 = vmul.f32 %v1156_v49, %v1152_v31 }
 0x966   : > { %v1121_v60 = vmul.f32 %v1120_v55, %v1112_v14 }
 0x967   : > { %v1133_v51 = vadd.f32 1.0, %v1132_v48  ;;  %v1169_v10 = vadd.f32 0.112945676, %v1168_v50  ;;  %v1158_v57 = vadd.f32 0.05243302, %v1157_v53 }
 0x968   : > { %v1122_v2 = vadd.f32 1.1283791, %v1121_v60 }
 0x969   : > { %1479 = vrcp.f32 %v1133_v51  ;;  %v1170_v54 = vmul.f32 %v1169_v10, %v1152_v31  ;;  %v1159_v63 = vmul.f32 %v1158_v57, %v1152_v31  ;;  %v1145_v1 = vand.u32 2147483648, %v1133_v51 }
 0x96a   : > { %v1143_v7 = vand.u32 2147483647, %v1133_v51  ;;  %vm1139_vm14 = vweird.f32 %v1133_v51  ;;  %v1123_v17 = vmul.f32 %v1122_v2, %v1771_v12 }
 0x96b   : > { %v1171_v56 = vadd.f32 0.4994258, %v1170_v54  ;;  %v1160_v9 = vadd.f32 0.18741608, %v1159_v63  ;;  %v1146_v15 = vor.u32 1.1754944e-38, %v1145_v1 }
 0x96c   : > { %vm1144_vm1 = vcmp.eq.f32.partialorder %v1143_v7, 8.507059e+37 }
 0x96d   : > { %v1172_v58 = vmul.f32 %v1171_v56, %v1152_v31  ;;  %v1161_v20 = vmul.f32 %v1160_v9, %v1152_v31 }
 0x96f   : > { %v1480_v59 = vpop.eup %1479  ;;  %v1173_v62 = vadd.f32 1.0, %v1172_v58  ;;  %v1162_v27 = vadd.f32 1.1283791, %v1161_v20 }
 0x970   : > { %v1135_v61 = vmul.f32 %v1480_v59, %v1133_v51  ;;  %vm1140_vm13 = vweird.f32 %v1480_v59 }
 0x971   : > { %1481 = vrcp.f32 %v1173_v62  ;;  %vm1141_vm15 = vmor %vm1139_vm14, %vm1140_vm13  ;;  %v1185_v26 = vand.u32 2147483648, %v1173_v62  ;;  %v1183_v28 = vand.u32 2147483647, %v1173_v62  ;;  %vm1179_vm3 = vweird.f32 %v1173_v62 }
 0x972   : > { %v1136_v0 = vsub.f32 1.0, %v1135_v61  ;;  %v1163_v31 = vmul.f32 %v1162_v27, %v1784_v23 }
 0x973   : > { %v1186_v4 = vor.u32 1.1754944e-38, %v1185_v26  ;;  %vm1184_vm7 = vcmp.eq.f32.partialorder %v1183_v28, 8.507059e+37 }
 0x974   : > { %v1137_v3 = vmul.f32 %v1480_v59, %v1136_v0 }
 0x976   : > { %v1138_v13 = vadd.f32 %v1480_v59, %v1137_v3  ;;  %v1439_v3 = vld [vmem:[%s1850_s11] ss:$0 sm:$0xff] }
 0x977   : > { %v1482_v16 = vpop.eup %1481 }
 0x978   : > { %v1142_v18 = vsel %vm1141_vm15, %v1480_v59, %v1138_v13  ;;  %v1175_v21 = vmul.f32 %v1482_v16, %v1173_v62  ;;  %vm1180_vm2 = vweird.f32 %v1482_v16 }
 0x979   : > { %v1147_v14 = vsel %vm1144_vm1, %v1146_v15, %v1142_v18  ;;  %vm1181_vm6 = vmor %vm1179_vm3, %vm1180_vm2 }
 0x97a   : > { %v1148_v22 = vmul.f32 %v1147_v14, %v1123_v17  ;;  %v1176_v24 = vsub.f32 1.0, %v1175_v21 }
 0x97c   : > { %v1401_v25 = vclamps-f32 %v1148_v22, 1.0  ;;  %v1177_v5 = vmul.f32 %v1482_v16, %v1176_v24 }
 0x97e   : > { %v1191_v32 = vadd.f32 1.0, %v1401_v25  ;;  %v1178_v33 = vadd.f32 %v1482_v16, %v1177_v5 }
 0x980   : > { %v1193_v12 = vmul.f32 %v1191_v32, %v1107_v30  ;;  %v1182_v34 = vsel %vm1181_vm6, %v1482_v16, %v1178_v33 }
 0x981   : > { %v1187_v35 = vsel %vm1184_vm7, %v1186_v4, %v1182_v34 }
 0x982   : > { %1403 = vmatmul.msk.f32.vlgmr.msrb.gmra.mxu0 %vm1207_vm4, %v1193_v12  ;;  %v1188_v36 = vmul.f32 %v1187_v35, %v1163_v31 }
 0x984   : > { %v1402_v37 = vclamps-f32 %v1188_v36, 1.0 }
 0x986   : > { %v1192_v39 = vadd.f32 1.0, %v1402_v37 }
 0x988   : > { %v1194_v40 = vmul.f32 %v1192_v39, %v1108_v38 }
 0x98a   : > { %1404 = vmatmul.msk.f32.gmra.mxu0 %vm1207_vm4, %v1194_v40 }
 0x9ff   : > { %v1231_v41 = vpop.f32.mrf.mxu0 }
 0xa00   : > { %v1232_v42 = vadd.f32 %v1438_v11, %v1231_v41 }
 0xa02   : > { %v1237_v43 = vadd.f32 %v1232_v42, %v1757_v8 }
 0xa04   : > { %v1241_v23 = vsel %vm451_vm0, %v1237_v43, 0.0 }
 0xa05   : > { %1242 = vadd.xlane.f32.xlu2 %v1241_v23 }
 0xa07   : > { %v1234_v44 = vpop.f32.mrf.mxu0 }
 0xa08   : > { %v1235_v45 = vadd.f32 %v1438_v11, %v1234_v44 }
 0xa0a   : > { %v1238_v46 = vadd.f32 %v1235_v45, %v1761_v6 }
 0xa0c   : > { %v1244_v19 = vsel %vm1011_vm5, %v1238_v46, 0.0 }
 0xa0d   : > { %1245 = vadd.xlane.f32.xlu0 %v1244_v19 }
 0xa78   : > { %v1243_v47 = vpop.xlane.xlu2 %1242 }
 0xa79   : > { %v1247_v48 = vmul.f32 %v1243_v47, %v1731_v29 }
 0xa7b   : > { %v1249_v49 = vsub.f32 %v1237_v43, %v1247_v48 }
 0xa7d   : > { %v1251_v50 = vmul.f32 %v1249_v49, %v1249_v49 }
 0xa7f   : > { %v1253_v51 = vsel %vm451_vm0, %v1251_v50, 0.0 }
 0xa80   : > { %1254 = vadd.xlane.f32.xlu1 %v1253_v51  ;;  %v1246_v52 = vpop.xlane.xlu0 %1245 }
 0xa81   : > { %v1248_v8 = vmul.f32 %v1246_v52, %v1731_v29 }
 0xa83   : > { %v1250_v10 = vsub.f32 %v1238_v46, %v1248_v8 }
 0xa85   : > { %v1252_v53 = vmul.f32 %v1250_v10, %v1250_v10 }
 0xa87   : > { %v1256_v54 = vsel %vm1011_vm5, %v1252_v53, 0.0 }
 0xa88   : > { %1257 = vadd.xlane.f32.xlu2 %v1256_v54 }
 0xaf3   : > { %v1255_v6 = vpop.xlane.xlu1 %1254 }
 0xaf4   : > { %v1259_v55 = vmul.f32 %v1255_v6, %v1731_v29 }
 0xaf6   : > { %v1261_v56 = vadd.f32 1e-05, %v1259_v55 }
 0xaf8   : > { %1483 = vrsqrt.f32 %v1261_v56  ;;  %vm1269_vm9 = vweird.f32 %v1261_v56 }
 0xafb   : > { %v1258_v57 = vpop.xlane.xlu2 %1257 }
 0xafc   : > { %v1260_v58 = vmul.f32 %v1258_v57, %v1731_v29  ;;  %v1440_v29 = vld [vmem:[%s1851_s12] ss:$0 sm:$0xff] }
 0xafe   : > { %v1484_v59 = vpop.eup %1483  ;;  %v1262_v61 = vadd.f32 1e-05, %v1260_v58 }
 0xaff   : > { %v1264_v60 = vmul.f32 %v1484_v59, %v1261_v56  ;;  %vm1270_vm8 = vweird.f32 %v1484_v59 }
 0xb00   : > { %1485 = vrsqrt.f32 %v1262_v61  ;;  %vm1271_vm10 = vmor %vm1269_vm9, %vm1270_vm8  ;;  %vm1279_vm12 = vweird.f32 %v1262_v61 }
 0xb01   : > { %v1265_v62 = vmul.f32 %v1484_v59, %v1264_v60 }
 0xb03   : > { %v1266_v63 = vmul.f32 0.5, %v1265_v62 }
 0xb05   : > { %v1267_v0 = vsub.f32 1.5, %v1266_v63 }
 0xb06   : > { %v1486_v1 = vpop.eup %1485 }
 0xb07   : > { %v1268_v2 = vmul.f32 %v1484_v59, %v1267_v0  ;;  %v1274_v7 = vmul.f32 %v1486_v1, %v1262_v61  ;;  %vm1280_vm11 = vweird.f32 %v1486_v1 }
 0xb08   : > { %vm1281_vm13 = vmor %vm1279_vm12, %vm1280_vm11 }
 0xb09   : > { %v1272_v9 = vsel %vm1271_vm10, %v1484_v59, %v1268_v2  ;;  %v1275_v15 = vmul.f32 %v1486_v1, %v1274_v7 }
 0xb0a   : > { %v1283_v13 = vmul.f32 %v1272_v9, %v1249_v49 }
 0xb0b   : > { %v1276_v17 = vmul.f32 0.5, %v1275_v15 }
 0xb0c   : > { %v1288_v16 = vmul.f32 %v1439_v3, %v1283_v13 }
 0xb0d   : > { %v1277_v14 = vsub.f32 1.5, %v1276_v17 }
 0xb0e   : > { %v1293_v18 = vadd.f32 %v1440_v29, %v1288_v16 }
 0xb0f   : > { %v1278_v20 = vmul.f32 %v1486_v1, %v1277_v14 }
 0xb10   : > { %1295 = vst.msk [vmem:[%s440_s29] sm:$0xff] %vm451_vm0, %v1293_v18 }
 0xb11   : > { %v1282_v21 = vsel %vm1281_vm13, %v1486_v1, %v1278_v20 }
 0xb12   : > { %v1284_v22 = vmul.f32 %v1282_v21, %v1250_v10 }
 0xb14   : > { %v1289_v24 = vmul.f32 %v1439_v3, %v1284_v22 }
 0xb16   : > { %v1294_v25 = vadd.f32 %v1440_v29, %v1289_v24 }
 0xb18   : > { %1296 = vst.msk [vmem:[%s440_s29 + $0x8] sm:$0x3f] %vm1011_vm5, %v1294_v25 }
 0xb19 PF: > { %s23_s25 = sadd.s32 1, %s1493_s25  }
 0xb1a   : > { %p20_p4 = scmp.ge.s32.totalorder %s23_s25, 4  }
 0xb1c   :  { %22 = sbr.rel (!%p20_p4) target bundleno = 1 (0x1), region = 102 }

</bundles_post_ra>
